<compile_context>
chip_gen: v7x
topology: tpu7x:2x2x1
jax: 0.10.0
libtpu: 0.0.40
codegen_flags: <defaults>
</compile_context>

<pallas_src>
import functools

import jax
import jax.numpy as jnp
import numpy as np
from jax.experimental import pallas as pl
from jax.experimental.pallas import tpu as pltpu

_LANE = 128


def _round_up(x, m):
    return ((x + m - 1) // m) * m


def _tensorcores_per_chip():
    """Best-effort: 2 for megacore-style chips (v4 / v5p / v7x), else 1."""
    try:
        kind = jax.devices()[0].device_kind.lower()
    except Exception:
        return 1
    if ("v7" in kind) or ("v4" in kind) or ("v5p" in kind):
        return 2
    return 1


def _physical_vmem_bytes():
    """Physical VMEM per core; conservative 64 MiB (v7x) fallback."""
    try:
        return int(pltpu.get_tpu_info().vmem_capacity_bytes)
    except Exception:
        return 64 * 1024 * 1024


def _vpu_matmul(w, h):
    """(O, K) @ (K, TB) as K unrolled broadcast FMAs on the VPU (K static, small)."""
    acc = w[:, 0:1] * h[0:1, :]
    for k in range(1, w.shape[1]):
        acc = acc + w[:, k:k + 1] * h[k:k + 1, :]
    return acc


def _denoiser_kernel(*refs, n_int, vpu_hidden, bf16_matmul):
    # refs = (x_t, w_in, [w_hidden], w_out, o_t)
    if n_int > 0:
        x_ref, w_in_ref, w_h_ref, w_out_ref, o_ref = refs
    else:
        x_ref, w_in_ref, w_out_ref, o_ref = refs
        w_h_ref = None

    xt = x_ref[...]          # (2, TB)   batch on lanes
    w_in = w_in_ref[...]     # (H, 2)    PyTorch [out, in] layout

    # First layer has K=2: VPU broadcast FMA, never worth an MXU round-trip.
    h = w_in[:, 0:1] * xt[0:1, :] + w_in[:, 1:2] * xt[1:2, :]    # (H, TB) f32
    h = jnp.maximum(h, 0.0)

    # Hidden blocks. n_int is small & static, so a Python loop is fine.
    for i in range(n_int):
        w = w_h_ref[i]                                           # (H, H)
        if vpu_hidden:
            # H <= 64: MXU would be badly underutilized; do it on the VPU.
            h = _vpu_matmul(w.astype(jnp.float32), h)
        else:
            rhs = h.astype(jnp.bfloat16) if bf16_matmul else h
            h = jnp.dot(w, rhs, preferred_element_type=jnp.float32)
        h = jnp.maximum(h, 0.0)

    # Output layer: (2, H) @ (H, TB) -> (2, TB); lane-dense store.
    w_out = w_out_ref[...]
    if vpu_hidden:
        out = _vpu_matmul(w_out.astype(jnp.float32), h)
    else:
        rhs = h.astype(jnp.bfloat16) if bf16_matmul else h
        out = jnp.dot(w_out, rhs, preferred_element_type=jnp.float32)
    o_ref[...] = out.astype(o_ref.dtype)


def denoiser_forward(x, w_in, w_hidden, w_out, *, batch_tile=None):
    """Denoiser forward.

    x:        [N, 2] float32
    w_in:     [H, 2]        (PyTorch nn.Linear layout, [out, in])
    w_hidden: [n_int, H, H] (n_int may be 0)
    w_out:    [2, H]
    returns:  [N, 2] float32
    """
    N, two = x.shape
    assert two == 2
    H = w_in.shape[0]
    n_int = int(w_hidden.shape[0])

    # Compute-path gates (see header comments).
    vpu_hidden = H <= 64
    bf16_matmul = (not vpu_hidden) and H >= 256
    if bf16_matmul:
        w_hidden = w_hidden.astype(jnp.bfloat16)
        w_out = w_out.astype(jnp.bfloat16)

    w_itemsize = 2 if bf16_matmul else 4
    weight_bytes = H * 2 * 4 + (n_int * H * H + 2 * H) * w_itemsize
    # Grid-invariant weights: single-buffer once they are big enough to matter.
    single_buffer_weights = weight_bytes > (2 << 20)
    weight_vmem = weight_bytes * (1 if single_buffer_weights else 2)

    # --- batch tile -----------------------------------------------------------
    # Small H => overhead/DMA-bound: use big 128-aligned tiles to amortize the
    # ~0.35 us/grid-step cost; clamp by the computed VMEM footprint below.
    n_lanes = _round_up(N, _LANE)
    if batch_tile is None:
        batch_tile = 16384 if H <= 128 else (8192 if H <= 512 else 2048)
    tb = max(_LANE, min(_round_up(batch_tile, _LANE), n_lanes))

    # --- per-generation VMEM budget ------------------------------------------
    phys_vmem = _physical_vmem_bytes()
    budget = int(phys_vmem * 0.70)          # leave compiler-scratch headroom

    def footprint(t):
        io = 2 * (2 * t * 4) * 2            # x + out tiles, double-buffered
        act = 3 * H * t * 4                 # live f32 activations (+ slack)
        return io + act + weight_vmem + (2 << 20)

    denom = 32 + 12 * H                      # d(footprint)/d(tb)
    max_t = (budget - weight_vmem - (2 << 20)) // denom
    if max_t >= _LANE:
        tb = max(_LANE, min(tb, (max_t // _LANE) * _LANE))
    else:
        tb = _LANE

    # --- 2-TC split: only on megacore-style chips and only when the per-step
    # work is big enough that two steps beat one (never for tiny configs). ----
    per_step_flops = 2 * tb * H * (4 + n_int * H)
    if (_tensorcores_per_chip() >= 2 and pl.cdiv(N, tb) == 1
            and n_lanes >= 2 * _LANE and per_step_flops >= (2 << 20)):
        tb = _round_up((n_lanes + 1) // 2, _LANE)

    grid = (pl.cdiv(N, tb),)

    # Batch-on-lanes; no zero-pad copy — the ragged last tile is handled by the
    # grid (input overhang is never mixed across lanes, output overhang store
    # is masked by Mosaic).
    x_t = x.T                                # (2, N)

    w_kwargs = dict(pipeline_mode=pl.Buffered(1)) if single_buffer_weights else {}

    in_specs = [pl.BlockSpec((2, tb), lambda i: (0, i)),                 # x_t tile
                pl.BlockSpec((H, 2), lambda i: (0, 0), **w_kwargs)]      # w_in
    operands = [x_t, w_in]
    if n_int > 0:
        in_specs.append(pl.BlockSpec((n_int, H, H), lambda i: (0, 0, 0), **w_kwargs))
        operands.append(w_hidden)
    in_specs.append(pl.BlockSpec((2, H), lambda i: (0, 0), **w_kwargs))  # w_out
    operands.append(w_out)

    vmem_limit = int(min(budget, max(32 << 20, footprint(tb) + (4 << 20))))

    cost = pl.CostEstimate(
        flops=2 * N * H * (4 + n_int * H),
        transcendentals=0,
        bytes_accessed=2 * N * 4 * 2 + weight_bytes,
    )

    out_t = pl.pallas_call(
        functools.partial(_denoiser_kernel, n_int=n_int,
                          vpu_hidden=vpu_hidden, bf16_matmul=bf16_matmul),
        out_shape=jax.ShapeDtypeStruct((2, N), jnp.float32),
        grid_spec=pltpu.PrefetchScalarGridSpec(
            num_scalar_prefetch=0,
            grid=grid,
            in_specs=in_specs,
            out_specs=pl.BlockSpec((2, tb), lambda i: (0, i)),
        ),
        compiler_params=pltpu.CompilerParams(
            dimension_semantics=("parallel",),
            vmem_limit_bytes=vmem_limit,
        ),
        cost_estimate=cost,
    )(*operands)

    return out_t.T                           # (N, 2), matches nn.Module output


def _xavier_normal(key, out_features, in_features):
    # torch.nn.init.xavier_normal_: std = sqrt(2 / (fan_in + fan_out))
    std = float(np.sqrt(2.0 / (in_features + out_features)))
    return std * jax.random.normal(key, (out_features, in_features), dtype=jnp.float32)


def make_params(key, n_node, n_int):
    keys = jax.random.split(key, n_int + 2)
    w_in = _xavier_normal(keys[0], n_node, 2)                        # Linear(2, n_node)
    if n_int > 0:
        w_hidden = jnp.stack(
            [_xavier_normal(keys[1 + i], n_node, n_node) for i in range(n_int)]
        )                                                            # n_int x Linear(n_node, n_node)
    else:
        w_hidden = jnp.zeros((0, n_node, n_node), dtype=jnp.float32)
    w_out = _xavier_normal(keys[-1], 2, n_node)                      # Linear(n_node, 2)
    return w_in, w_hidden, w_out


def reference_forward(x, w_in, w_hidden, w_out):
    # PyTorch semantics: y = x @ W.T per Linear (bias=False); pin true-f32 matmuls
    # so the tolerance check does not depend on XLA's default bf16-pass lowering.
    hp = jax.lax.Precision.HIGHEST
    h = jnp.maximum(jnp.dot(x, w_in.T, precision=hp), 0.0)
    for i in range(w_hidden.shape[0]):
        h = jnp.maximum(jnp.dot(h, w_hidden[i].T, precision=hp), 0.0)
    return jnp.dot(h, w_out.T, precision=hp)


if __name__ == "__main__":
    n_node = 32   # hidden width
    n_int = 2     # number of intermediate Linear+ReLU blocks
    N = 200       # batch of 2-D points (deliberately not a multiple of 128)

    key = jax.random.PRNGKey(0)
    kx, kp = jax.random.split(key)
    x = jax.random.normal(kx, (N, 2), dtype=jnp.float32)
    w_in, w_hidden, w_out = make_params(kp, n_node, n_int)

    out = jax.block_until_ready(denoiser_forward(x, w_in, w_hidden, w_out))

    ref = reference_forward(x, w_in, w_hidden, w_out)
    np.testing.assert_allclose(np.asarray(out), np.asarray(ref), rtol=1e-5, atol=1e-5)

    print("KERNEL_OK")
</pallas_src>

<mosaic_0001>
module attributes {stable_mosaic.version = 11 : i64} {
  func.func @_denoiser_kernel(%arg0: i32, %arg1: memref<2x256xf32, #tpu.memory_space<vmem>>, %arg2: memref<32x2xf32, #tpu.memory_space<vmem>>, %arg3: memref<2x32x32xf32, #tpu.memory_space<vmem>>, %arg4: memref<2x32xf32, #tpu.memory_space<vmem>>, %arg5: memref<2x256xf32, #tpu.memory_space<vmem>>) attributes {dimension_semantics = [#tpu.dimension_semantics<parallel>], iteration_bounds = array<i64: 1>, scalar_prefetch = 0 : i64, scratch_operands = 0 : i64, tpu.core_type = #tpu.core_type<tc>, window_params = [{transform_indices = @transform_0, window_bounds = array<i64: 2, 256>}, {pipeline_mode = #tpu.pipeline_mode<synchronous>, transform_indices = @transform_1, window_bounds = array<i64: 32, 2>}, {pipeline_mode = #tpu.pipeline_mode<synchronous>, transform_indices = @transform_2, window_bounds = array<i64: 2, 32, 32>}, {pipeline_mode = #tpu.pipeline_mode<synchronous>, transform_indices = @transform_3, window_bounds = array<i64: 2, 32>}, {transform_indices = @transform_4, window_bounds = array<i64: 2, 256>}]} {
    %c0 = arith.constant 0 : index
    %c0_0 = arith.constant 0 : index
    %0 = vector.load %arg1[%c0, %c0_0] : memref<2x256xf32, #tpu.memory_space<vmem>>, vector<2x256xf32>
    %c0_1 = arith.constant 0 : index
    %c0_2 = arith.constant 0 : index
    %1 = vector.load %arg2[%c0_1, %c0_2] : memref<32x2xf32, #tpu.memory_space<vmem>>, vector<32x2xf32>
    %2 = vector.extract_strided_slice %1 {offsets = [0, 0], sizes = [32, 1], strides = [1, 1]} : vector<32x2xf32> to vector<32x1xf32>
    %3 = vector.extract_strided_slice %0 {offsets = [0, 0], sizes = [1, 256], strides = [1, 1]} : vector<2x256xf32> to vector<1x256xf32>
    %4 = vector.broadcast %2 : vector<32x1xf32> to vector<32x256xf32>
    %5 = vector.broadcast %3 : vector<1x256xf32> to vector<32x256xf32>
    %6 = arith.mulf %4, %5 : vector<32x256xf32>
    %7 = vector.extract_strided_slice %1 {offsets = [0, 1], sizes = [32, 1], strides = [1, 1]} : vector<32x2xf32> to vector<32x1xf32>
    %8 = vector.extract_strided_slice %0 {offsets = [1, 0], sizes = [1, 256], strides = [1, 1]} : vector<2x256xf32> to vector<1x256xf32>
    %9 = vector.broadcast %7 : vector<32x1xf32> to vector<32x256xf32>
    %10 = vector.broadcast %8 : vector<1x256xf32> to vector<32x256xf32>
    %11 = arith.mulf %9, %10 : vector<32x256xf32>
    %12 = arith.addf %6, %11 : vector<32x256xf32>
    %cst = arith.constant 0.000000e+00 : f32
    %13 = vector.broadcast %cst : f32 to vector<32x256xf32>
    %14 = arith.maximumf %12, %13 : vector<32x256xf32>
    %c0_3 = arith.constant 0 : index
    %c0_4 = arith.constant 0 : index
    %c0_5 = arith.constant 0 : index
    %15 = vector.load %arg3[%c0_3, %c0_4, %c0_5] : memref<2x32x32xf32, #tpu.memory_space<vmem>>, vector<1x32x32xf32>
    %16 = vector.shape_cast %15 : vector<1x32x32xf32> to vector<32x32xf32>
    %17 = vector.extract_strided_slice %16 {offsets = [0, 0], sizes = [32, 1], strides = [1, 1]} : vector<32x32xf32> to vector<32x1xf32>
    %18 = vector.extract_strided_slice %14 {offsets = [0, 0], sizes = [1, 256], strides = [1, 1]} : vector<32x256xf32> to vector<1x256xf32>
    %19 = vector.broadcast %17 : vector<32x1xf32> to vector<32x256xf32>
    %20 = vector.broadcast %18 : vector<1x256xf32> to vector<32x256xf32>
    %21 = arith.mulf %19, %20 : vector<32x256xf32>
    %22 = vector.extract_strided_slice %16 {offsets = [0, 1], sizes = [32, 1], strides = [1, 1]} : vector<32x32xf32> to vector<32x1xf32>
    %23 = vector.extract_strided_slice %14 {offsets = [1, 0], sizes = [1, 256], strides = [1, 1]} : vector<32x256xf32> to vector<1x256xf32>
    %24 = vector.broadcast %22 : vector<32x1xf32> to vector<32x256xf32>
    %25 = vector.broadcast %23 : vector<1x256xf32> to vector<32x256xf32>
    %26 = arith.mulf %24, %25 : vector<32x256xf32>
    %27 = arith.addf %21, %26 : vector<32x256xf32>
    %28 = vector.extract_strided_slice %16 {offsets = [0, 2], sizes = [32, 1], strides = [1, 1]} : vector<32x32xf32> to vector<32x1xf32>
    %29 = vector.extract_strided_slice %14 {offsets = [2, 0], sizes = [1, 256], strides = [1, 1]} : vector<32x256xf32> to vector<1x256xf32>
    %30 = vector.broadcast %28 : vector<32x1xf32> to vector<32x256xf32>
    %31 = vector.broadcast %29 : vector<1x256xf32> to vector<32x256xf32>
    %32 = arith.mulf %30, %31 : vector<32x256xf32>
    %33 = arith.addf %27, %32 : vector<32x256xf32>
    %34 = vector.extract_strided_slice %16 {offsets = [0, 3], sizes = [32, 1], strides = [1, 1]} : vector<32x32xf32> to vector<32x1xf32>
    %35 = vector.extract_strided_slice %14 {offsets = [3, 0], sizes = [1, 256], strides = [1, 1]} : vector<32x256xf32> to vector<1x256xf32>
    %36 = vector.broadcast %34 : vector<32x1xf32> to vector<32x256xf32>
    %37 = vector.broadcast %35 : vector<1x256xf32> to vector<32x256xf32>
    %38 = arith.mulf %36, %37 : vector<32x256xf32>
    %39 = arith.addf %33, %38 : vector<32x256xf32>
    %40 = vector.extract_strided_slice %16 {offsets = [0, 4], sizes = [32, 1], strides = [1, 1]} : vector<32x32xf32> to vector<32x1xf32>
    %41 = vector.extract_strided_slice %14 {offsets = [4, 0], sizes = [1, 256], strides = [1, 1]} : vector<32x256xf32> to vector<1x256xf32>
    %42 = vector.broadcast %40 : vector<32x1xf32> to vector<32x256xf32>
    %43 = vector.broadcast %41 : vector<1x256xf32> to vector<32x256xf32>
    %44 = arith.mulf %42, %43 : vector<32x256xf32>
    %45 = arith.addf %39, %44 : vector<32x256xf32>
    %46 = vector.extract_strided_slice %16 {offsets = [0, 5], sizes = [32, 1], strides = [1, 1]} : vector<32x32xf32> to vector<32x1xf32>
    %47 = vector.extract_strided_slice %14 {offsets = [5, 0], sizes = [1, 256], strides = [1, 1]} : vector<32x256xf32> to vector<1x256xf32>
    %48 = vector.broadcast %46 : vector<32x1xf32> to vector<32x256xf32>
    %49 = vector.broadcast %47 : vector<1x256xf32> to vector<32x256xf32>
    %50 = arith.mulf %48, %49 : vector<32x256xf32>
    %51 = arith.addf %45, %50 : vector<32x256xf32>
    %52 = vector.extract_strided_slice %16 {offsets = [0, 6], sizes = [32, 1], strides = [1, 1]} : vector<32x32xf32> to vector<32x1xf32>
    %53 = vector.extract_strided_slice %14 {offsets = [6, 0], sizes = [1, 256], strides = [1, 1]} : vector<32x256xf32> to vector<1x256xf32>
    %54 = vector.broadcast %52 : vector<32x1xf32> to vector<32x256xf32>
    %55 = vector.broadcast %53 : vector<1x256xf32> to vector<32x256xf32>
    %56 = arith.mulf %54, %55 : vector<32x256xf32>
    %57 = arith.addf %51, %56 : vector<32x256xf32>
    %58 = vector.extract_strided_slice %16 {offsets = [0, 7], sizes = [32, 1], strides = [1, 1]} : vector<32x32xf32> to vector<32x1xf32>
    %59 = vector.extract_strided_slice %14 {offsets = [7, 0], sizes = [1, 256], strides = [1, 1]} : vector<32x256xf32> to vector<1x256xf32>
    %60 = vector.broadcast %58 : vector<32x1xf32> to vector<32x256xf32>
    %61 = vector.broadcast %59 : vector<1x256xf32> to vector<32x256xf32>
    %62 = arith.mulf %60, %61 : vector<32x256xf32>
    %63 = arith.addf %57, %62 : vector<32x256xf32>
    %64 = vector.extract_strided_slice %16 {offsets = [0, 8], sizes = [32, 1], strides = [1, 1]} : vector<32x32xf32> to vector<32x1xf32>
    %65 = vector.extract_strided_slice %14 {offsets = [8, 0], sizes = [1, 256], strides = [1, 1]} : vector<32x256xf32> to vector<1x256xf32>
    %66 = vector.broadcast %64 : vector<32x1xf32> to vector<32x256xf32>
    %67 = vector.broadcast %65 : vector<1x256xf32> to vector<32x256xf32>
    %68 = arith.mulf %66, %67 : vector<32x256xf32>
    %69 = arith.addf %63, %68 : vector<32x256xf32>
    %70 = vector.extract_strided_slice %16 {offsets = [0, 9], sizes = [32, 1], strides = [1, 1]} : vector<32x32xf32> to vector<32x1xf32>
    %71 = vector.extract_strided_slice %14 {offsets = [9, 0], sizes = [1, 256], strides = [1, 1]} : vector<32x256xf32> to vector<1x256xf32>
    %72 = vector.broadcast %70 : vector<32x1xf32> to vector<32x256xf32>
    %73 = vector.broadcast %71 : vector<1x256xf32> to vector<32x256xf32>
    %74 = arith.mulf %72, %73 : vector<32x256xf32>
    %75 = arith.addf %69, %74 : vector<32x256xf32>
    %76 = vector.extract_strided_slice %16 {offsets = [0, 10], sizes = [32, 1], strides = [1, 1]} : vector<32x32xf32> to vector<32x1xf32>
    %77 = vector.extract_strided_slice %14 {offsets = [10, 0], sizes = [1, 256], strides = [1, 1]} : vector<32x256xf32> to vector<1x256xf32>
    %78 = vector.broadcast %76 : vector<32x1xf32> to vector<32x256xf32>
    %79 = vector.broadcast %77 : vector<1x256xf32> to vector<32x256xf32>
    %80 = arith.mulf %78, %79 : vector<32x256xf32>
    %81 = arith.addf %75, %80 : vector<32x256xf32>
    %82 = vector.extract_strided_slice %16 {offsets = [0, 11], sizes = [32, 1], strides = [1, 1]} : vector<32x32xf32> to vector<32x1xf32>
    %83 = vector.extract_strided_slice %14 {offsets = [11, 0], sizes = [1, 256], strides = [1, 1]} : vector<32x256xf32> to vector<1x256xf32>
    %84 = vector.broadcast %82 : vector<32x1xf32> to vector<32x256xf32>
    %85 = vector.broadcast %83 : vector<1x256xf32> to vector<32x256xf32>
    %86 = arith.mulf %84, %85 : vector<32x256xf32>
    %87 = arith.addf %81, %86 : vector<32x256xf32>
    %88 = vector.extract_strided_slice %16 {offsets = [0, 12], sizes = [32, 1], strides = [1, 1]} : vector<32x32xf32> to vector<32x1xf32>
    %89 = vector.extract_strided_slice %14 {offsets = [12, 0], sizes = [1, 256], strides = [1, 1]} : vector<32x256xf32> to vector<1x256xf32>
    %90 = vector.broadcast %88 : vector<32x1xf32> to vector<32x256xf32>
    %91 = vector.broadcast %89 : vector<1x256xf32> to vector<32x256xf32>
    %92 = arith.mulf %90, %91 : vector<32x256xf32>
    %93 = arith.addf %87, %92 : vector<32x256xf32>
    %94 = vector.extract_strided_slice %16 {offsets = [0, 13], sizes = [32, 1], strides = [1, 1]} : vector<32x32xf32> to vector<32x1xf32>
    %95 = vector.extract_strided_slice %14 {offsets = [13, 0], sizes = [1, 256], strides = [1, 1]} : vector<32x256xf32> to vector<1x256xf32>
    %96 = vector.broadcast %94 : vector<32x1xf32> to vector<32x256xf32>
    %97 = vector.broadcast %95 : vector<1x256xf32> to vector<32x256xf32>
    %98 = arith.mulf %96, %97 : vector<32x256xf32>
    %99 = arith.addf %93, %98 : vector<32x256xf32>
    %100 = vector.extract_strided_slice %16 {offsets = [0, 14], sizes = [32, 1], strides = [1, 1]} : vector<32x32xf32> to vector<32x1xf32>
    %101 = vector.extract_strided_slice %14 {offsets = [14, 0], sizes = [1, 256], strides = [1, 1]} : vector<32x256xf32> to vector<1x256xf32>
    %102 = vector.broadcast %100 : vector<32x1xf32> to vector<32x256xf32>
    %103 = vector.broadcast %101 : vector<1x256xf32> to vector<32x256xf32>
    %104 = arith.mulf %102, %103 : vector<32x256xf32>
    %105 = arith.addf %99, %104 : vector<32x256xf32>
    %106 = vector.extract_strided_slice %16 {offsets = [0, 15], sizes = [32, 1], strides = [1, 1]} : vector<32x32xf32> to vector<32x1xf32>
    %107 = vector.extract_strided_slice %14 {offsets = [15, 0], sizes = [1, 256], strides = [1, 1]} : vector<32x256xf32> to vector<1x256xf32>
    %108 = vector.broadcast %106 : vector<32x1xf32> to vector<32x256xf32>
    %109 = vector.broadcast %107 : vector<1x256xf32> to vector<32x256xf32>
    %110 = arith.mulf %108, %109 : vector<32x256xf32>
    %111 = arith.addf %105, %110 : vector<32x256xf32>
    %112 = vector.extract_strided_slice %16 {offsets = [0, 16], sizes = [32, 1], strides = [1, 1]} : vector<32x32xf32> to vector<32x1xf32>
    %113 = vector.extract_strided_slice %14 {offsets = [16, 0], sizes = [1, 256], strides = [1, 1]} : vector<32x256xf32> to vector<1x256xf32>
    %114 = vector.broadcast %112 : vector<32x1xf32> to vector<32x256xf32>
    %115 = vector.broadcast %113 : vector<1x256xf32> to vector<32x256xf32>
    %116 = arith.mulf %114, %115 : vector<32x256xf32>
    %117 = arith.addf %111, %116 : vector<32x256xf32>
    %118 = vector.extract_strided_slice %16 {offsets = [0, 17], sizes = [32, 1], strides = [1, 1]} : vector<32x32xf32> to vector<32x1xf32>
    %119 = vector.extract_strided_slice %14 {offsets = [17, 0], sizes = [1, 256], strides = [1, 1]} : vector<32x256xf32> to vector<1x256xf32>
    %120 = vector.broadcast %118 : vector<32x1xf32> to vector<32x256xf32>
    %121 = vector.broadcast %119 : vector<1x256xf32> to vector<32x256xf32>
    %122 = arith.mulf %120, %121 : vector<32x256xf32>
    %123 = arith.addf %117, %122 : vector<32x256xf32>
    %124 = vector.extract_strided_slice %16 {offsets = [0, 18], sizes = [32, 1], strides = [1, 1]} : vector<32x32xf32> to vector<32x1xf32>
    %125 = vector.extract_strided_slice %14 {offsets = [18, 0], sizes = [1, 256], strides = [1, 1]} : vector<32x256xf32> to vector<1x256xf32>
    %126 = vector.broadcast %124 : vector<32x1xf32> to vector<32x256xf32>
    %127 = vector.broadcast %125 : vector<1x256xf32> to vector<32x256xf32>
    %128 = arith.mulf %126, %127 : vector<32x256xf32>
    %129 = arith.addf %123, %128 : vector<32x256xf32>
    %130 = vector.extract_strided_slice %16 {offsets = [0, 19], sizes = [32, 1], strides = [1, 1]} : vector<32x32xf32> to vector<32x1xf32>
    %131 = vector.extract_strided_slice %14 {offsets = [19, 0], sizes = [1, 256], strides = [1, 1]} : vector<32x256xf32> to vector<1x256xf32>
    %132 = vector.broadcast %130 : vector<32x1xf32> to vector<32x256xf32>
    %133 = vector.broadcast %131 : vector<1x256xf32> to vector<32x256xf32>
    %134 = arith.mulf %132, %133 : vector<32x256xf32>
    %135 = arith.addf %129, %134 : vector<32x256xf32>
    %136 = vector.extract_strided_slice %16 {offsets = [0, 20], sizes = [32, 1], strides = [1, 1]} : vector<32x32xf32> to vector<32x1xf32>
    %137 = vector.extract_strided_slice %14 {offsets = [20, 0], sizes = [1, 256], strides = [1, 1]} : vector<32x256xf32> to vector<1x256xf32>
    %138 = vector.broadcast %136 : vector<32x1xf32> to vector<32x256xf32>
    %139 = vector.broadcast %137 : vector<1x256xf32> to vector<32x256xf32>
    %140 = arith.mulf %138, %139 : vector<32x256xf32>
    %141 = arith.addf %135, %140 : vector<32x256xf32>
    %142 = vector.extract_strided_slice %16 {offsets = [0, 21], sizes = [32, 1], strides = [1, 1]} : vector<32x32xf32> to vector<32x1xf32>
    %143 = vector.extract_strided_slice %14 {offsets = [21, 0], sizes = [1, 256], strides = [1, 1]} : vector<32x256xf32> to vector<1x256xf32>
    %144 = vector.broadcast %142 : vector<32x1xf32> to vector<32x256xf32>
    %145 = vector.broadcast %143 : vector<1x256xf32> to vector<32x256xf32>
    %146 = arith.mulf %144, %145 : vector<32x256xf32>
    %147 = arith.addf %141, %146 : vector<32x256xf32>
    %148 = vector.extract_strided_slice %16 {offsets = [0, 22], sizes = [32, 1], strides = [1, 1]} : vector<32x32xf32> to vector<32x1xf32>
    %149 = vector.extract_strided_slice %14 {offsets = [22, 0], sizes = [1, 256], strides = [1, 1]} : vector<32x256xf32> to vector<1x256xf32>
    %150 = vector.broadcast %148 : vector<32x1xf32> to vector<32x256xf32>
    %151 = vector.broadcast %149 : vector<1x256xf32> to vector<32x256xf32>
    %152 = arith.mulf %150, %151 : vector<32x256xf32>
    %153 = arith.addf %147, %152 : vector<32x256xf32>
    %154 = vector.extract_strided_slice %16 {offsets = [0, 23], sizes = [32, 1], strides = [1, 1]} : vector<32x32xf32> to vector<32x1xf32>
    %155 = vector.extract_strided_slice %14 {offsets = [23, 0], sizes = [1, 256], strides = [1, 1]} : vector<32x256xf32> to vector<1x256xf32>
    %156 = vector.broadcast %154 : vector<32x1xf32> to vector<32x256xf32>
    %157 = vector.broadcast %155 : vector<1x256xf32> to vector<32x256xf32>
    %158 = arith.mulf %156, %157 : vector<32x256xf32>
    %159 = arith.addf %153, %158 : vector<32x256xf32>
    %160 = vector.extract_strided_slice %16 {offsets = [0, 24], sizes = [32, 1], strides = [1, 1]} : vector<32x32xf32> to vector<32x1xf32>
    %161 = vector.extract_strided_slice %14 {offsets = [24, 0], sizes = [1, 256], strides = [1, 1]} : vector<32x256xf32> to vector<1x256xf32>
    %162 = vector.broadcast %160 : vector<32x1xf32> to vector<32x256xf32>
    %163 = vector.broadcast %161 : vector<1x256xf32> to vector<32x256xf32>
    %164 = arith.mulf %162, %163 : vector<32x256xf32>
    %165 = arith.addf %159, %164 : vector<32x256xf32>
    %166 = vector.extract_strided_slice %16 {offsets = [0, 25], sizes = [32, 1], strides = [1, 1]} : vector<32x32xf32> to vector<32x1xf32>
    %167 = vector.extract_strided_slice %14 {offsets = [25, 0], sizes = [1, 256], strides = [1, 1]} : vector<32x256xf32> to vector<1x256xf32>
    %168 = vector.broadcast %166 : vector<32x1xf32> to vector<32x256xf32>
    %169 = vector.broadcast %167 : vector<1x256xf32> to vector<32x256xf32>
    %170 = arith.mulf %168, %169 : vector<32x256xf32>
    %171 = arith.addf %165, %170 : vector<32x256xf32>
    %172 = vector.extract_strided_slice %16 {offsets = [0, 26], sizes = [32, 1], strides = [1, 1]} : vector<32x32xf32> to vector<32x1xf32>
    %173 = vector.extract_strided_slice %14 {offsets = [26, 0], sizes = [1, 256], strides = [1, 1]} : vector<32x256xf32> to vector<1x256xf32>
    %174 = vector.broadcast %172 : vector<32x1xf32> to vector<32x256xf32>
    %175 = vector.broadcast %173 : vector<1x256xf32> to vector<32x256xf32>
    %176 = arith.mulf %174, %175 : vector<32x256xf32>
    %177 = arith.addf %171, %176 : vector<32x256xf32>
    %178 = vector.extract_strided_slice %16 {offsets = [0, 27], sizes = [32, 1], strides = [1, 1]} : vector<32x32xf32> to vector<32x1xf32>
    %179 = vector.extract_strided_slice %14 {offsets = [27, 0], sizes = [1, 256], strides = [1, 1]} : vector<32x256xf32> to vector<1x256xf32>
    %180 = vector.broadcast %178 : vector<32x1xf32> to vector<32x256xf32>
    %181 = vector.broadcast %179 : vector<1x256xf32> to vector<32x256xf32>
    %182 = arith.mulf %180, %181 : vector<32x256xf32>
    %183 = arith.addf %177, %182 : vector<32x256xf32>
    %184 = vector.extract_strided_slice %16 {offsets = [0, 28], sizes = [32, 1], strides = [1, 1]} : vector<32x32xf32> to vector<32x1xf32>
    %185 = vector.extract_strided_slice %14 {offsets = [28, 0], sizes = [1, 256], strides = [1, 1]} : vector<32x256xf32> to vector<1x256xf32>
    %186 = vector.broadcast %184 : vector<32x1xf32> to vector<32x256xf32>
    %187 = vector.broadcast %185 : vector<1x256xf32> to vector<32x256xf32>
    %188 = arith.mulf %186, %187 : vector<32x256xf32>
    %189 = arith.addf %183, %188 : vector<32x256xf32>
    %190 = vector.extract_strided_slice %16 {offsets = [0, 29], sizes = [32, 1], strides = [1, 1]} : vector<32x32xf32> to vector<32x1xf32>
    %191 = vector.extract_strided_slice %14 {offsets = [29, 0], sizes = [1, 256], strides = [1, 1]} : vector<32x256xf32> to vector<1x256xf32>
    %192 = vector.broadcast %190 : vector<32x1xf32> to vector<32x256xf32>
    %193 = vector.broadcast %191 : vector<1x256xf32> to vector<32x256xf32>
    %194 = arith.mulf %192, %193 : vector<32x256xf32>
    %195 = arith.addf %189, %194 : vector<32x256xf32>
    %196 = vector.extract_strided_slice %16 {offsets = [0, 30], sizes = [32, 1], strides = [1, 1]} : vector<32x32xf32> to vector<32x1xf32>
    %197 = vector.extract_strided_slice %14 {offsets = [30, 0], sizes = [1, 256], strides = [1, 1]} : vector<32x256xf32> to vector<1x256xf32>
    %198 = vector.broadcast %196 : vector<32x1xf32> to vector<32x256xf32>
    %199 = vector.broadcast %197 : vector<1x256xf32> to vector<32x256xf32>
    %200 = arith.mulf %198, %199 : vector<32x256xf32>
    %201 = arith.addf %195, %200 : vector<32x256xf32>
    %202 = vector.extract_strided_slice %16 {offsets = [0, 31], sizes = [32, 1], strides = [1, 1]} : vector<32x32xf32> to vector<32x1xf32>
    %203 = vector.extract_strided_slice %14 {offsets = [31, 0], sizes = [1, 256], strides = [1, 1]} : vector<32x256xf32> to vector<1x256xf32>
    %204 = vector.broadcast %202 : vector<32x1xf32> to vector<32x256xf32>
    %205 = vector.broadcast %203 : vector<1x256xf32> to vector<32x256xf32>
    %206 = arith.mulf %204, %205 : vector<32x256xf32>
    %207 = arith.addf %201, %206 : vector<32x256xf32>
    %cst_6 = arith.constant 0.000000e+00 : f32
    %208 = vector.broadcast %cst_6 : f32 to vector<32x256xf32>
    %209 = arith.maximumf %207, %208 : vector<32x256xf32>
    %c1 = arith.constant 1 : index
    %c0_7 = arith.constant 0 : index
    %c0_8 = arith.constant 0 : index
    %210 = vector.load %arg3[%c1, %c0_7, %c0_8] : memref<2x32x32xf32, #tpu.memory_space<vmem>>, vector<1x32x32xf32>
    %211 = vector.shape_cast %210 : vector<1x32x32xf32> to vector<32x32xf32>
    %212 = vector.extract_strided_slice %211 {offsets = [0, 0], sizes = [32, 1], strides = [1, 1]} : vector<32x32xf32> to vector<32x1xf32>
    %213 = vector.extract_strided_slice %209 {offsets = [0, 0], sizes = [1, 256], strides = [1, 1]} : vector<32x256xf32> to vector<1x256xf32>
    %214 = vector.broadcast %212 : vector<32x1xf32> to vector<32x256xf32>
    %215 = vector.broadcast %213 : vector<1x256xf32> to vector<32x256xf32>
    %216 = arith.mulf %214, %215 : vector<32x256xf32>
    %217 = vector.extract_strided_slice %211 {offsets = [0, 1], sizes = [32, 1], strides = [1, 1]} : vector<32x32xf32> to vector<32x1xf32>
    %218 = vector.extract_strided_slice %209 {offsets = [1, 0], sizes = [1, 256], strides = [1, 1]} : vector<32x256xf32> to vector<1x256xf32>
    %219 = vector.broadcast %217 : vector<32x1xf32> to vector<32x256xf32>
    %220 = vector.broadcast %218 : vector<1x256xf32> to vector<32x256xf32>
    %221 = arith.mulf %219, %220 : vector<32x256xf32>
    %222 = arith.addf %216, %221 : vector<32x256xf32>
    %223 = vector.extract_strided_slice %211 {offsets = [0, 2], sizes = [32, 1], strides = [1, 1]} : vector<32x32xf32> to vector<32x1xf32>
    %224 = vector.extract_strided_slice %209 {offsets = [2, 0], sizes = [1, 256], strides = [1, 1]} : vector<32x256xf32> to vector<1x256xf32>
    %225 = vector.broadcast %223 : vector<32x1xf32> to vector<32x256xf32>
    %226 = vector.broadcast %224 : vector<1x256xf32> to vector<32x256xf32>
    %227 = arith.mulf %225, %226 : vector<32x256xf32>
    %228 = arith.addf %222, %227 : vector<32x256xf32>
    %229 = vector.extract_strided_slice %211 {offsets = [0, 3], sizes = [32, 1], strides = [1, 1]} : vector<32x32xf32> to vector<32x1xf32>
    %230 = vector.extract_strided_slice %209 {offsets = [3, 0], sizes = [1, 256], strides = [1, 1]} : vector<32x256xf32> to vector<1x256xf32>
    %231 = vector.broadcast %229 : vector<32x1xf32> to vector<32x256xf32>
    %232 = vector.broadcast %230 : vector<1x256xf32> to vector<32x256xf32>
    %233 = arith.mulf %231, %232 : vector<32x256xf32>
    %234 = arith.addf %228, %233 : vector<32x256xf32>
    %235 = vector.extract_strided_slice %211 {offsets = [0, 4], sizes = [32, 1], strides = [1, 1]} : vector<32x32xf32> to vector<32x1xf32>
    %236 = vector.extract_strided_slice %209 {offsets = [4, 0], sizes = [1, 256], strides = [1, 1]} : vector<32x256xf32> to vector<1x256xf32>
    %237 = vector.broadcast %235 : vector<32x1xf32> to vector<32x256xf32>
    %238 = vector.broadcast %236 : vector<1x256xf32> to vector<32x256xf32>
    %239 = arith.mulf %237, %238 : vector<32x256xf32>
    %240 = arith.addf %234, %239 : vector<32x256xf32>
    %241 = vector.extract_strided_slice %211 {offsets = [0, 5], sizes = [32, 1], strides = [1, 1]} : vector<32x32xf32> to vector<32x1xf32>
    %242 = vector.extract_strided_slice %209 {offsets = [5, 0], sizes = [1, 256], strides = [1, 1]} : vector<32x256xf32> to vector<1x256xf32>
    %243 = vector.broadcast %241 : vector<32x1xf32> to vector<32x256xf32>
    %244 = vector.broadcast %242 : vector<1x256xf32> to vector<32x256xf32>
    %245 = arith.mulf %243, %244 : vector<32x256xf32>
    %246 = arith.addf %240, %245 : vector<32x256xf32>
    %247 = vector.extract_strided_slice %211 {offsets = [0, 6], sizes = [32, 1], strides = [1, 1]} : vector<32x32xf32> to vector<32x1xf32>
    %248 = vector.extract_strided_slice %209 {offsets = [6, 0], sizes = [1, 256], strides = [1, 1]} : vector<32x256xf32> to vector<1x256xf32>
    %249 = vector.broadcast %247 : vector<32x1xf32> to vector<32x256xf32>
    %250 = vector.broadcast %248 : vector<1x256xf32> to vector<32x256xf32>
    %251 = arith.mulf %249, %250 : vector<32x256xf32>
    %252 = arith.addf %246, %251 : vector<32x256xf32>
    %253 = vector.extract_strided_slice %211 {offsets = [0, 7], sizes = [32, 1], strides = [1, 1]} : vector<32x32xf32> to vector<32x1xf32>
    %254 = vector.extract_strided_slice %209 {offsets = [7, 0], sizes = [1, 256], strides = [1, 1]} : vector<32x256xf32> to vector<1x256xf32>
    %255 = vector.broadcast %253 : vector<32x1xf32> to vector<32x256xf32>
    %256 = vector.broadcast %254 : vector<1x256xf32> to vector<32x256xf32>
    %257 = arith.mulf %255, %256 : vector<32x256xf32>
    %258 = arith.addf %252, %257 : vector<32x256xf32>
    %259 = vector.extract_strided_slice %211 {offsets = [0, 8], sizes = [32, 1], strides = [1, 1]} : vector<32x32xf32> to vector<32x1xf32>
    %260 = vector.extract_strided_slice %209 {offsets = [8, 0], sizes = [1, 256], strides = [1, 1]} : vector<32x256xf32> to vector<1x256xf32>
    %261 = vector.broadcast %259 : vector<32x1xf32> to vector<32x256xf32>
    %262 = vector.broadcast %260 : vector<1x256xf32> to vector<32x256xf32>
    %263 = arith.mulf %261, %262 : vector<32x256xf32>
    %264 = arith.addf %258, %263 : vector<32x256xf32>
    %265 = vector.extract_strided_slice %211 {offsets = [0, 9], sizes = [32, 1], strides = [1, 1]} : vector<32x32xf32> to vector<32x1xf32>
    %266 = vector.extract_strided_slice %209 {offsets = [9, 0], sizes = [1, 256], strides = [1, 1]} : vector<32x256xf32> to vector<1x256xf32>
    %267 = vector.broadcast %265 : vector<32x1xf32> to vector<32x256xf32>
    %268 = vector.broadcast %266 : vector<1x256xf32> to vector<32x256xf32>
    %269 = arith.mulf %267, %268 : vector<32x256xf32>
    %270 = arith.addf %264, %269 : vector<32x256xf32>
    %271 = vector.extract_strided_slice %211 {offsets = [0, 10], sizes = [32, 1], strides = [1, 1]} : vector<32x32xf32> to vector<32x1xf32>
    %272 = vector.extract_strided_slice %209 {offsets = [10, 0], sizes = [1, 256], strides = [1, 1]} : vector<32x256xf32> to vector<1x256xf32>
    %273 = vector.broadcast %271 : vector<32x1xf32> to vector<32x256xf32>
    %274 = vector.broadcast %272 : vector<1x256xf32> to vector<32x256xf32>
    %275 = arith.mulf %273, %274 : vector<32x256xf32>
    %276 = arith.addf %270, %275 : vector<32x256xf32>
    %277 = vector.extract_strided_slice %211 {offsets = [0, 11], sizes = [32, 1], strides = [1, 1]} : vector<32x32xf32> to vector<32x1xf32>
    %278 = vector.extract_strided_slice %209 {offsets = [11, 0], sizes = [1, 256], strides = [1, 1]} : vector<32x256xf32> to vector<1x256xf32>
    %279 = vector.broadcast %277 : vector<32x1xf32> to vector<32x256xf32>
    %280 = vector.broadcast %278 : vector<1x256xf32> to vector<32x256xf32>
    %281 = arith.mulf %279, %280 : vector<32x256xf32>
    %282 = arith.addf %276, %281 : vector<32x256xf32>
    %283 = vector.extract_strided_slice %211 {offsets = [0, 12], sizes = [32, 1], strides = [1, 1]} : vector<32x32xf32> to vector<32x1xf32>
    %284 = vector.extract_strided_slice %209 {offsets = [12, 0], sizes = [1, 256], strides = [1, 1]} : vector<32x256xf32> to vector<1x256xf32>
    %285 = vector.broadcast %283 : vector<32x1xf32> to vector<32x256xf32>
    %286 = vector.broadcast %284 : vector<1x256xf32> to vector<32x256xf32>
    %287 = arith.mulf %285, %286 : vector<32x256xf32>
    %288 = arith.addf %282, %287 : vector<32x256xf32>
    %289 = vector.extract_strided_slice %211 {offsets = [0, 13], sizes = [32, 1], strides = [1, 1]} : vector<32x32xf32> to vector<32x1xf32>
    %290 = vector.extract_strided_slice %209 {offsets = [13, 0], sizes = [1, 256], strides = [1, 1]} : vector<32x256xf32> to vector<1x256xf32>
    %291 = vector.broadcast %289 : vector<32x1xf32> to vector<32x256xf32>
    %292 = vector.broadcast %290 : vector<1x256xf32> to vector<32x256xf32>
    %293 = arith.mulf %291, %292 : vector<32x256xf32>
    %294 = arith.addf %288, %293 : vector<32x256xf32>
    %295 = vector.extract_strided_slice %211 {offsets = [0, 14], sizes = [32, 1], strides = [1, 1]} : vector<32x32xf32> to vector<32x1xf32>
    %296 = vector.extract_strided_slice %209 {offsets = [14, 0], sizes = [1, 256], strides = [1, 1]} : vector<32x256xf32> to vector<1x256xf32>
    %297 = vector.broadcast %295 : vector<32x1xf32> to vector<32x256xf32>
    %298 = vector.broadcast %296 : vector<1x256xf32> to vector<32x256xf32>
    %299 = arith.mulf %297, %298 : vector<32x256xf32>
    %300 = arith.addf %294, %299 : vector<32x256xf32>
    %301 = vector.extract_strided_slice %211 {offsets = [0, 15], sizes = [32, 1], strides = [1, 1]} : vector<32x32xf32> to vector<32x1xf32>
    %302 = vector.extract_strided_slice %209 {offsets = [15, 0], sizes = [1, 256], strides = [1, 1]} : vector<32x256xf32> to vector<1x256xf32>
    %303 = vector.broadcast %301 : vector<32x1xf32> to vector<32x256xf32>
    %304 = vector.broadcast %302 : vector<1x256xf32> to vector<32x256xf32>
    %305 = arith.mulf %303, %304 : vector<32x256xf32>
    %306 = arith.addf %300, %305 : vector<32x256xf32>
    %307 = vector.extract_strided_slice %211 {offsets = [0, 16], sizes = [32, 1], strides = [1, 1]} : vector<32x32xf32> to vector<32x1xf32>
    %308 = vector.extract_strided_slice %209 {offsets = [16, 0], sizes = [1, 256], strides = [1, 1]} : vector<32x256xf32> to vector<1x256xf32>
    %309 = vector.broadcast %307 : vector<32x1xf32> to vector<32x256xf32>
    %310 = vector.broadcast %308 : vector<1x256xf32> to vector<32x256xf32>
    %311 = arith.mulf %309, %310 : vector<32x256xf32>
    %312 = arith.addf %306, %311 : vector<32x256xf32>
    %313 = vector.extract_strided_slice %211 {offsets = [0, 17], sizes = [32, 1], strides = [1, 1]} : vector<32x32xf32> to vector<32x1xf32>
    %314 = vector.extract_strided_slice %209 {offsets = [17, 0], sizes = [1, 256], strides = [1, 1]} : vector<32x256xf32> to vector<1x256xf32>
    %315 = vector.broadcast %313 : vector<32x1xf32> to vector<32x256xf32>
    %316 = vector.broadcast %314 : vector<1x256xf32> to vector<32x256xf32>
    %317 = arith.mulf %315, %316 : vector<32x256xf32>
    %318 = arith.addf %312, %317 : vector<32x256xf32>
    %319 = vector.extract_strided_slice %211 {offsets = [0, 18], sizes = [32, 1], strides = [1, 1]} : vector<32x32xf32> to vector<32x1xf32>
    %320 = vector.extract_strided_slice %209 {offsets = [18, 0], sizes = [1, 256], strides = [1, 1]} : vector<32x256xf32> to vector<1x256xf32>
    %321 = vector.broadcast %319 : vector<32x1xf32> to vector<32x256xf32>
    %322 = vector.broadcast %320 : vector<1x256xf32> to vector<32x256xf32>
    %323 = arith.mulf %321, %322 : vector<32x256xf32>
    %324 = arith.addf %318, %323 : vector<32x256xf32>
    %325 = vector.extract_strided_slice %211 {offsets = [0, 19], sizes = [32, 1], strides = [1, 1]} : vector<32x32xf32> to vector<32x1xf32>
    %326 = vector.extract_strided_slice %209 {offsets = [19, 0], sizes = [1, 256], strides = [1, 1]} : vector<32x256xf32> to vector<1x256xf32>
    %327 = vector.broadcast %325 : vector<32x1xf32> to vector<32x256xf32>
    %328 = vector.broadcast %326 : vector<1x256xf32> to vector<32x256xf32>
    %329 = arith.mulf %327, %328 : vector<32x256xf32>
    %330 = arith.addf %324, %329 : vector<32x256xf32>
    %331 = vector.extract_strided_slice %211 {offsets = [0, 20], sizes = [32, 1], strides = [1, 1]} : vector<32x32xf32> to vector<32x1xf32>
    %332 = vector.extract_strided_slice %209 {offsets = [20, 0], sizes = [1, 256], strides = [1, 1]} : vector<32x256xf32> to vector<1x256xf32>
    %333 = vector.broadcast %331 : vector<32x1xf32> to vector<32x256xf32>
    %334 = vector.broadcast %332 : vector<1x256xf32> to vector<32x256xf32>
    %335 = arith.mulf %333, %334 : vector<32x256xf32>
    %336 = arith.addf %330, %335 : vector<32x256xf32>
    %337 = vector.extract_strided_slice %211 {offsets = [0, 21], sizes = [32, 1], strides = [1, 1]} : vector<32x32xf32> to vector<32x1xf32>
    %338 = vector.extract_strided_slice %209 {offsets = [21, 0], sizes = [1, 256], strides = [1, 1]} : vector<32x256xf32> to vector<1x256xf32>
    %339 = vector.broadcast %337 : vector<32x1xf32> to vector<32x256xf32>
    %340 = vector.broadcast %338 : vector<1x256xf32> to vector<32x256xf32>
    %341 = arith.mulf %339, %340 : vector<32x256xf32>
    %342 = arith.addf %336, %341 : vector<32x256xf32>
    %343 = vector.extract_strided_slice %211 {offsets = [0, 22], sizes = [32, 1], strides = [1, 1]} : vector<32x32xf32> to vector<32x1xf32>
    %344 = vector.extract_strided_slice %209 {offsets = [22, 0], sizes = [1, 256], strides = [1, 1]} : vector<32x256xf32> to vector<1x256xf32>
    %345 = vector.broadcast %343 : vector<32x1xf32> to vector<32x256xf32>
    %346 = vector.broadcast %344 : vector<1x256xf32> to vector<32x256xf32>
    %347 = arith.mulf %345, %346 : vector<32x256xf32>
    %348 = arith.addf %342, %347 : vector<32x256xf32>
    %349 = vector.extract_strided_slice %211 {offsets = [0, 23], sizes = [32, 1], strides = [1, 1]} : vector<32x32xf32> to vector<32x1xf32>
    %350 = vector.extract_strided_slice %209 {offsets = [23, 0], sizes = [1, 256], strides = [1, 1]} : vector<32x256xf32> to vector<1x256xf32>
    %351 = vector.broadcast %349 : vector<32x1xf32> to vector<32x256xf32>
    %352 = vector.broadcast %350 : vector<1x256xf32> to vector<32x256xf32>
    %353 = arith.mulf %351, %352 : vector<32x256xf32>
    %354 = arith.addf %348, %353 : vector<32x256xf32>
    %355 = vector.extract_strided_slice %211 {offsets = [0, 24], sizes = [32, 1], strides = [1, 1]} : vector<32x32xf32> to vector<32x1xf32>
    %356 = vector.extract_strided_slice %209 {offsets = [24, 0], sizes = [1, 256], strides = [1, 1]} : vector<32x256xf32> to vector<1x256xf32>
    %357 = vector.broadcast %355 : vector<32x1xf32> to vector<32x256xf32>
    %358 = vector.broadcast %356 : vector<1x256xf32> to vector<32x256xf32>
    %359 = arith.mulf %357, %358 : vector<32x256xf32>
    %360 = arith.addf %354, %359 : vector<32x256xf32>
    %361 = vector.extract_strided_slice %211 {offsets = [0, 25], sizes = [32, 1], strides = [1, 1]} : vector<32x32xf32> to vector<32x1xf32>
    %362 = vector.extract_strided_slice %209 {offsets = [25, 0], sizes = [1, 256], strides = [1, 1]} : vector<32x256xf32> to vector<1x256xf32>
    %363 = vector.broadcast %361 : vector<32x1xf32> to vector<32x256xf32>
    %364 = vector.broadcast %362 : vector<1x256xf32> to vector<32x256xf32>
    %365 = arith.mulf %363, %364 : vector<32x256xf32>
    %366 = arith.addf %360, %365 : vector<32x256xf32>
    %367 = vector.extract_strided_slice %211 {offsets = [0, 26], sizes = [32, 1], strides = [1, 1]} : vector<32x32xf32> to vector<32x1xf32>
    %368 = vector.extract_strided_slice %209 {offsets = [26, 0], sizes = [1, 256], strides = [1, 1]} : vector<32x256xf32> to vector<1x256xf32>
    %369 = vector.broadcast %367 : vector<32x1xf32> to vector<32x256xf32>
    %370 = vector.broadcast %368 : vector<1x256xf32> to vector<32x256xf32>
    %371 = arith.mulf %369, %370 : vector<32x256xf32>
    %372 = arith.addf %366, %371 : vector<32x256xf32>
    %373 = vector.extract_strided_slice %211 {offsets = [0, 27], sizes = [32, 1], strides = [1, 1]} : vector<32x32xf32> to vector<32x1xf32>
    %374 = vector.extract_strided_slice %209 {offsets = [27, 0], sizes = [1, 256], strides = [1, 1]} : vector<32x256xf32> to vector<1x256xf32>
    %375 = vector.broadcast %373 : vector<32x1xf32> to vector<32x256xf32>
    %376 = vector.broadcast %374 : vector<1x256xf32> to vector<32x256xf32>
    %377 = arith.mulf %375, %376 : vector<32x256xf32>
    %378 = arith.addf %372, %377 : vector<32x256xf32>
    %379 = vector.extract_strided_slice %211 {offsets = [0, 28], sizes = [32, 1], strides = [1, 1]} : vector<32x32xf32> to vector<32x1xf32>
    %380 = vector.extract_strided_slice %209 {offsets = [28, 0], sizes = [1, 256], strides = [1, 1]} : vector<32x256xf32> to vector<1x256xf32>
    %381 = vector.broadcast %379 : vector<32x1xf32> to vector<32x256xf32>
    %382 = vector.broadcast %380 : vector<1x256xf32> to vector<32x256xf32>
    %383 = arith.mulf %381, %382 : vector<32x256xf32>
    %384 = arith.addf %378, %383 : vector<32x256xf32>
    %385 = vector.extract_strided_slice %211 {offsets = [0, 29], sizes = [32, 1], strides = [1, 1]} : vector<32x32xf32> to vector<32x1xf32>
    %386 = vector.extract_strided_slice %209 {offsets = [29, 0], sizes = [1, 256], strides = [1, 1]} : vector<32x256xf32> to vector<1x256xf32>
    %387 = vector.broadcast %385 : vector<32x1xf32> to vector<32x256xf32>
    %388 = vector.broadcast %386 : vector<1x256xf32> to vector<32x256xf32>
    %389 = arith.mulf %387, %388 : vector<32x256xf32>
    %390 = arith.addf %384, %389 : vector<32x256xf32>
    %391 = vector.extract_strided_slice %211 {offsets = [0, 30], sizes = [32, 1], strides = [1, 1]} : vector<32x32xf32> to vector<32x1xf32>
    %392 = vector.extract_strided_slice %209 {offsets = [30, 0], sizes = [1, 256], strides = [1, 1]} : vector<32x256xf32> to vector<1x256xf32>
    %393 = vector.broadcast %391 : vector<32x1xf32> to vector<32x256xf32>
    %394 = vector.broadcast %392 : vector<1x256xf32> to vector<32x256xf32>
    %395 = arith.mulf %393, %394 : vector<32x256xf32>
    %396 = arith.addf %390, %395 : vector<32x256xf32>
    %397 = vector.extract_strided_slice %211 {offsets = [0, 31], sizes = [32, 1], strides = [1, 1]} : vector<32x32xf32> to vector<32x1xf32>
    %398 = vector.extract_strided_slice %209 {offsets = [31, 0], sizes = [1, 256], strides = [1, 1]} : vector<32x256xf32> to vector<1x256xf32>
    %399 = vector.broadcast %397 : vector<32x1xf32> to vector<32x256xf32>
    %400 = vector.broadcast %398 : vector<1x256xf32> to vector<32x256xf32>
    %401 = arith.mulf %399, %400 : vector<32x256xf32>
    %402 = arith.addf %396, %401 : vector<32x256xf32>
    %cst_9 = arith.constant 0.000000e+00 : f32
    %403 = vector.broadcast %cst_9 : f32 to vector<32x256xf32>
    %404 = arith.maximumf %402, %403 : vector<32x256xf32>
    %c0_10 = arith.constant 0 : index
    %c0_11 = arith.constant 0 : index
    %405 = vector.load %arg4[%c0_10, %c0_11] : memref<2x32xf32, #tpu.memory_space<vmem>>, vector<2x32xf32>
    %406 = vector.extract_strided_slice %405 {offsets = [0, 0], sizes = [2, 1], strides = [1, 1]} : vector<2x32xf32> to vector<2x1xf32>
    %407 = vector.extract_strided_slice %404 {offsets = [0, 0], sizes = [1, 256], strides = [1, 1]} : vector<32x256xf32> to vector<1x256xf32>
    %408 = vector.broadcast %406 : vector<2x1xf32> to vector<2x256xf32>
    %409 = vector.broadcast %407 : vector<1x256xf32> to vector<2x256xf32>
    %410 = arith.mulf %408, %409 : vector<2x256xf32>
    %411 = vector.extract_strided_slice %405 {offsets = [0, 1], sizes = [2, 1], strides = [1, 1]} : vector<2x32xf32> to vector<2x1xf32>
    %412 = vector.extract_strided_slice %404 {offsets = [1, 0], sizes = [1, 256], strides = [1, 1]} : vector<32x256xf32> to vector<1x256xf32>
    %413 = vector.broadcast %411 : vector<2x1xf32> to vector<2x256xf32>
    %414 = vector.broadcast %412 : vector<1x256xf32> to vector<2x256xf32>
    %415 = arith.mulf %413, %414 : vector<2x256xf32>
    %416 = arith.addf %410, %415 : vector<2x256xf32>
    %417 = vector.extract_strided_slice %405 {offsets = [0, 2], sizes = [2, 1], strides = [1, 1]} : vector<2x32xf32> to vector<2x1xf32>
    %418 = vector.extract_strided_slice %404 {offsets = [2, 0], sizes = [1, 256], strides = [1, 1]} : vector<32x256xf32> to vector<1x256xf32>
    %419 = vector.broadcast %417 : vector<2x1xf32> to vector<2x256xf32>
    %420 = vector.broadcast %418 : vector<1x256xf32> to vector<2x256xf32>
    %421 = arith.mulf %419, %420 : vector<2x256xf32>
    %422 = arith.addf %416, %421 : vector<2x256xf32>
    %423 = vector.extract_strided_slice %405 {offsets = [0, 3], sizes = [2, 1], strides = [1, 1]} : vector<2x32xf32> to vector<2x1xf32>
    %424 = vector.extract_strided_slice %404 {offsets = [3, 0], sizes = [1, 256], strides = [1, 1]} : vector<32x256xf32> to vector<1x256xf32>
    %425 = vector.broadcast %423 : vector<2x1xf32> to vector<2x256xf32>
    %426 = vector.broadcast %424 : vector<1x256xf32> to vector<2x256xf32>
    %427 = arith.mulf %425, %426 : vector<2x256xf32>
    %428 = arith.addf %422, %427 : vector<2x256xf32>
    %429 = vector.extract_strided_slice %405 {offsets = [0, 4], sizes = [2, 1], strides = [1, 1]} : vector<2x32xf32> to vector<2x1xf32>
    %430 = vector.extract_strided_slice %404 {offsets = [4, 0], sizes = [1, 256], strides = [1, 1]} : vector<32x256xf32> to vector<1x256xf32>
    %431 = vector.broadcast %429 : vector<2x1xf32> to vector<2x256xf32>
    %432 = vector.broadcast %430 : vector<1x256xf32> to vector<2x256xf32>
    %433 = arith.mulf %431, %432 : vector<2x256xf32>
    %434 = arith.addf %428, %433 : vector<2x256xf32>
    %435 = vector.extract_strided_slice %405 {offsets = [0, 5], sizes = [2, 1], strides = [1, 1]} : vector<2x32xf32> to vector<2x1xf32>
    %436 = vector.extract_strided_slice %404 {offsets = [5, 0], sizes = [1, 256], strides = [1, 1]} : vector<32x256xf32> to vector<1x256xf32>
    %437 = vector.broadcast %435 : vector<2x1xf32> to vector<2x256xf32>
    %438 = vector.broadcast %436 : vector<1x256xf32> to vector<2x256xf32>
    %439 = arith.mulf %437, %438 : vector<2x256xf32>
    %440 = arith.addf %434, %439 : vector<2x256xf32>
    %441 = vector.extract_strided_slice %405 {offsets = [0, 6], sizes = [2, 1], strides = [1, 1]} : vector<2x32xf32> to vector<2x1xf32>
    %442 = vector.extract_strided_slice %404 {offsets = [6, 0], sizes = [1, 256], strides = [1, 1]} : vector<32x256xf32> to vector<1x256xf32>
    %443 = vector.broadcast %441 : vector<2x1xf32> to vector<2x256xf32>
    %444 = vector.broadcast %442 : vector<1x256xf32> to vector<2x256xf32>
    %445 = arith.mulf %443, %444 : vector<2x256xf32>
    %446 = arith.addf %440, %445 : vector<2x256xf32>
    %447 = vector.extract_strided_slice %405 {offsets = [0, 7], sizes = [2, 1], strides = [1, 1]} : vector<2x32xf32> to vector<2x1xf32>
    %448 = vector.extract_strided_slice %404 {offsets = [7, 0], sizes = [1, 256], strides = [1, 1]} : vector<32x256xf32> to vector<1x256xf32>
    %449 = vector.broadcast %447 : vector<2x1xf32> to vector<2x256xf32>
    %450 = vector.broadcast %448 : vector<1x256xf32> to vector<2x256xf32>
    %451 = arith.mulf %449, %450 : vector<2x256xf32>
    %452 = arith.addf %446, %451 : vector<2x256xf32>
    %453 = vector.extract_strided_slice %405 {offsets = [0, 8], sizes = [2, 1], strides = [1, 1]} : vector<2x32xf32> to vector<2x1xf32>
    %454 = vector.extract_strided_slice %404 {offsets = [8, 0], sizes = [1, 256], strides = [1, 1]} : vector<32x256xf32> to vector<1x256xf32>
    %455 = vector.broadcast %453 : vector<2x1xf32> to vector<2x256xf32>
    %456 = vector.broadcast %454 : vector<1x256xf32> to vector<2x256xf32>
    %457 = arith.mulf %455, %456 : vector<2x256xf32>
    %458 = arith.addf %452, %457 : vector<2x256xf32>
    %459 = vector.extract_strided_slice %405 {offsets = [0, 9], sizes = [2, 1], strides = [1, 1]} : vector<2x32xf32> to vector<2x1xf32>
    %460 = vector.extract_strided_slice %404 {offsets = [9, 0], sizes = [1, 256], strides = [1, 1]} : vector<32x256xf32> to vector<1x256xf32>
    %461 = vector.broadcast %459 : vector<2x1xf32> to vector<2x256xf32>
    %462 = vector.broadcast %460 : vector<1x256xf32> to vector<2x256xf32>
    %463 = arith.mulf %461, %462 : vector<2x256xf32>
    %464 = arith.addf %458, %463 : vector<2x256xf32>
    %465 = vector.extract_strided_slice %405 {offsets = [0, 10], sizes = [2, 1], strides = [1, 1]} : vector<2x32xf32> to vector<2x1xf32>
    %466 = vector.extract_strided_slice %404 {offsets = [10, 0], sizes = [1, 256], strides = [1, 1]} : vector<32x256xf32> to vector<1x256xf32>
    %467 = vector.broadcast %465 : vector<2x1xf32> to vector<2x256xf32>
    %468 = vector.broadcast %466 : vector<1x256xf32> to vector<2x256xf32>
    %469 = arith.mulf %467, %468 : vector<2x256xf32>
    %470 = arith.addf %464, %469 : vector<2x256xf32>
    %471 = vector.extract_strided_slice %405 {offsets = [0, 11], sizes = [2, 1], strides = [1, 1]} : vector<2x32xf32> to vector<2x1xf32>
    %472 = vector.extract_strided_slice %404 {offsets = [11, 0], sizes = [1, 256], strides = [1, 1]} : vector<32x256xf32> to vector<1x256xf32>
    %473 = vector.broadcast %471 : vector<2x1xf32> to vector<2x256xf32>
    %474 = vector.broadcast %472 : vector<1x256xf32> to vector<2x256xf32>
    %475 = arith.mulf %473, %474 : vector<2x256xf32>
    %476 = arith.addf %470, %475 : vector<2x256xf32>
    %477 = vector.extract_strided_slice %405 {offsets = [0, 12], sizes = [2, 1], strides = [1, 1]} : vector<2x32xf32> to vector<2x1xf32>
    %478 = vector.extract_strided_slice %404 {offsets = [12, 0], sizes = [1, 256], strides = [1, 1]} : vector<32x256xf32> to vector<1x256xf32>
    %479 = vector.broadcast %477 : vector<2x1xf32> to vector<2x256xf32>
    %480 = vector.broadcast %478 : vector<1x256xf32> to vector<2x256xf32>
    %481 = arith.mulf %479, %480 : vector<2x256xf32>
    %482 = arith.addf %476, %481 : vector<2x256xf32>
    %483 = vector.extract_strided_slice %405 {offsets = [0, 13], sizes = [2, 1], strides = [1, 1]} : vector<2x32xf32> to vector<2x1xf32>
    %484 = vector.extract_strided_slice %404 {offsets = [13, 0], sizes = [1, 256], strides = [1, 1]} : vector<32x256xf32> to vector<1x256xf32>
    %485 = vector.broadcast %483 : vector<2x1xf32> to vector<2x256xf32>
    %486 = vector.broadcast %484 : vector<1x256xf32> to vector<2x256xf32>
    %487 = arith.mulf %485, %486 : vector<2x256xf32>
    %488 = arith.addf %482, %487 : vector<2x256xf32>
    %489 = vector.extract_strided_slice %405 {offsets = [0, 14], sizes = [2, 1], strides = [1, 1]} : vector<2x32xf32> to vector<2x1xf32>
    %490 = vector.extract_strided_slice %404 {offsets = [14, 0], sizes = [1, 256], strides = [1, 1]} : vector<32x256xf32> to vector<1x256xf32>
    %491 = vector.broadcast %489 : vector<2x1xf32> to vector<2x256xf32>
    %492 = vector.broadcast %490 : vector<1x256xf32> to vector<2x256xf32>
    %493 = arith.mulf %491, %492 : vector<2x256xf32>
    %494 = arith.addf %488, %493 : vector<2x256xf32>
    %495 = vector.extract_strided_slice %405 {offsets = [0, 15], sizes = [2, 1], strides = [1, 1]} : vector<2x32xf32> to vector<2x1xf32>
    %496 = vector.extract_strided_slice %404 {offsets = [15, 0], sizes = [1, 256], strides = [1, 1]} : vector<32x256xf32> to vector<1x256xf32>
    %497 = vector.broadcast %495 : vector<2x1xf32> to vector<2x256xf32>
    %498 = vector.broadcast %496 : vector<1x256xf32> to vector<2x256xf32>
    %499 = arith.mulf %497, %498 : vector<2x256xf32>
    %500 = arith.addf %494, %499 : vector<2x256xf32>
    %501 = vector.extract_strided_slice %405 {offsets = [0, 16], sizes = [2, 1], strides = [1, 1]} : vector<2x32xf32> to vector<2x1xf32>
    %502 = vector.extract_strided_slice %404 {offsets = [16, 0], sizes = [1, 256], strides = [1, 1]} : vector<32x256xf32> to vector<1x256xf32>
    %503 = vector.broadcast %501 : vector<2x1xf32> to vector<2x256xf32>
    %504 = vector.broadcast %502 : vector<1x256xf32> to vector<2x256xf32>
    %505 = arith.mulf %503, %504 : vector<2x256xf32>
    %506 = arith.addf %500, %505 : vector<2x256xf32>
    %507 = vector.extract_strided_slice %405 {offsets = [0, 17], sizes = [2, 1], strides = [1, 1]} : vector<2x32xf32> to vector<2x1xf32>
    %508 = vector.extract_strided_slice %404 {offsets = [17, 0], sizes = [1, 256], strides = [1, 1]} : vector<32x256xf32> to vector<1x256xf32>
    %509 = vector.broadcast %507 : vector<2x1xf32> to vector<2x256xf32>
    %510 = vector.broadcast %508 : vector<1x256xf32> to vector<2x256xf32>
    %511 = arith.mulf %509, %510 : vector<2x256xf32>
    %512 = arith.addf %506, %511 : vector<2x256xf32>
    %513 = vector.extract_strided_slice %405 {offsets = [0, 18], sizes = [2, 1], strides = [1, 1]} : vector<2x32xf32> to vector<2x1xf32>
    %514 = vector.extract_strided_slice %404 {offsets = [18, 0], sizes = [1, 256], strides = [1, 1]} : vector<32x256xf32> to vector<1x256xf32>
    %515 = vector.broadcast %513 : vector<2x1xf32> to vector<2x256xf32>
    %516 = vector.broadcast %514 : vector<1x256xf32> to vector<2x256xf32>
    %517 = arith.mulf %515, %516 : vector<2x256xf32>
    %518 = arith.addf %512, %517 : vector<2x256xf32>
    %519 = vector.extract_strided_slice %405 {offsets = [0, 19], sizes = [2, 1], strides = [1, 1]} : vector<2x32xf32> to vector<2x1xf32>
    %520 = vector.extract_strided_slice %404 {offsets = [19, 0], sizes = [1, 256], strides = [1, 1]} : vector<32x256xf32> to vector<1x256xf32>
    %521 = vector.broadcast %519 : vector<2x1xf32> to vector<2x256xf32>
    %522 = vector.broadcast %520 : vector<1x256xf32> to vector<2x256xf32>
    %523 = arith.mulf %521, %522 : vector<2x256xf32>
    %524 = arith.addf %518, %523 : vector<2x256xf32>
    %525 = vector.extract_strided_slice %405 {offsets = [0, 20], sizes = [2, 1], strides = [1, 1]} : vector<2x32xf32> to vector<2x1xf32>
    %526 = vector.extract_strided_slice %404 {offsets = [20, 0], sizes = [1, 256], strides = [1, 1]} : vector<32x256xf32> to vector<1x256xf32>
    %527 = vector.broadcast %525 : vector<2x1xf32> to vector<2x256xf32>
    %528 = vector.broadcast %526 : vector<1x256xf32> to vector<2x256xf32>
    %529 = arith.mulf %527, %528 : vector<2x256xf32>
    %530 = arith.addf %524, %529 : vector<2x256xf32>
    %531 = vector.extract_strided_slice %405 {offsets = [0, 21], sizes = [2, 1], strides = [1, 1]} : vector<2x32xf32> to vector<2x1xf32>
    %532 = vector.extract_strided_slice %404 {offsets = [21, 0], sizes = [1, 256], strides = [1, 1]} : vector<32x256xf32> to vector<1x256xf32>
    %533 = vector.broadcast %531 : vector<2x1xf32> to vector<2x256xf32>
    %534 = vector.broadcast %532 : vector<1x256xf32> to vector<2x256xf32>
    %535 = arith.mulf %533, %534 : vector<2x256xf32>
    %536 = arith.addf %530, %535 : vector<2x256xf32>
    %537 = vector.extract_strided_slice %405 {offsets = [0, 22], sizes = [2, 1], strides = [1, 1]} : vector<2x32xf32> to vector<2x1xf32>
    %538 = vector.extract_strided_slice %404 {offsets = [22, 0], sizes = [1, 256], strides = [1, 1]} : vector<32x256xf32> to vector<1x256xf32>
    %539 = vector.broadcast %537 : vector<2x1xf32> to vector<2x256xf32>
    %540 = vector.broadcast %538 : vector<1x256xf32> to vector<2x256xf32>
    %541 = arith.mulf %539, %540 : vector<2x256xf32>
    %542 = arith.addf %536, %541 : vector<2x256xf32>
    %543 = vector.extract_strided_slice %405 {offsets = [0, 23], sizes = [2, 1], strides = [1, 1]} : vector<2x32xf32> to vector<2x1xf32>
    %544 = vector.extract_strided_slice %404 {offsets = [23, 0], sizes = [1, 256], strides = [1, 1]} : vector<32x256xf32> to vector<1x256xf32>
    %545 = vector.broadcast %543 : vector<2x1xf32> to vector<2x256xf32>
    %546 = vector.broadcast %544 : vector<1x256xf32> to vector<2x256xf32>
    %547 = arith.mulf %545, %546 : vector<2x256xf32>
    %548 = arith.addf %542, %547 : vector<2x256xf32>
    %549 = vector.extract_strided_slice %405 {offsets = [0, 24], sizes = [2, 1], strides = [1, 1]} : vector<2x32xf32> to vector<2x1xf32>
    %550 = vector.extract_strided_slice %404 {offsets = [24, 0], sizes = [1, 256], strides = [1, 1]} : vector<32x256xf32> to vector<1x256xf32>
    %551 = vector.broadcast %549 : vector<2x1xf32> to vector<2x256xf32>
    %552 = vector.broadcast %550 : vector<1x256xf32> to vector<2x256xf32>
    %553 = arith.mulf %551, %552 : vector<2x256xf32>
    %554 = arith.addf %548, %553 : vector<2x256xf32>
    %555 = vector.extract_strided_slice %405 {offsets = [0, 25], sizes = [2, 1], strides = [1, 1]} : vector<2x32xf32> to vector<2x1xf32>
    %556 = vector.extract_strided_slice %404 {offsets = [25, 0], sizes = [1, 256], strides = [1, 1]} : vector<32x256xf32> to vector<1x256xf32>
    %557 = vector.broadcast %555 : vector<2x1xf32> to vector<2x256xf32>
    %558 = vector.broadcast %556 : vector<1x256xf32> to vector<2x256xf32>
    %559 = arith.mulf %557, %558 : vector<2x256xf32>
    %560 = arith.addf %554, %559 : vector<2x256xf32>
    %561 = vector.extract_strided_slice %405 {offsets = [0, 26], sizes = [2, 1], strides = [1, 1]} : vector<2x32xf32> to vector<2x1xf32>
    %562 = vector.extract_strided_slice %404 {offsets = [26, 0], sizes = [1, 256], strides = [1, 1]} : vector<32x256xf32> to vector<1x256xf32>
    %563 = vector.broadcast %561 : vector<2x1xf32> to vector<2x256xf32>
    %564 = vector.broadcast %562 : vector<1x256xf32> to vector<2x256xf32>
    %565 = arith.mulf %563, %564 : vector<2x256xf32>
    %566 = arith.addf %560, %565 : vector<2x256xf32>
    %567 = vector.extract_strided_slice %405 {offsets = [0, 27], sizes = [2, 1], strides = [1, 1]} : vector<2x32xf32> to vector<2x1xf32>
    %568 = vector.extract_strided_slice %404 {offsets = [27, 0], sizes = [1, 256], strides = [1, 1]} : vector<32x256xf32> to vector<1x256xf32>
    %569 = vector.broadcast %567 : vector<2x1xf32> to vector<2x256xf32>
    %570 = vector.broadcast %568 : vector<1x256xf32> to vector<2x256xf32>
    %571 = arith.mulf %569, %570 : vector<2x256xf32>
    %572 = arith.addf %566, %571 : vector<2x256xf32>
    %573 = vector.extract_strided_slice %405 {offsets = [0, 28], sizes = [2, 1], strides = [1, 1]} : vector<2x32xf32> to vector<2x1xf32>
    %574 = vector.extract_strided_slice %404 {offsets = [28, 0], sizes = [1, 256], strides = [1, 1]} : vector<32x256xf32> to vector<1x256xf32>
    %575 = vector.broadcast %573 : vector<2x1xf32> to vector<2x256xf32>
    %576 = vector.broadcast %574 : vector<1x256xf32> to vector<2x256xf32>
    %577 = arith.mulf %575, %576 : vector<2x256xf32>
    %578 = arith.addf %572, %577 : vector<2x256xf32>
    %579 = vector.extract_strided_slice %405 {offsets = [0, 29], sizes = [2, 1], strides = [1, 1]} : vector<2x32xf32> to vector<2x1xf32>
    %580 = vector.extract_strided_slice %404 {offsets = [29, 0], sizes = [1, 256], strides = [1, 1]} : vector<32x256xf32> to vector<1x256xf32>
    %581 = vector.broadcast %579 : vector<2x1xf32> to vector<2x256xf32>
    %582 = vector.broadcast %580 : vector<1x256xf32> to vector<2x256xf32>
    %583 = arith.mulf %581, %582 : vector<2x256xf32>
    %584 = arith.addf %578, %583 : vector<2x256xf32>
    %585 = vector.extract_strided_slice %405 {offsets = [0, 30], sizes = [2, 1], strides = [1, 1]} : vector<2x32xf32> to vector<2x1xf32>
    %586 = vector.extract_strided_slice %404 {offsets = [30, 0], sizes = [1, 256], strides = [1, 1]} : vector<32x256xf32> to vector<1x256xf32>
    %587 = vector.broadcast %585 : vector<2x1xf32> to vector<2x256xf32>
    %588 = vector.broadcast %586 : vector<1x256xf32> to vector<2x256xf32>
    %589 = arith.mulf %587, %588 : vector<2x256xf32>
    %590 = arith.addf %584, %589 : vector<2x256xf32>
    %591 = vector.extract_strided_slice %405 {offsets = [0, 31], sizes = [2, 1], strides = [1, 1]} : vector<2x32xf32> to vector<2x1xf32>
    %592 = vector.extract_strided_slice %404 {offsets = [31, 0], sizes = [1, 256], strides = [1, 1]} : vector<32x256xf32> to vector<1x256xf32>
    %593 = vector.broadcast %591 : vector<2x1xf32> to vector<2x256xf32>
    %594 = vector.broadcast %592 : vector<1x256xf32> to vector<2x256xf32>
    %595 = arith.mulf %593, %594 : vector<2x256xf32>
    %596 = arith.addf %590, %595 : vector<2x256xf32>
    %c0_12 = arith.constant 0 : index
    %c0_13 = arith.constant 0 : index
    %597 = vector.load %arg5[%c0_12, %c0_13] : memref<2x256xf32, #tpu.memory_space<vmem>>, vector<2x256xf32>
    tpu.vector_store %arg5[%c0_12, %c0_13], %596 {strides = array<i32>} : memref<2x256xf32, #tpu.memory_space<vmem>>, vector<2x256xf32>,
    return
  }
  func.func @transform_0(%arg0: i32) -> (i32, i32) {
    %c0_i32 = arith.constant 0 : i32
    %c0_i32_0 = arith.constant 0 : i32
    return %c0_i32, %arg0 : i32, i32
  }
  func.func @transform_1(%arg0: i32) -> (i32, i32) {
    %c0_i32 = arith.constant 0 : i32
    %c0_i32_0 = arith.constant 0 : i32
    %c0_i32_1 = arith.constant 0 : i32
    return %c0_i32, %c0_i32_0 : i32, i32
  }
  func.func @transform_2(%arg0: i32) -> (i32, i32, i32) {
    %c0_i32 = arith.constant 0 : i32
    %c0_i32_0 = arith.constant 0 : i32
    %c0_i32_1 = arith.constant 0 : i32
    %c0_i32_2 = arith.constant 0 : i32
    return %c0_i32, %c0_i32_0, %c0_i32_1 : i32, i32, i32
  }
  func.func @transform_3(%arg0: i32) -> (i32, i32) {
    %c0_i32 = arith.constant 0 : i32
    %c0_i32_0 = arith.constant 0 : i32
    %c0_i32_1 = arith.constant 0 : i32
    return %c0_i32, %c0_i32_0 : i32, i32
  }
  func.func @transform_4(%arg0: i32) -> (i32, i32) {
    %c0_i32 = arith.constant 0 : i32
    %c0_i32_0 = arith.constant 0 : i32
    return %c0_i32, %arg0 : i32, i32
  }
}

</mosaic_0001>

<bundles_post_ra>
// kernel: tpu_custom_call.1
= control target key start
LH: loop header
LB: loop body
LE: loop exit
PB: predicated region body
PF: predicated region fallthrough
CT: control target
= control target key end

     0   :  { %9 = vsyncpa [#allocation3], 0  ;;  %s6094_s0 = inlined_call_operand.vmem [shape: f32[2,200], index: 0, kind: input, shape index: {}]   ;;  %s6095_s1 = inlined_call_operand.vmem [shape: f32[32,2], index: 1, kind: input, shape index: {}]   ;;  %s6096_s2 = inlined_call_operand.hbm [shape: f32[2,32,32], index: 2, kind: input, shape index: {}]   ;;  %s6097_s3 = inlined_call_operand.vmem [shape: f32[2,32], index: 3, kind: input, shape index: {}]   ;;  %s6098_s4 = inlined_call_operand.hbm [shape: f32[2,200], index: 4, kind: output, shape index: {}]  }
   0x1   :  { %10 = vsyncpa [#allocation4], 0  ;;  %s3489_s15 = smov [#allocation2]   ;;  %s3441_s19 = scalar_lea.hbm %s6096_s2, 1024 }
   0x2   :  { %s20_s16 = sshll.u32 %s3489_s15, 4  ;;  %p3442_p0 = scmp.ne.s32.totalorder %s6096_s2, %s3441_s19  ;;  %s21_s16 = int_to_ptr.vmem [resolvable:$true] %s20_s16 }
   0x3   :  { %p3445_p1 = scmp.lt.u32.totalorder %s3441_s19, %s6096_s2 }
   0x5   :  { %p3447_p2 = pnand %p3445_p1, %p3442_p0 }
   0x7   :  { %3450 = shalt.err (!%p3447_p2)
}
   0x8   :  { %s3451_s24 = scalar_lea.vmem %s21_s16, 1024  ;;  %p3456_p4 = scmp.lt.s32.totalorder %s21_s16, %s21_s16 }
   0x9   :  { %p3452_p3 = scmp.ne.s32.totalorder %s21_s16, %s3451_s24  ;;  %p3457_p5 = scmp.lt.s32.totalorder %s3451_s24, %s3451_s24 }
   0xb   :  { %p3458_p6 = por %p3457_p5, %p3456_p4 }
   0xd   :  { %p3459_p7 = pnand %p3458_p6, %p3452_p3 }
   0xf   :  { %3462 = shalt.err (!%p3459_p7)
}
  0x10   :  { %s3490_s25 = smov 128   ;;  %s3491_s26 = smov 8  }
  0x11   :  { %26 = dma.hbm_to_vmem [thread:$0]  %s6096_s2, 1024, %s21_s16, [#allocation3], %s3490_s25, %s3490_s25, %s3491_s26  }
  0x12   :  { %3485 = dma.done.wait [#allocation3], 1024  }
  0x13   :  { %3486 = vsyncadd [#allocation3], 4294966272  ;;  %v6135_v0 = vmov 29   ;;  %v6129_v1 = vmov 0   ;;  %v3564_v2 = vld [vmem:[#allocation2] sm:$0xff]  ;;  %v35_v3 = vld [vmem:[%s6095_s1 + $0x10] sm:$0xff] }
  0x14   :  { %3326 = vset.pattern.permute.xlu0 %v6135_v0  ;;  %3295 = vset.pattern.permute.xlu1 %v6129_v1  ;;  %v36_v4 = vld [vmem:[%s6095_s1 + $0x18] sm:$0xff]  ;;  %v3573_v5 = vld [vmem:[#allocation2 + $0x8] sm:$0xff]  ;;  %v6133_v6 = vmov 30   ;;  %v6127_v8 = vmov 1   ;;  %v6131_v9 = vmov 31   ;;  %v33_v10 = vld [vmem:[%s6095_s1] sm:$0xff] }
  0x15   :  { %1303 = vperm.xlu0 %3326, %v3564_v2   ;;  %49 = vperm.xlu1 %3295, %v35_v3   ;;  %v34_v7 = vld [vmem:[%s6095_s1 + $0x8] sm:$0xff]  ;;  %v3589_v11 = vld [vmem:[#allocation2 + $0x10] sm:$0xff]  ;;  %v3593_v12 = vld [vmem:[#allocation2 + $0x18] sm:$0xff]  ;;  %v6125_v14 = vmov 2   ;;  %v6121_v17 = vmov 3   ;;  %v6119_v18 = vmov 4  }
  0x16   :  { %v3595_v13 = vld [vmem:[#allocation2 + $0x28] sm:$0xff]  ;;  %v3608_v15 = vld [vmem:[#allocation2 + $0x20] sm:$0xff]  ;;  %v3612_v16 = vld [vmem:[#allocation2 + $0x38] sm:$0xff]  ;;  %v6117_v19 = vmov 5   ;;  %v6115_v20 = vmov 6   ;;  %v6109_v21 = vmov 7  }
  0x17   :  { %v6105_v22 = vmov 8   ;;  %v6111_v23 = vmov 9   ;;  %v6103_v25 = vmov 10   ;;  %v6101_v31 = vmov 11  }
  0x18   :  { %v6107_v36 = vmov 12   ;;  %v6099_v43 = vmov 13   ;;  %v6113_v48 = vmov 14   ;;  %v6123_v55 = vmov 15  }
  0x19   :  { %3329 = vset.pattern.permute.xlu0 %v6133_v6  ;;  %54 = vperm.xlu1 %3295, %v36_v4   ;;  %v6141_v60 = vmov 16   ;;  %v6143_v6 = vmov 20  }
  0x1a   :  { %1347 = vperm.xlu0 %3329, %v3573_v5  }
  0x1d   :  { %3296 = vset.pattern.permute.xlu1 %v6127_v8 }
  0x1e   :  { %3330 = vset.pattern.permute.xlu0 %v6131_v9  ;;  %89 = vperm.xlu1 %3296, %v34_v7  }
  0x1f   :  { %1383 = vperm.xlu0 %3330, %v3564_v2  }
  0x22   :  { %93 = vperm.xlu1 %3296, %v35_v3  }
  0x23   :  { %3331 = vset.pattern.permute.xlu0 %v6129_v1 }
  0x24   :  { %39 = vperm.xlu0 %3331, %v33_v10  }
  0x26   :  { %3297 = vset.pattern.permute.xlu1 %v6129_v1 }
  0x27   :  { %148 = vperm.xlu1 %3297, %v3564_v2  }
  0x28   :  { %44 = vperm.xlu0 %3331, %v34_v7  }
  0x2b   :  { %158 = vperm.xlu1 %3297, %v3589_v11  }
  0x2c   :  { %153 = vperm.xlu0 %3331, %v3573_v5  }
  0x2f   :  { %163 = vperm.xlu1 %3297, %v3593_v12  }
  0x30   :  { %1442 = vperm.xlu0 %3331, %v3595_v13  }
  0x33   :  { %3298 = vset.pattern.permute.xlu1 %v6127_v8 }
  0x34   :  { %187 = vperm.xlu1 %3298, %v3573_v5   ;;  %3334 = vset.pattern.permute.xlu0 %v6127_v8 }
  0x35   :  { %85 = vperm.xlu0 %3334, %v33_v10   ;;  %v6148_v10 = vmov 17  }
  0x38   :  { %191 = vperm.xlu1 %3298, %v3589_v11  }
  0x39   :  { %97 = vperm.xlu0 %3334, %v36_v4  }
  0x3c   :  { %3299 = vset.pattern.permute.xlu1 %v6125_v14 }
  0x3d   :  { %223 = vperm.xlu1 %3299, %v3564_v2   ;;  %183 = vperm.xlu0 %3334, %v3564_v2  }
  0x41   :  { %231 = vperm.xlu1 %3299, %v3589_v11   ;;  %195 = vperm.xlu0 %3334, %v3593_v12  }
  0x45   :  { %235 = vperm.xlu1 %3299, %v3593_v12   ;;  %1472 = vperm.xlu0 %3334, %v3608_v15  }
  0x49   :  { %3300 = vset.pattern.permute.xlu1 %v6121_v17  ;;  %1484 = vperm.xlu0 %3334, %v3612_v16  }
  0x4a   :  { %267 = vperm.xlu1 %3300, %v3573_v5  }
  0x4d   :  { %3336 = vset.pattern.permute.xlu0 %v6125_v14 }
  0x4e   :  { %271 = vperm.xlu1 %3300, %v3589_v11   ;;  %227 = vperm.xlu0 %3336, %v3573_v5  }
  0x52   :  { %3301 = vset.pattern.permute.xlu1 %v6119_v18  ;;  %1516 = vperm.xlu0 %3336, %v3595_v13  }
  0x53   :  { %303 = vperm.xlu1 %3301, %v3564_v2  }
  0x56   :  { %3338 = vset.pattern.permute.xlu0 %v6121_v17 }
  0x57   :  { %311 = vperm.xlu1 %3301, %v3589_v11   ;;  %263 = vperm.xlu0 %3338, %v3564_v2  }
  0x5b   :  { %315 = vperm.xlu1 %3301, %v3593_v12   ;;  %275 = vperm.xlu0 %3338, %v3593_v12  }
  0x5f   :  { %3302 = vset.pattern.permute.xlu1 %v6117_v19  ;;  %1552 = vperm.xlu0 %3338, %v3608_v15  }
  0x60   :  { %347 = vperm.xlu1 %3302, %v3573_v5  }
  0x63   :  { %3339 = vset.pattern.permute.xlu0 %v6119_v18 }
  0x64   :  { %351 = vperm.xlu1 %3302, %v3589_v11   ;;  %307 = vperm.xlu0 %3339, %v3573_v5  }
  0x68   :  { %3303 = vset.pattern.permute.xlu1 %v6115_v20  ;;  %1596 = vperm.xlu0 %3339, %v3595_v13  }
  0x69   :  { %383 = vperm.xlu1 %3303, %v3564_v2  }
  0x6c   :  { %3342 = vset.pattern.permute.xlu0 %v6117_v19 }
  0x6d   :  { %391 = vperm.xlu1 %3303, %v3589_v11   ;;  %343 = vperm.xlu0 %3342, %v3564_v2  }
  0x71   :  { %395 = vperm.xlu1 %3303, %v3593_v12   ;;  %355 = vperm.xlu0 %3342, %v3593_v12  }
  0x75   :  { %3304 = vset.pattern.permute.xlu1 %v6109_v21  ;;  %1632 = vperm.xlu0 %3342, %v3608_v15  }
  0x76   :  { %427 = vperm.xlu1 %3304, %v3573_v5  }
  0x79   :  { %1644 = vperm.xlu0 %3342, %v3612_v16  }
  0x7a   :  { %431 = vperm.xlu1 %3304, %v3589_v11  }
  0x7d   :  { %3344 = vset.pattern.permute.xlu0 %v6115_v20 }
  0x7e   :  { %3305 = vset.pattern.permute.xlu1 %v6105_v22  ;;  %387 = vperm.xlu0 %3344, %v3573_v5  }
  0x7f   :  { %463 = vperm.xlu1 %3305, %v3564_v2  }
  0x82   :  { %1676 = vperm.xlu0 %3344, %v3595_v13  }
  0x83   :  { %471 = vperm.xlu1 %3305, %v3589_v11  }
  0x86   :  { %3346 = vset.pattern.permute.xlu0 %v6109_v21 }
  0x87   :  { %475 = vperm.xlu1 %3305, %v3593_v12   ;;  %423 = vperm.xlu0 %3346, %v3564_v2  }
  0x8b   :  { %3306 = vset.pattern.permute.xlu1 %v6111_v23  ;;  %435 = vperm.xlu0 %3346, %v3593_v12  }
  0x8c   :  { %507 = vperm.xlu1 %3306, %v3573_v5  }
  0x8f   :  { %1712 = vperm.xlu0 %3346, %v3608_v15  }
  0x90   :  { %511 = vperm.xlu1 %3306, %v3589_v11  }
  0x93   :  { %1724 = vperm.xlu0 %3346, %v3612_v16  }
  0x94   :  { %v3662_v24 = vpop.permute.xlu1 %49  ;;  %3307 = vset.pattern.permute.xlu1 %v6103_v25  ;;  %v3665_v26 = vpop.permute.xlu0 %1303 }
  0x95   :  { %6452 = vst [vmem:[#allocation8_spill] sm:$0xff] %v3665_v26  ;;  %543 = vperm.xlu1 %3307, %v3564_v2   ;;  %v6198_v26 = vmov 27  }
  0x97   :  { %3348 = vset.pattern.permute.xlu0 %v6105_v22 }
  0x98   :  { %v3669_v27 = vpop.permute.xlu1 %54  ;;  %467 = vperm.xlu0 %3348, %v3573_v5  }
  0x99   :  { %6453 = vst [vmem:[#allocation9_spill] sm:$0xff] %v3669_v27  ;;  %551 = vperm.xlu1 %3307, %v3589_v11   ;;  %v3673_v28 = vpop.permute.xlu0 %1347 }
  0x9a   :  { %6454 = vst [vmem:[#allocation10_spill] sm:$0xff] %v3673_v28  ;;  %v6189_v28 = vmov 26  }
  0x9c   :  { %1756 = vperm.xlu0 %3348, %v3595_v13  }
  0x9d   :  { %555 = vperm.xlu1 %3307, %v3593_v12   ;;  %v3677_v29 = vpop.permute.xlu1 %89 }
  0x9e   :  { %v3679_v30 = vpop.permute.xlu0 %1383 }
  0x9f   :  { %6455 = vst [vmem:[#allocation11_spill] sm:$0xff] %v3679_v30 }
  0xa0   :  { %3350 = vset.pattern.permute.xlu0 %v6111_v23 }
  0xa1   :  { %3308 = vset.pattern.permute.xlu1 %v6101_v31  ;;  %v3683_v32 = vpop.permute.xlu1 %93  ;;  %503 = vperm.xlu0 %3350, %v3564_v2  }
  0xa2   :  { %587 = vperm.xlu1 %3308, %v3573_v5  }
  0xa3   :  { %v3687_v33 = vpop.permute.xlu0 %39 }
  0xa5   :  { %515 = vperm.xlu0 %3350, %v3593_v12  }
  0xa6   :  { %591 = vperm.xlu1 %3308, %v3589_v11   ;;  %v3691_v34 = vpop.permute.xlu1 %148 }
  0xa7   :  { %v3693_v35 = vpop.permute.xlu0 %44 }
  0xa9   :  { %1792 = vperm.xlu0 %3350, %v3608_v15  }
  0xaa   :  { %3309 = vset.pattern.permute.xlu1 %v6107_v36  ;;  %v3697_v37 = vpop.permute.xlu1 %158 }
  0xab   :  { %6456 = vst [vmem:[#allocation12_spill] sm:$0xff] %v3697_v37  ;;  %623 = vperm.xlu1 %3309, %v3564_v2   ;;  %v3700_v38 = vpop.permute.xlu0 %153 }
  0xac   :  { %6457 = vst [vmem:[#allocation13_spill] sm:$0xff] %v3700_v38 }
  0xad   :  { %1804 = vperm.xlu0 %3350, %v3612_v16  }
  0xae   :  { %v3703_v39 = vpop.permute.xlu1 %163 }
  0xaf   :  { %631 = vperm.xlu1 %3309, %v3589_v11   ;;  %v3706_v40 = vpop.permute.xlu0 %1442 }
  0xb0   :  { %6458 = vst [vmem:[#allocation14_spill] sm:$0xff] %v3706_v40 }
  0xb1   :  { %3352 = vset.pattern.permute.xlu0 %v6103_v25 }
  0xb2   :  { %547 = vperm.xlu0 %3352, %v3573_v5  }
  0xb3   :  { %635 = vperm.xlu1 %3309, %v3593_v12   ;;  %v3711_v41 = vpop.permute.xlu1 %187 }
  0xb4   :  { %6459 = vst [vmem:[#allocation15_spill] sm:$0xff] %v3711_v41  ;;  %v3713_v42 = vpop.permute.xlu0 %85 }
  0xb6   :  { %1836 = vperm.xlu0 %3352, %v3595_v13  }
  0xb7   :  { %3310 = vset.pattern.permute.xlu1 %v6099_v43  ;;  %v3717_v44 = vpop.permute.xlu1 %191 }
  0xb8   :  { %6460 = vst [vmem:[#allocation16_spill] sm:$0xff] %v3717_v44  ;;  %667 = vperm.xlu1 %3310, %v3573_v5   ;;  %v3720_v45 = vpop.permute.xlu0 %97 }
  0xb9   :  { %6461 = vst [vmem:[#allocation17_spill] sm:$0xff] %v3720_v45 }
  0xba   :  { %3354 = vset.pattern.permute.xlu0 %v6101_v31 }
  0xbb   :  { %583 = vperm.xlu0 %3354, %v3564_v2  }
  0xbc   :  { %671 = vperm.xlu1 %3310, %v3589_v11   ;;  %v3725_v46 = vpop.permute.xlu1 %223  ;;  %v3727_v47 = vpop.permute.xlu0 %183 }
  0xbd   :  { %6462 = vst [vmem:[#allocation18_spill] sm:$0xff] %v3725_v46  ;;  %6463 = vst [vmem:[#allocation19_spill] sm:$0xff] %v3727_v47 }
  0xbf   :  { %595 = vperm.xlu0 %3354, %v3593_v12  }
  0xc0   :  { %3311 = vset.pattern.permute.xlu1 %v6113_v48  ;;  %v3731_v49 = vpop.permute.xlu1 %231  ;;  %v3733_v50 = vpop.permute.xlu0 %195 }
  0xc1   :  { %6464 = vst [vmem:[#allocation20_spill] sm:$0xff] %v3731_v49  ;;  %703 = vperm.xlu1 %3311, %v3564_v2  }
  0xc3   :  { %1872 = vperm.xlu0 %3354, %v3608_v15  }
  0xc4   :  { %v3737_v51 = vpop.permute.xlu1 %235  ;;  %v3739_v52 = vpop.permute.xlu0 %1472 }
  0xc5   :  { %6465 = vst [vmem:[#allocation21_spill] sm:$0xff] %v3739_v52  ;;  %711 = vperm.xlu1 %3311, %v3589_v11   ;;  %v6514_v52 = vmov 21  }
  0xc7   :  { %1884 = vperm.xlu0 %3354, %v3612_v16  }
  0xc8   :  { %v3743_v53 = vpop.permute.xlu0 %1484 }
  0xc9   :  { %6466 = vst [vmem:[#allocation22_spill] sm:$0xff] %v3743_v53  ;;  %715 = vperm.xlu1 %3311, %v3593_v12   ;;  %v3746_v54 = vpop.permute.xlu1 %267 }
  0xca   :  { %6467 = vst [vmem:[#allocation23_spill] sm:$0xff] %v3746_v54 }
  0xcb   :  { %3356 = vset.pattern.permute.xlu0 %v6107_v36  ;;  %v6139_v36 = vmov 18  }
  0xcc   :  { %627 = vperm.xlu0 %3356, %v3573_v5  }
  0xcd   :  { %3312 = vset.pattern.permute.xlu1 %v6123_v55  ;;  %v3751_v56 = vpop.permute.xlu1 %271  ;;  %v3753_v57 = vpop.permute.xlu0 %227 }
  0xce   :  { %6468 = vst [vmem:[#allocation24_spill] sm:$0xff] %v3751_v56  ;;  %6469 = vst [vmem:[#allocation25_spill] sm:$0xff] %v3753_v57  ;;  %747 = vperm.xlu1 %3312, %v3573_v5   ;;  %v6159_v56 = vmov 22  }
  0xd0   :  { %1916 = vperm.xlu0 %3356, %v3595_v13  }
  0xd1   :  { %v3757_v58 = vpop.permute.xlu0 %1516 }
  0xd2   :  { %6470 = vst [vmem:[#allocation26_spill] sm:$0xff] %v3757_v58  ;;  %751 = vperm.xlu1 %3312, %v3589_v11   ;;  %v3760_v59 = vpop.permute.xlu1 %303 }
  0xd3   :  { %6471 = vst [vmem:[#allocation27_spill] sm:$0xff] %v3760_v59  ;;  %v4135_v59 = vld [vmem:[#allocation2 + $0x30] sm:$0xff] }
  0xd4   :  { %3358 = vset.pattern.permute.xlu0 %v6099_v43 }
  0xd5   :  { %663 = vperm.xlu0 %3358, %v3564_v2  }
  0xd6   :  { %3313 = vset.pattern.permute.xlu1 %v6141_v60  ;;  %v3765_v61 = vpop.permute.xlu1 %311  ;;  %v3767_v62 = vpop.permute.xlu0 %263 }
  0xd7   :  { %6472 = vst [vmem:[#allocation28_spill] sm:$0xff] %v3765_v61  ;;  %6473 = vst [vmem:[#allocation29_spill] sm:$0xff] %v3767_v62  ;;  %783 = vperm.xlu1 %3313, %v3564_v2  }
  0xd9   :  { %675 = vperm.xlu0 %3358, %v3593_v12  }
  0xda   :  { %v3771_v63 = vpop.permute.xlu1 %315  ;;  %v3773_v3 = vpop.permute.xlu0 %275 }
  0xdb   :  { %791 = vperm.xlu1 %3313, %v3589_v11  }
  0xdd   :  { %1952 = vperm.xlu0 %3358, %v3608_v15  }
  0xde   :  { %v3777_v4 = vpop.permute.xlu0 %1552 }
  0xdf   :  { %6474 = vst [vmem:[#allocation30_spill] sm:$0xff] %v3777_v4  ;;  %795 = vperm.xlu1 %3313, %v3593_v12   ;;  %v3780_v7 = vpop.permute.xlu1 %347  ;;  %v6184_v4 = vmov 25  }
  0xe0   :  { %6475 = vst [vmem:[#allocation31_spill] sm:$0xff] %v3780_v7 }
  0xe1   :  { %1964 = vperm.xlu0 %3358, %v3612_v16  }
  0xe3   :  { %3314 = vset.pattern.permute.xlu1 %v6148_v10  ;;  %v3784_v43 = vpop.permute.xlu1 %351  ;;  %v3786_v31 = vpop.permute.xlu0 %307 }
  0xe4   :  { %6476 = vst [vmem:[#allocation32_spill] sm:$0xff] %v3784_v43  ;;  %6477 = vst [vmem:[#allocation33_spill] sm:$0xff] %v3786_v31  ;;  %827 = vperm.xlu1 %3314, %v3573_v5  }
  0xe5   :  { %3360 = vset.pattern.permute.xlu0 %v6113_v48 }
  0xe6   :  { %707 = vperm.xlu0 %3360, %v3573_v5  }
  0xe7   :  { %v3791_v25 = vpop.permute.xlu0 %1596 }
  0xe8   :  { %6478 = vst [vmem:[#allocation34_spill] sm:$0xff] %v3791_v25  ;;  %831 = vperm.xlu1 %3314, %v3589_v11   ;;  %v3794_v22 = vpop.permute.xlu1 %383  ;;  %v6509_v25 = vmov 20  }
  0xe9   :  { %6479 = vst [vmem:[#allocation35_spill] sm:$0xff] %v3794_v22 }
  0xea   :  { %1996 = vperm.xlu0 %3360, %v3595_v13  }
  0xec   :  { %3315 = vset.pattern.permute.xlu1 %v6139_v36  ;;  %v3798_v21 = vpop.permute.xlu1 %391  ;;  %v3800_v23 = vpop.permute.xlu0 %343 }
  0xed   :  { %6480 = vst [vmem:[#allocation36_spill] sm:$0xff] %v3798_v21  ;;  %6481 = vst [vmem:[#allocation37_spill] sm:$0xff] %v3800_v23  ;;  %863 = vperm.xlu1 %3315, %v3564_v2  }
  0xee   :  { %3362 = vset.pattern.permute.xlu0 %v6123_v55  ;;  %v6137_v55 = vmov 19  }
  0xef   :  { %743 = vperm.xlu0 %3362, %v3564_v2  }
  0xf0   :  { %v3805_v48 = vpop.permute.xlu1 %395  ;;  %v3807_v20 = vpop.permute.xlu0 %355 }
  0xf1   :  { %871 = vperm.xlu1 %3315, %v3589_v11  }
  0xf3   :  { %755 = vperm.xlu0 %3362, %v3593_v12  }
  0xf4   :  { %v3811_v19 = vpop.permute.xlu0 %1632 }
  0xf5   :  { %6482 = vst [vmem:[#allocation38_spill] sm:$0xff] %v3811_v19  ;;  %875 = vperm.xlu1 %3315, %v3593_v12   ;;  %v3814_v18 = vpop.permute.xlu1 %427  ;;  %v6174_v19 = vmov 24  }
  0xf6   :  { %6483 = vst [vmem:[#allocation39_spill] sm:$0xff] %v3814_v18 }
  0xf7   :  { %2032 = vperm.xlu0 %3362, %v3608_v15  }
  0xf8   :  { %v3817_v17 = vpop.permute.xlu0 %1644 }
  0xf9   :  { %6484 = vst [vmem:[#allocation40_spill] sm:$0xff] %v3817_v17  ;;  %3316 = vset.pattern.permute.xlu1 %v6137_v55  ;;  %v3820_v14 = vpop.permute.xlu1 %431 }
  0xfa   :  { %6485 = vst [vmem:[#allocation41_spill] sm:$0xff] %v3820_v14  ;;  %907 = vperm.xlu1 %3316, %v3573_v5   ;;  %v6153_v14 = vmov 21  }
  0xfb   :  { %2044 = vperm.xlu0 %3362, %v3612_v16  }
  0xfd   :  { %v3824_v8 = vpop.permute.xlu0 %387 }
  0xfe   :  { %6486 = vst [vmem:[#allocation42_spill] sm:$0xff] %v3824_v8  ;;  %911 = vperm.xlu1 %3316, %v3589_v11   ;;  %v3827_v1 = vpop.permute.xlu1 %463 }
  0xff   :  { %6487 = vst [vmem:[#allocation43_spill] sm:$0xff] %v3827_v1  ;;  %3364 = vset.pattern.permute.xlu0 %v6141_v60 }
 0x100   :  { %787 = vperm.xlu0 %3364, %v3573_v5  }
 0x101   :  { %v3831_v9 = vpop.permute.xlu0 %1676 }
 0x102   :  { %6488 = vst [vmem:[#allocation44_spill] sm:$0xff] %v3831_v9  ;;  %3317 = vset.pattern.permute.xlu1 %v6143_v6  ;;  %v3834_v0 = vpop.permute.xlu1 %471 }
 0x103   :  { %6489 = vst [vmem:[#allocation45_spill] sm:$0xff] %v3834_v0  ;;  %943 = vperm.xlu1 %3317, %v3564_v2  }
 0x104   :  { %2076 = vperm.xlu0 %3364, %v3595_v13  }
 0x106   :  { %v3838_v55 = vpop.permute.xlu1 %475  ;;  %v3840_v36 = vpop.permute.xlu0 %423 }
 0x107   :  { %6490 = vst [vmem:[#allocation46_spill] sm:$0xff] %v3840_v36  ;;  %951 = vperm.xlu1 %3317, %v3589_v11   ;;  %v6567_v36 = vmov 0  }
 0x108   :  { %3366 = vset.pattern.permute.xlu0 %v6148_v10 }
 0x109   :  { %823 = vperm.xlu0 %3366, %v3564_v2  }
 0x10a   :  { %v3845_v60 = vpop.permute.xlu0 %435 }
 0x10b   :  { %955 = vperm.xlu1 %3317, %v3593_v12   ;;  %v3848_v6 = vpop.permute.xlu1 %507 }
 0x10c   :  { %6491 = vst [vmem:[#allocation47_spill] sm:$0xff] %v3848_v6 }
 0x10d   :  { %835 = vperm.xlu0 %3366, %v3593_v12  }
 0x10e   :  { %v3851_v0 = vpop.permute.xlu0 %1712 }
 0x10f   :  { %6492 = vst [vmem:[#allocation48_spill] sm:$0xff] %v3851_v0  ;;  %3318 = vset.pattern.permute.xlu1 %v6153_v14  ;;  %v3854_v21 = vpop.permute.xlu1 %511  ;;  %v6168_v0 = vmov 23  }
 0x110   :  { %6493 = vst [vmem:[#allocation49_spill] sm:$0xff] %v3854_v21  ;;  %987 = vperm.xlu1 %3318, %v3573_v5   ;;  %v6498_v21 = vmov 18  }
 0x111   :  { %2112 = vperm.xlu0 %3366, %v3608_v15  }
 0x112   :  { %v3858_v10 = vpop.permute.xlu0 %1724 }
 0x113   :  { %6494 = vst [vmem:[#allocation50_spill] sm:$0xff] %v3858_v10 }
 0x114   :  { %991 = vperm.xlu1 %3318, %v3589_v11   ;;  %v3861_v43 = vpop.permute.xlu1 %543 }
 0x115   :  { %6495 = vst [vmem:[#allocation51_spill] sm:$0xff] %v3861_v43  ;;  %2124 = vperm.xlu0 %3366, %v3612_v16  }
 0x117   :  { %v3864_v61 = vpop.permute.xlu0 %467 }
 0x118   :  { %6496 = vst [vmem:[#allocation52_spill] sm:$0xff] %v3864_v61  ;;  %3319 = vset.pattern.permute.xlu1 %v6159_v56  ;;  %v3867_v14 = vpop.permute.xlu1 %551 }
 0x119   :  { %6497 = vst [vmem:[#allocation53_spill] sm:$0xff] %v3867_v14  ;;  %1023 = vperm.xlu1 %3319, %v3564_v2   ;;  %3368 = vset.pattern.permute.xlu0 %v6498_v21  ;;  %v6502_v14 = vmov 19  }
 0x11a   :  { %867 = vperm.xlu0 %3368, %v3573_v5  }
 0x11b   :  { %v3872_v49 = vpop.permute.xlu0 %1756 }
 0x11c   :  { %6499 = vst [vmem:[#allocation54_spill] sm:$0xff] %v3872_v49  ;;  %v3874_v44 = vpop.permute.xlu1 %555 }
 0x11d   :  { %1031 = vperm.xlu1 %3319, %v3589_v11  }
 0x11e   :  { %2156 = vperm.xlu0 %3368, %v3595_v13  }
 0x120   :  { %v3878_v37 = vpop.permute.xlu0 %503 }
 0x121   :  { %6500 = vst [vmem:[#allocation55_spill] sm:$0xff] %v3878_v37  ;;  %1035 = vperm.xlu1 %3319, %v3593_v12   ;;  %v3881_v56 = vpop.permute.xlu1 %587 }
 0x122   :  { %6501 = vst [vmem:[#allocation56_spill] sm:$0xff] %v3881_v56  ;;  %3370 = vset.pattern.permute.xlu0 %v6502_v14 }
 0x123   :  { %903 = vperm.xlu0 %3370, %v3564_v2  }
 0x124   :  { %v3885_v10 = vpop.permute.xlu0 %515 }
 0x125   :  { %3320 = vset.pattern.permute.xlu1 %v6168_v0  ;;  %v3888_v49 = vpop.permute.xlu1 %591 }
 0x126   :  { %6503 = vst [vmem:[#allocation57_spill] sm:$0xff] %v3888_v49  ;;  %1067 = vperm.xlu1 %3320, %v3573_v5  }
 0x127   :  { %915 = vperm.xlu0 %3370, %v3593_v12  }
 0x128   :  { %v3892_v9 = vpop.permute.xlu0 %1792 }
 0x129   :  { %6504 = vst [vmem:[#allocation58_spill] sm:$0xff] %v3892_v9 }
 0x12a   :  { %1071 = vperm.xlu1 %3320, %v3589_v11   ;;  %v3895_v17 = vpop.permute.xlu1 %623 }
 0x12b   :  { %6505 = vst [vmem:[#allocation59_spill] sm:$0xff] %v3895_v17  ;;  %2192 = vperm.xlu0 %3370, %v3608_v15   ;;  %v6544_v17 = vmov 25  }
 0x12c   :  { %v3898_v14 = vpop.permute.xlu0 %1804 }
 0x12d   :  { %6506 = vst [vmem:[#allocation60_spill] sm:$0xff] %v3898_v14 }
 0x12e   :  { %3321 = vset.pattern.permute.xlu1 %v6174_v19  ;;  %v3901_v0 = vpop.permute.xlu1 %631 }
 0x12f   :  { %6507 = vst [vmem:[#allocation61_spill] sm:$0xff] %v3901_v0  ;;  %1103 = vperm.xlu1 %3321, %v3564_v2   ;;  %2204 = vperm.xlu0 %3370, %v3612_v16  }
 0x131   :  { %v3905_v49 = vpop.permute.xlu0 %547 }
 0x132   :  { %6508 = vst [vmem:[#allocation62_spill] sm:$0xff] %v3905_v49  ;;  %v3907_v9 = vpop.permute.xlu1 %635  ;;  %v6532_v49 = vmov 29  }
 0x133   :  { %1111 = vperm.xlu1 %3321, %v3589_v11   ;;  %3372 = vset.pattern.permute.xlu0 %v6509_v25 }
 0x134   :  { %947 = vperm.xlu0 %3372, %v3573_v5  }
 0x135   :  { %v3912_v14 = vpop.permute.xlu0 %1836 }
 0x136   :  { %6510 = vst [vmem:[#allocation63_spill] sm:$0xff] %v3912_v14 }
 0x137   :  { %1115 = vperm.xlu1 %3321, %v3593_v12   ;;  %v3915_v19 = vpop.permute.xlu1 %667 }
 0x138   :  { %6511 = vst [vmem:[#allocation64_spill] sm:$0xff] %v3915_v19  ;;  %2236 = vperm.xlu0 %3372, %v3595_v13  }
 0x13a   :  { %v3918_v0 = vpop.permute.xlu0 %583 }
 0x13b   :  { %6512 = vst [vmem:[#allocation65_spill] sm:$0xff] %v3918_v0  ;;  %3322 = vset.pattern.permute.xlu1 %v6184_v4  ;;  %v3921_v58 = vpop.permute.xlu1 %671 }
 0x13c   :  { %6513 = vst [vmem:[#allocation66_spill] sm:$0xff] %v3921_v58  ;;  %1147 = vperm.xlu1 %3322, %v3573_v5   ;;  %3374 = vset.pattern.permute.xlu0 %v6514_v52 }
 0x13d   :  { %983 = vperm.xlu0 %3374, %v3564_v2  }
 0x13e   :  { %v3926_v14 = vpop.permute.xlu0 %595 }
 0x140   :  { %1151 = vperm.xlu1 %3322, %v3589_v11   ;;  %v3929_v40 = vpop.permute.xlu1 %703 }
 0x141   :  { %6515 = vst [vmem:[#allocation67_spill] sm:$0xff] %v3929_v40  ;;  %995 = vperm.xlu0 %3374, %v3593_v12  }
 0x142   :  { %v3932_v53 = vpop.permute.xlu0 %1872 }
 0x143   :  { %6516 = vst [vmem:[#allocation68_spill] sm:$0xff] %v3932_v53 }
 0x144   :  { %3323 = vset.pattern.permute.xlu1 %v6189_v28  ;;  %v3935_v4 = vpop.permute.xlu1 %711  ;;  %v6521_v28 = vmov 22  }
 0x145   :  { %6517 = vst [vmem:[#allocation69_spill] sm:$0xff] %v3935_v4  ;;  %1183 = vperm.xlu1 %3323, %v3564_v2   ;;  %2272 = vperm.xlu0 %3374, %v3608_v15  }
 0x146   :  { %v3939_v58 = vpop.permute.xlu0 %1884 }
 0x147   :  { %6518 = vst [vmem:[#allocation70_spill] sm:$0xff] %v3939_v58 }
 0x148   :  { %v3941_v52 = vpop.permute.xlu1 %715 }
 0x149   :  { %1191 = vperm.xlu1 %3323, %v3589_v11   ;;  %2284 = vperm.xlu0 %3374, %v3612_v16  }
 0x14b   :  { %v3945_v30 = vpop.permute.xlu0 %627 }
 0x14c   :  { %6519 = vst [vmem:[#allocation71_spill] sm:$0xff] %v3945_v30  ;;  %v6204_v30 = vmov 28  }
 0x14d   :  { %1195 = vperm.xlu1 %3323, %v3593_v12   ;;  %v3948_v53 = vpop.permute.xlu1 %747  ;;  %3376 = vset.pattern.permute.xlu0 %v6521_v28  ;;  %v6526_v28 = vmov 23  }
 0x14e   :  { %6520 = vst [vmem:[#allocation72_spill] sm:$0xff] %v3948_v53  ;;  %1027 = vperm.xlu0 %3376, %v3573_v5  }
 0x14f   :  { %v3952_v4 = vpop.permute.xlu0 %1916 }
 0x150   :  { %6522 = vst [vmem:[#allocation73_spill] sm:$0xff] %v3952_v4 }
 0x151   :  { %3324 = vset.pattern.permute.xlu1 %v6198_v26  ;;  %v3955_v58 = vpop.permute.xlu1 %751 }
 0x152   :  { %6523 = vst [vmem:[#allocation74_spill] sm:$0xff] %v3955_v58  ;;  %1227 = vperm.xlu1 %3324, %v3573_v5   ;;  %2316 = vperm.xlu0 %3376, %v3595_v13  }
 0x154   :  { %v3959_v19 = vpop.permute.xlu0 %663 }
 0x155   :  { %6524 = vst [vmem:[#allocation75_spill] sm:$0xff] %v3959_v19  ;;  %v6543_v19 = vmov 30  }
 0x156   :  { %1231 = vperm.xlu1 %3324, %v3589_v11   ;;  %v3962_v53 = vpop.permute.xlu1 %783  ;;  %3378 = vset.pattern.permute.xlu0 %v6526_v28 }
 0x157   :  { %6525 = vst [vmem:[#allocation76_spill] sm:$0xff] %v3962_v53  ;;  %1063 = vperm.xlu0 %3378, %v3564_v2   ;;  %v6534_v53 = vmov 24  }
 0x158   :  { %v3966_v4 = vpop.permute.xlu0 %675 }
 0x15a   :  { %3325 = vset.pattern.permute.xlu1 %v6204_v30  ;;  %v3969_v26 = vpop.permute.xlu1 %791  ;;  %v58_v30 = vlaneseq }
 0x15b   :  { %6527 = vst [vmem:[#allocation77_spill] sm:$0xff] %v3969_v26  ;;  %1263 = vperm.xlu1 %3325, %v3564_v2   ;;  %1075 = vperm.xlu0 %3378, %v3593_v12  }
 0x15c   :  { %v3973_v58 = vpop.permute.xlu0 %1952  ;;  %v3990_v6 = vshrl.u32 %v58_v30, 7  ;;  %v32_v30 = vld [vmem:[%s6094_s0] sm:$0xf] }
 0x15d   :  { %6528 = vst [vmem:[#allocation78_spill] sm:$0xff] %v3973_v58 }
 0x15e   :  { %v3975_v56 = vpop.permute.xlu1 %795  ;;  %v4001_v61 = vsub.s32 1, %v3990_v6 }
 0x15f   :  { %1271 = vperm.xlu1 %3325, %v3589_v11   ;;  %2352 = vperm.xlu0 %3378, %v3608_v15  }
 0x160   :  { %v3979_v27 = vpop.permute.xlu0 %1964  ;;  %6537 = vst [vmem:[#allocation85_spill] sm:$0xff] %v4001_v61 }
 0x161   :  { %6529 = vst [vmem:[#allocation79_spill] sm:$0xff] %v3979_v27 }
 0x163   :  { %1275 = vperm.xlu1 %3325, %v3593_v12   ;;  %v3982_v45 = vpop.permute.xlu1 %827  ;;  %2364 = vperm.xlu0 %3378, %v3612_v16  }
 0x164   :  { %6530 = vst [vmem:[#allocation80_spill] sm:$0xff] %v3982_v45  ;;  %v3998_v45 = vsub.s32 0, %v3990_v6 }
 0x165   :  { %v3985_v26 = vpop.permute.xlu0 %707 }
 0x166   :  { %6531 = vst [vmem:[#allocation81_spill] sm:$0xff] %v3985_v26  ;;  %6536 = vst [vmem:[#allocation84_spill] sm:$0xff] %v3998_v45  ;;  %v61_v18 = vrot.slane %v32_v30, %v3998_v45 }
 0x167   :  { %3327 = vset.pattern.permute.xlu1 %v6532_v49  ;;  %v3988_v58 = vpop.permute.xlu1 %831  ;;  %3380 = vset.pattern.permute.xlu0 %v6534_v53  ;;  %v4012_v53 = vsub.s32 3, %v3990_v6 }
 0x168   :  { %6533 = vst [vmem:[#allocation82_spill] sm:$0xff] %v3988_v58  ;;  %1307 = vperm.xlu1 %3327, %v3573_v5   ;;  %1107 = vperm.xlu0 %3380, %v3573_v5   ;;  %v4006_v58 = vsub.s32 2, %v3990_v6 }
 0x169   :  { %v3995_v27 = vpop.permute.xlu0 %1996  ;;  %6540 = vst [vmem:[#allocation88_spill] sm:$0xff] %v4012_v53  ;;  %v107_v7 = vrot.slane %v32_v30, %v4012_v53 }
 0x16a   :  { %6535 = vst [vmem:[#allocation83_spill] sm:$0xff] %v3995_v27  ;;  %6539 = vst [vmem:[#allocation87_spill] sm:$0xff] %v4006_v58  ;;  %v65_v8 = vrot.slane %v32_v30, %v4006_v58 }
 0x16b   :  { %v4042_v54 = vrot.slane %v107_v7, %v4001_v61 }
 0x16c   :  { %v4003_v26 = vpop.permute.xlu1 %863  ;;  %1311 = vperm.xlu1 %3327, %v3589_v11   ;;  %2396 = vperm.xlu0 %3380, %v3595_v13  }
 0x16d   :  { %6538 = vst [vmem:[#allocation86_spill] sm:$0xff] %v4003_v26  ;;  %v103_v26 = vrot.slane %v32_v30, %v4001_v61  ;;  %v4039_v30 = vrot.slane %v65_v8, %v3998_v45  ;;  %6548 = vst [vmem:[#allocation94_spill] sm:$0xff] %v4042_v54  ;;  %v119_v8 = vmul.f32 %v4042_v54, %v3713_v42 }
 0x16e   :  { %v4016_v27 = vpop.permute.xlu0 %743 }
 0x16f   :  { %6541 = vst [vmem:[#allocation89_spill] sm:$0xff] %v4016_v27  ;;  %v4031_v27 = vrot.slane %v61_v18, %v3998_v45  ;;  %v4034_v31 = vrot.slane %v103_v26, %v4001_v61  ;;  %6547 = vst [vmem:[#allocation93_spill] sm:$0xff] %v4039_v30  ;;  %v77_v26 = vmul.f32 %v4039_v30, %v3687_v33 }
 0x170   :  { %v4020_v40 = vpop.permute.xlu1 %871  ;;  %3328 = vset.pattern.permute.xlu1 %v6543_v19  ;;  %3382 = vset.pattern.permute.xlu0 %v6544_v17 }
 0x171   :  { %6542 = vst [vmem:[#allocation90_spill] sm:$0xff] %v4020_v40  ;;  %1343 = vperm.xlu1 %3328, %v3564_v2   ;;  %1143 = vperm.xlu0 %3382, %v3564_v2   ;;  %6545 = vst [vmem:[#allocation91_spill] sm:$0xff] %v4031_v27  ;;  %v76_v17 = vmul.f32 %v4031_v27, %v3687_v33  ;;  %v118_v0 = vmul.f32 %v4034_v31, %v3713_v42  ;;  %v6553_v33 = vmov 31  }
 0x172   :  { %v4027_v28 = vpop.permute.xlu0 %755  ;;  %6546 = vst [vmem:[#allocation92_spill] sm:$0xff] %v4034_v31  ;;  %v127_v57 = vadd.f32 %v119_v8, %v77_v26  ;;  %v6560_v8 = vmov 26  }
 0x173   :  { %v126_v43 = vadd.f32 %v118_v0, %v76_v17 }
 0x174   :  { %v4036_v40 = vpop.permute.xlu1 %875  ;;  %v4067_v21 = vmax.f32 %v127_v57, 0.0 }
 0x175   :  { %1351 = vperm.xlu1 %3328, %v3589_v11   ;;  %1155 = vperm.xlu0 %3382, %v3593_v12  }
 0x176   :  { %v4049_v18 = vpop.permute.xlu0 %2032  ;;  %v4085_v57 = vrot.slane %v4067_v21, %v3998_v45  ;;  %v4089_v26 = vrot.slane %v4067_v21, %v4001_v61 }
 0x177   :  { %6549 = vst [vmem:[#allocation95_spill] sm:$0xff] %v4049_v18  ;;  %v4064_v18 = vmax.f32 %v126_v43, 0.0 }
 0x178   :  { %6558 = vst [vmem:[#allocation103_spill] sm:$0xff] %v4085_v57  ;;  %6559 = vst [vmem:[#allocation104_spill] sm:$0xff] %v4089_v26  ;;  %v181_v1 = vmul.f32 %v4085_v57, %v3703_v39 }
 0x179   :  { %v4056_v7 = vpop.permute.xlu1 %907  ;;  %1355 = vperm.xlu1 %3328, %v3593_v12   ;;  %2432 = vperm.xlu0 %3382, %v3608_v15   ;;  %v4075_v17 = vrot.slane %v4064_v18, %v3998_v45  ;;  %v4079_v42 = vrot.slane %v4064_v18, %v4001_v61 }
 0x17a   :  { %6550 = vst [vmem:[#allocation96_spill] sm:$0xff] %v4056_v7  ;;  %v4059_v25 = vpop.permute.xlu0 %2044 }
 0x17b   :  { %6551 = vst [vmem:[#allocation97_spill] sm:$0xff] %v4059_v25  ;;  %6555 = vst [vmem:[#allocation100_spill] sm:$0xff] %v4075_v17  ;;  %v4097_v25 = vrot.slane %v4064_v18, %v4006_v58  ;;  %v212_v7 = vmul.f32 %v4079_v42, %v3733_v50 }
 0x17c   :  { %6556 = vst [vmem:[#allocation101_spill] sm:$0xff] %v4079_v42 }
 0x17d   :  { %v4062_v41 = vpop.permute.xlu1 %911  ;;  %3332 = vset.pattern.permute.xlu1 %v6553_v33  ;;  %2444 = vperm.xlu0 %3382, %v3612_v16   ;;  %6562 = vst [vmem:[#allocation106_spill] sm:$0xff] %v4097_v25 }
 0x17e   :  { %6552 = vst [vmem:[#allocation98_spill] sm:$0xff] %v4062_v41  ;;  %1387 = vperm.xlu1 %3332, %v3573_v5  }
 0x17f   :  { %v4071_v0 = vpop.permute.xlu0 %787 }
 0x180   :  { %6554 = vst [vmem:[#allocation99_spill] sm:$0xff] %v4071_v0  ;;  %v4104_v0 = vrot.slane %v4067_v21, %v4006_v58 }
 0x181   :  { %3384 = vset.pattern.permute.xlu0 %v6560_v8  ;;  %v4114_v8 = vrot.slane %v4064_v18, %v4012_v53 }
 0x182   :  { %v4081_v43 = vpop.permute.xlu1 %943  ;;  %1391 = vperm.xlu1 %3332, %v3589_v11   ;;  %1187 = vperm.xlu0 %3384, %v3573_v5   ;;  %6563 = vst [vmem:[#allocation107_spill] sm:$0xff] %v4104_v0  ;;  %v180_v11 = vmul.f32 %v4075_v17, %v3703_v39  ;;  %v253_v38 = vmul.f32 %v4104_v0, %v3737_v51  ;;  %v4138_v0 = vsub.s32 4, %v3990_v6 }
 0x183   :  { %6557 = vst [vmem:[#allocation102_spill] sm:$0xff] %v4081_v43  ;;  %v4093_v41 = vpop.permute.xlu0 %2076  ;;  %v213_v43 = vmul.f32 %v4089_v26, %v3733_v50  ;;  %6564 = vst [vmem:[#allocation108_spill] sm:$0xff] %v4114_v8  ;;  %v4124_v50 = vrot.slane %v4067_v21, %v4012_v53  ;;  %v292_v23 = vmul.f32 %v4114_v8, %v3773_v3  ;;  %v4185_v26 = vsub.s32 6, %v3990_v6 }
 0x184   :  { %6561 = vst [vmem:[#allocation105_spill] sm:$0xff] %v4093_v41  ;;  %v252_v41 = vmul.f32 %v4097_v25, %v3737_v51  ;;  %v220_v22 = vadd.f32 %v212_v7, %v180_v11  ;;  %6569 = vst [vmem:[#allocation112_spill] sm:$0xff] %v4138_v0  ;;  %v4141_v7 = vsub.s32 5, %v3990_v6  ;;  %v78_v8 = vmul.f32 %v4031_v27, %v3693_v35 }
 0x185   :  { %6566 = vst [vmem:[#allocation110_spill] sm:$0xff] %v4124_v50  ;;  %v221_v39 = vadd.f32 %v213_v43, %v181_v1  ;;  %v293_v51 = vmul.f32 %v4124_v50, %v3773_v3  ;;  %v4149_v1 = vrot.slane %v4064_v18, %v4138_v0  ;;  %v121_v50 = vmul.f32 %v4042_v54, %v3677_v29 }
 0x186   :  { %v4116_v37 = vpop.permute.xlu1 %951  ;;  %3333 = vset.pattern.permute.xlu1 %v6567_v36  ;;  %2476 = vperm.xlu0 %3384, %v3595_v13   ;;  %v260_v62 = vadd.f32 %v252_v41, %v220_v22  ;;  %6570 = vst [vmem:[#allocation113_spill] sm:$0xff] %v4141_v7  ;;  %v4153_v22 = vrot.slane %v4064_v18, %v4141_v7  ;;  %v6573_v41 = vmov 27   ;;  %6577 = vst [vmem:[#allocation119_spill] sm:$0xff] %v4185_v26 }
 0x187   :  { %6565 = vst [vmem:[#allocation109_spill] sm:$0xff] %v4116_v37  ;;  %1437 = vperm.xlu1 %3333, %v3608_v15   ;;  %v261_v25 = vadd.f32 %v253_v38, %v221_v39  ;;  %6571 = vst [vmem:[#allocation114_spill] sm:$0xff] %v4149_v1  ;;  %v4163_v38 = vrot.slane %v4067_v21, %v4138_v0 }
 0x188   :  { %v4131_v37 = vpop.permute.xlu0 %823  ;;  %v300_v3 = vadd.f32 %v292_v23, %v260_v62  ;;  %6572 = vst [vmem:[#allocation115_spill] sm:$0xff] %v4153_v22  ;;  %v4167_v23 = vrot.slane %v4067_v21, %v4141_v7  ;;  %v120_v62 = vmul.f32 %v4034_v31, %v3677_v29 }
 0x189   :  { %6568 = vst [vmem:[#allocation111_spill] sm:$0xff] %v4131_v37  ;;  %v79_v37 = vmul.f32 %v4039_v30, %v3693_v35  ;;  %6574 = vst [vmem:[#allocation116_spill] sm:$0xff] %v4163_v38  ;;  %v301_v39 = vadd.f32 %v293_v51, %v261_v25  ;;  %v372_v35 = vmul.f32 %v4153_v22, %v3807_v20 }
 0x18a   :  { %v4143_v11 = vpop.permute.xlu1 %955  ;;  %3386 = vset.pattern.permute.xlu0 %v6573_v41  ;;  %6575 = vst [vmem:[#allocation117_spill] sm:$0xff] %v4167_v23  ;;  %v332_v41 = vmul.f32 %v4149_v1, %v3771_v63  ;;  %v333_v25 = vmul.f32 %v4163_v38, %v3771_v63  ;;  %v373_v51 = vmul.f32 %v4167_v23, %v3807_v20  ;;  %v4188_v1 = vsub.s32 7, %v3990_v6 }
 0x18b   :  { %1447 = vperm.xlu1 %3333, %v4135_v59   ;;  %1223 = vperm.xlu0 %3386, %v3564_v2   ;;  %v128_v2 = vadd.f32 %v120_v62, %v78_v8  ;;  %v129_v29 = vadd.f32 %v121_v50, %v79_v37  ;;  %v4196_v20 = vrot.slane %v4064_v18, %v4185_v26 }
 0x18c   :  { %v4157_v43 = vpop.permute.xlu0 %835  ;;  %v340_v42 = vadd.f32 %v332_v41, %v300_v3  ;;  %6578 = vst [vmem:[#allocation120_spill] sm:$0xff] %v4188_v1  ;;  %v341_v47 = vadd.f32 %v333_v25, %v301_v39  ;;  %v4200_v8 = vrot.slane %v4064_v18, %v4188_v1  ;;  %v4204_v6 = vrot.slane %v4067_v21, %v4185_v26 }
 0x18d   :  { %6580 = vst [vmem:[#allocation122_spill] sm:$0xff] %v4196_v20  ;;  %v4208_v37 = vrot.slane %v4067_v21, %v4188_v1  ;;  %v4212_v41 = vmax.f32 %v128_v2, 0.0  ;;  %v6585_v39 = vmov 1  }
 0x18e   :  { %v380_v63 = vadd.f32 %v372_v35, %v340_v42  ;;  %6581 = vst [vmem:[#allocation123_spill] sm:$0xff] %v4200_v8  ;;  %6582 = vst [vmem:[#allocation124_spill] sm:$0xff] %v4204_v6  ;;  %v381_v3 = vadd.f32 %v373_v51, %v341_v47  ;;  %v412_v42 = vmul.f32 %v4196_v20, %v3805_v48  ;;  %v4221_v35 = vmax.f32 %v129_v29, 0.0 }
 0x18f   :  { %v4182_v46 = vpop.permute.xlu1 %987  ;;  %1452 = vperm.xlu1 %3333, %v3612_v16   ;;  %1235 = vperm.xlu0 %3386, %v3593_v12   ;;  %6583 = vst [vmem:[#allocation125_spill] sm:$0xff] %v4208_v37  ;;  %v452_v18 = vmul.f32 %v4200_v8, %v3845_v60  ;;  %v413_v21 = vmul.f32 %v4204_v6, %v3805_v48 }
 0x190   :  { %6576 = vst [vmem:[#allocation118_spill] sm:$0xff] %v4182_v46  ;;  %v4191_v22 = vpop.permute.xlu0 %2112  ;;  %v453_v47 = vmul.f32 %v4208_v37, %v3845_v60  ;;  %v420_v25 = vadd.f32 %v412_v42, %v380_v63  ;;  %v4231_v2 = vrot.slane %v4212_v41, %v3998_v45  ;;  %v4235_v29 = vrot.slane %v4212_v41, %v4001_v61 }
 0x191   :  { %6579 = vst [vmem:[#allocation121_spill] sm:$0xff] %v4191_v22  ;;  %v421_v51 = vadd.f32 %v413_v21, %v381_v3  ;;  %v4241_v48 = vrot.slane %v4221_v35, %v3998_v45  ;;  %v4245_v63 = vrot.slane %v4221_v35, %v4001_v61  ;;  %v6595_v46 = vmov 2  }
 0x192   :  { %6587 = vst [vmem:[#allocation128_spill] sm:$0xff] %v4231_v2  ;;  %6588 = vst [vmem:[#allocation129_spill] sm:$0xff] %v4235_v29  ;;  %v492_v42 = vmul.f32 %v4231_v2, %v3838_v55 }
 0x193   :  { %v4210_v50 = vpop.permute.xlu1 %991  ;;  %3335 = vset.pattern.permute.xlu1 %v6585_v39  ;;  %2512 = vperm.xlu0 %3386, %v3608_v15   ;;  %v460_v39 = vadd.f32 %v452_v18, %v420_v25  ;;  %6590 = vst [vmem:[#allocation131_spill] sm:$0xff] %v4241_v48  ;;  %v461_v60 = vadd.f32 %v453_v47, %v421_v51  ;;  %6591 = vst [vmem:[#allocation132_spill] sm:$0xff] %v4245_v63 }
 0x194   :  { %6584 = vst [vmem:[#allocation126_spill] sm:$0xff] %v4210_v50  ;;  %v4219_v62 = vpop.permute.xlu0 %2124  ;;  %1476 = vperm.xlu1 %3335, %v3595_v13   ;;  %v532_v18 = vmul.f32 %v4235_v29, %v3885_v10  ;;  %v493_v21 = vmul.f32 %v4241_v48, %v3838_v55  ;;  %v533_v47 = vmul.f32 %v4245_v63, %v3885_v10  ;;  %v6594_v50 = vmov 28  }
 0x195   :  { %6586 = vst [vmem:[#allocation127_spill] sm:$0xff] %v4219_v62  ;;  %v500_v25 = vadd.f32 %v492_v42, %v460_v39  ;;  %v4271_v55 = vrot.slane %v4212_v41, %v4012_v53  ;;  %v4277_v10 = vrot.slane %v4221_v35, %v4006_v58  ;;  %v4281_v39 = vrot.slane %v4221_v35, %v4012_v53 }
 0x196   :  { %v501_v22 = vadd.f32 %v493_v21, %v461_v60 }
 0x197   :  { %2524 = vperm.xlu0 %3386, %v3612_v16   ;;  %6598 = vst [vmem:[#allocation137_spill] sm:$0xff] %v4271_v55  ;;  %v540_v29 = vadd.f32 %v532_v18, %v500_v25  ;;  %6599 = vst [vmem:[#allocation138_spill] sm:$0xff] %v4277_v10  ;;  %v612_v21 = vmul.f32 %v4271_v55, %v3926_v14  ;;  %v613_v25 = vmul.f32 %v4281_v39, %v3926_v14 }
 0x198   :  { %v4237_v62 = vpop.permute.xlu1 %1023  ;;  %1480 = vperm.xlu1 %3335, %v4135_v59   ;;  %6600 = vst [vmem:[#allocation139_spill] sm:$0xff] %v4281_v39  ;;  %v541_v60 = vadd.f32 %v533_v47, %v501_v22 }
 0x199   :  { %6589 = vst [vmem:[#allocation130_spill] sm:$0xff] %v4237_v62  ;;  %v4249_v3 = vpop.permute.xlu0 %867  ;;  %v4267_v62 = vrot.slane %v4212_v41, %v4006_v58 }
 0x19a   :  { %6592 = vst [vmem:[#allocation133_spill] sm:$0xff] %v4249_v3 }
 0x19b   :  { %3388 = vset.pattern.permute.xlu0 %v6594_v50  ;;  %6597 = vst [vmem:[#allocation136_spill] sm:$0xff] %v4267_v62  ;;  %v572_v42 = vmul.f32 %v4267_v62, %v3874_v44  ;;  %v80_v50 = vmul.f32 %v4031_v27, %v3662_v24 }
 0x19c   :  { %v4259_v51 = vpop.permute.xlu1 %1031  ;;  %3337 = vset.pattern.permute.xlu1 %v6595_v46  ;;  %1267 = vperm.xlu0 %3388, %v3573_v5   ;;  %v573_v5 = vmul.f32 %v4277_v10, %v3874_v44  ;;  %v4305_v44 = vrot.slane %v4212_v41, %v4141_v7 }
 0x19d   :  { %6593 = vst [vmem:[#allocation134_spill] sm:$0xff] %v4259_v51  ;;  %v4263_v3 = vpop.permute.xlu0 %2156  ;;  %1512 = vperm.xlu1 %3337, %v3608_v15   ;;  %v580_v46 = vadd.f32 %v572_v42, %v540_v29  ;;  %v4301_v51 = vrot.slane %v4212_v41, %v4138_v0  ;;  %v4311_v29 = vrot.slane %v4221_v35, %v4138_v0 }
 0x19e   :  { %6596 = vst [vmem:[#allocation135_spill] sm:$0xff] %v4263_v3  ;;  %v581_v47 = vadd.f32 %v573_v5, %v541_v60  ;;  %v122_v3 = vmul.f32 %v4034_v31, %v3683_v32  ;;  %6603 = vst [vmem:[#allocation142_spill] sm:$0xff] %v4305_v44  ;;  %v4315_v60 = vrot.slane %v4221_v35, %v4141_v7 }
 0x19f   :  { %6602 = vst [vmem:[#allocation141_spill] sm:$0xff] %v4301_v51  ;;  %v620_v14 = vadd.f32 %v612_v21, %v580_v46  ;;  %6604 = vst [vmem:[#allocation143_spill] sm:$0xff] %v4311_v29  ;;  %v652_v46 = vmul.f32 %v4301_v51, %v3907_v9 }
 0x1a0   :  { %v4287_v18 = vpop.permute.xlu1 %1035  ;;  %2556 = vperm.xlu0 %3388, %v3595_v13   ;;  %v123_v13 = vmul.f32 %v4042_v54, %v3683_v32  ;;  %6605 = vst [vmem:[#allocation144_spill] sm:$0xff] %v4315_v60  ;;  %v621_v42 = vadd.f32 %v613_v25, %v581_v47  ;;  %v692_v32 = vmul.f32 %v4305_v44, %v3966_v4 }
 0x1a1   :  { %1520 = vperm.xlu1 %3337, %v4135_v59   ;;  %v81_v25 = vmul.f32 %v4039_v30, %v3662_v24  ;;  %v653_v47 = vmul.f32 %v4311_v29, %v3907_v9  ;;  %v130_v27 = vadd.f32 %v122_v3, %v80_v50  ;;  %v660_v54 = vadd.f32 %v652_v46, %v620_v14  ;;  %v4358_v14 = vld [vmem:[#allocation2 + $0x28] sm:$0xff] }
 0x1a2   :  { %v4295_v22 = vpop.permute.xlu0 %903  ;;  %v4344_v24 = vrot.slane %v4212_v41, %v4188_v1  ;;  %v6610_v30 = vmov 3   ;;  %v4355_v50 = vrot.slane %v4221_v35, %v4188_v1 }
 0x1a3   :  { %6601 = vst [vmem:[#allocation140_spill] sm:$0xff] %v4295_v22  ;;  %v131_v31 = vadd.f32 %v123_v13, %v81_v25  ;;  %v661_v22 = vadd.f32 %v653_v47, %v621_v42  ;;  %v700_v9 = vadd.f32 %v692_v32, %v660_v54  ;;  %v4361_v54 = vmax.f32 %v130_v27, 0.0  ;;  %v4377_v32 = vld [vmem:[#allocation2 + $0x38] sm:$0xff] }
 0x1a4   :  { %3390 = vset.pattern.permute.xlu0 %v6532_v49  ;;  %6609 = vst [vmem:[#allocation148_spill] sm:$0xff] %v4344_v24  ;;  %6613 = vst [vmem:[#allocation151_spill] sm:$0xff] %v4355_v50  ;;  %v772_v13 = vmul.f32 %v4344_v24, %v4027_v28 }
 0x1a5   :  { %v4317_v5 = vpop.permute.xlu1 %1067  ;;  %1524 = vperm.xlu1 %3337, %v3612_v16   ;;  %1315 = vperm.xlu0 %3390, %v3593_v12   ;;  %v4340_v16 = vrot.slane %v4212_v41, %v4185_v26  ;;  %v4351_v12 = vrot.slane %v4221_v35, %v4185_v26  ;;  %v4367_v42 = vmax.f32 %v131_v31, 0.0  ;;  %v4383_v31 = vrot.slane %v4361_v54, %v3998_v45 }
 0x1a6   :  { %6606 = vst [vmem:[#allocation145_spill] sm:$0xff] %v4317_v5  ;;  %v4327_v21 = vpop.permute.xlu0 %915  ;;  %v693_v5 = vmul.f32 %v4315_v60, %v3966_v4 }
 0x1a7   :  { %6608 = vst [vmem:[#allocation147_spill] sm:$0xff] %v4340_v16  ;;  %6612 = vst [vmem:[#allocation150_spill] sm:$0xff] %v4351_v12  ;;  %v732_v41 = vmul.f32 %v4340_v16, %v3941_v52  ;;  %v733_v35 = vmul.f32 %v4351_v12, %v3941_v52  ;;  %v4387_v52 = vrot.slane %v4361_v54, %v4001_v61 }
 0x1a8   :  { %v701_v3 = vadd.f32 %v693_v5, %v661_v22  ;;  %6616 = vst [vmem:[#allocation154_spill] sm:$0xff] %v4383_v31  ;;  %v4391_v25 = vrot.slane %v4367_v42, %v3998_v45  ;;  %v4395_v47 = vrot.slane %v4367_v42, %v4001_v61 }
 0x1a9   :  { %v4336_v49 = vpop.permute.xlu1 %1071  ;;  %3340 = vset.pattern.permute.xlu1 %v6610_v30  ;;  %2592 = vperm.xlu0 %3390, %v3608_v15   ;;  %v773_v15 = vmul.f32 %v4355_v50, %v4027_v28  ;;  %v740_v22 = vadd.f32 %v732_v41, %v700_v9  ;;  %6617 = vst [vmem:[#allocation155_spill] sm:$0xff] %v4387_v52 }
 0x1aa   :  { %6607 = vst [vmem:[#allocation146_spill] sm:$0xff] %v4336_v49  ;;  %v4347_v4 = vpop.permute.xlu0 %2192  ;;  %1556 = vperm.xlu1 %3340, %v4358_v14   ;;  %v741_v27 = vadd.f32 %v733_v35, %v701_v3  ;;  %6618 = vst [vmem:[#allocation156_spill] sm:$0xff] %v4391_v25  ;;  %v812_v3 = vmul.f32 %v4383_v31, %v3975_v56  ;;  %v852_v41 = vmul.f32 %v4387_v52, %v4157_v43 }
 0x1ab   :  { %6611 = vst [vmem:[#allocation149_spill] sm:$0xff] %v4347_v4  ;;  %v780_v28 = vadd.f32 %v772_v13, %v740_v22  ;;  %6619 = vst [vmem:[#allocation157_spill] sm:$0xff] %v4395_v47  ;;  %v813_v13 = vmul.f32 %v4391_v25, %v3975_v56  ;;  %v853_v22 = vmul.f32 %v4395_v47, %v4157_v43 }
 0x1ac   :  { %v781_v9 = vadd.f32 %v773_v15, %v741_v27  ;;  %v4412_v27 = vld [vmem:[#allocation2 + $0x20] sm:$0xff]  ;;  %v4417_v56 = vrot.slane %v4361_v54, %v4006_v58  ;;  %v4421_v43 = vrot.slane %v4361_v54, %v4012_v53 }
 0x1ad   :  { %2604 = vperm.xlu0 %3390, %v4377_v32   ;;  %v820_v15 = vadd.f32 %v812_v3, %v780_v28  ;;  %v4427_v28 = vrot.slane %v4367_v42, %v4006_v58  ;;  %v4431_v3 = vrot.slane %v4367_v42, %v4012_v53  ;;  %v4449_v53 = vrot.slane %v4361_v54, %v4138_v0 }
 0x1ae   :  { %v4373_v5 = vpop.permute.xlu1 %1103  ;;  %v4375_v46 = vpop.permute.xlu0 %2204  ;;  %1560 = vperm.xlu1 %3340, %v4135_v59   ;;  %6623 = vst [vmem:[#allocation160_spill] sm:$0xff] %v4417_v56  ;;  %6624 = vst [vmem:[#allocation161_spill] sm:$0xff] %v4421_v43  ;;  %v892_v49 = vmul.f32 %v4417_v56, %v4036_v40 }
 0x1af   :  { %6614 = vst [vmem:[#allocation152_spill] sm:$0xff] %v4373_v5  ;;  %6615 = vst [vmem:[#allocation153_spill] sm:$0xff] %v4375_v46  ;;  %v6621_v46 = vmov 4  }
 0x1b0   :  { %6626 = vst [vmem:[#allocation163_spill] sm:$0xff] %v4427_v28  ;;  %6627 = vst [vmem:[#allocation164_spill] sm:$0xff] %v4431_v3 }
 0x1b1   :  { %3393 = vset.pattern.permute.xlu0 %v6543_v19  ;;  %v860_v19 = vadd.f32 %v852_v41, %v820_v15  ;;  %v893_v41 = vmul.f32 %v4427_v28, %v4036_v40  ;;  %v933_v15 = vmul.f32 %v4431_v3, %v4327_v21  ;;  %6630 = vst [vmem:[#allocation167_spill] sm:$0xff] %v4449_v53 }
 0x1b2   :  { %v4401_v35 = vpop.permute.xlu1 %1111  ;;  %3341 = vset.pattern.permute.xlu1 %v6621_v46  ;;  %2636 = vperm.xlu0 %3393, %v4358_v14   ;;  %v4456_v40 = vrot.slane %v4367_v42, %v4138_v0 }
 0x1b3   :  { %6620 = vst [vmem:[#allocation158_spill] sm:$0xff] %v4401_v35  ;;  %v4409_v4 = vpop.permute.xlu0 %947  ;;  %1592 = vperm.xlu1 %3341, %v4412_v27   ;;  %v821_v35 = vadd.f32 %v813_v13, %v781_v9 }
 0x1b4   :  { %6622 = vst [vmem:[#allocation159_spill] sm:$0xff] %v4409_v4  ;;  %v932_v4 = vmul.f32 %v4421_v43, %v4327_v21  ;;  %6632 = vst [vmem:[#allocation169_spill] sm:$0xff] %v4456_v40 }
 0x1b5   :  { %v861_v9 = vadd.f32 %v853_v22, %v821_v35  ;;  %v900_v35 = vadd.f32 %v892_v49, %v860_v19  ;;  %v972_v19 = vmul.f32 %v4449_v53, %v4143_v11  ;;  %v973_v49 = vmul.f32 %v4456_v40, %v4143_v11 }
 0x1b6   :  { %v4423_v46 = vpop.permute.xlu1 %1115  ;;  %3394 = vset.pattern.permute.xlu0 %v6553_v33 }
 0x1b7   :  { %6625 = vst [vmem:[#allocation162_spill] sm:$0xff] %v4423_v46  ;;  %v4433_v13 = vpop.permute.xlu0 %2236  ;;  %1600 = vperm.xlu1 %3341, %v4135_v59   ;;  %v3433_v46 = vld [vmem:[#allocation2 + $0x18] sm:$0xff]  ;;  %v901_v22 = vadd.f32 %v893_v41, %v861_v9  ;;  %v940_v58 = vadd.f32 %v932_v4, %v900_v35  ;;  %v4465_v4 = vrot.slane %v4361_v54, %v4141_v7  ;;  %v4476_v41 = vld [vmem:[%s6097_s3] sm:$0x3] }
 0x1b8   :  { %6628 = vst [vmem:[#allocation165_spill] sm:$0xff] %v4433_v13  ;;  %1395 = vperm.xlu0 %3394, %v3433_v46   ;;  %v4469_v46 = vrot.slane %v4367_v42, %v4141_v7 }
 0x1b9   :  { %v941_v21 = vadd.f32 %v933_v15, %v901_v22  ;;  %6633 = vst [vmem:[#allocation170_spill] sm:$0xff] %v4465_v4  ;;  %v6636_v15 = vmov 5   ;;  %v980_v22 = vadd.f32 %v972_v19, %v940_v58  ;;  %v6642_v19 = vld [vmem:[#allocation19_spill] sm:$0xff] }
 0x1ba   :  { %6634 = vst [vmem:[#allocation171_spill] sm:$0xff] %v4469_v46 }
 0x1bb   :  { %v4445_v13 = vpop.permute.xlu1 %1147  ;;  %1604 = vperm.xlu1 %3341, %v4377_v32   ;;  %v981_v11 = vadd.f32 %v973_v49, %v941_v21  ;;  %v6641_v21 = vmov 6   ;;  %v6643_v49 = vld [vmem:[#allocation101_spill] sm:$0xff] }
 0x1bc   :  { %6629 = vst [vmem:[#allocation166_spill] sm:$0xff] %v4445_v13  ;;  %v4452_v5 = vpop.permute.xlu0 %983  ;;  %2672 = vperm.xlu0 %3394, %v4412_v27  }
 0x1bd   :  { %6631 = vst [vmem:[#allocation168_spill] sm:$0xff] %v4452_v5  ;;  %v6651_v5 = vld [vmem:[#allocation108_spill] sm:$0xff] }
 0x1bf   :  { %v4471_v9 = vpop.permute.xlu1 %1151  ;;  %3343 = vset.pattern.permute.xlu1 %v6636_v15 }
 0x1c0   :  { %6635 = vst [vmem:[#allocation172_spill] sm:$0xff] %v4471_v9  ;;  %v996_v35 = vpop.permute.xlu0 %995  ;;  %3396 = vset.pattern.permute.xlu0 %v6567_v36  ;;  %1636 = vperm.xlu1 %3343, %v4358_v14  }
 0x1c1   :  { %v1012_v13 = vmul.f32 %v4465_v4, %v996_v35  ;;  %v1013_v7 = vmul.f32 %v4469_v46, %v996_v35  ;;  %2722 = vperm.xlu0 %3396, %v4476_v41   ;;  %v206_v35 = vmul.f32 %v6643_v49, %v6642_v19  ;;  %v6649_v46 = vld [vmem:[#allocation107_spill] sm:$0xff]  ;;  %v6650_v4 = vld [vmem:[#allocation29_spill] sm:$0xff] }
 0x1c2   :  { %v286_v40 = vmul.f32 %v6651_v5, %v6650_v4 }
 0x1c3   :  { %v1020_v9 = vadd.f32 %v1012_v13, %v980_v22  ;;  %v1021_v0 = vadd.f32 %v1013_v7, %v981_v11  ;;  %v174_v7 = vmul.f32 %v4075_v17, %v3691_v34  ;;  %v175_v13 = vmul.f32 %v4085_v57, %v3691_v34  ;;  %v6647_v34 = vld [vmem:[#allocation18_spill] sm:$0xff] }
 0x1c4   :  { %v4484_v61 = vpop.permute.xlu1 %1183  ;;  %v4486_v45 = vpop.permute.xlu0 %2272  ;;  %1640 = vperm.xlu1 %3343, %v4135_v59  }
 0x1c5   :  { %6637 = vst [vmem:[#allocation173_spill] sm:$0xff] %v4484_v61  ;;  %6638 = vst [vmem:[#allocation174_spill] sm:$0xff] %v4486_v45  ;;  %3397 = vset.pattern.permute.xlu0 %v6610_v30  ;;  %v6644_v30 = vld [vmem:[#allocation104_spill] sm:$0xff]  ;;  %v214_v45 = vadd.f32 %v206_v35, %v174_v7  ;;  %v6655_v35 = vmov 9  }
 0x1c6   :  { %1564 = vperm.xlu0 %3397, %v4377_v32   ;;  %v207_v22 = vmul.f32 %v6644_v30, %v6642_v19  ;;  %v247_v19 = vmul.f32 %v6649_v46, %v6647_v34 }
 0x1c8   :  { %v4491_v36 = vpop.permute.xlu1 %1191  ;;  %v4493_v58 = vpop.permute.xlu0 %2284  ;;  %3345 = vset.pattern.permute.xlu1 %v6641_v21  ;;  %v215_v15 = vadd.f32 %v207_v22, %v175_v13 }
 0x1c9   :  { %6639 = vst [vmem:[#allocation175_spill] sm:$0xff] %v4491_v36  ;;  %6640 = vst [vmem:[#allocation176_spill] sm:$0xff] %v4493_v58  ;;  %1672 = vperm.xlu1 %3345, %v4412_v27   ;;  %v6648_v36 = vld [vmem:[#allocation106_spill] sm:$0xff] }
 0x1ca   :  { %2768 = vperm.xlu0 %3397, %v4476_v41   ;;  %v246_v61 = vmul.f32 %v6648_v36, %v6647_v34  ;;  %v255_v13 = vadd.f32 %v247_v19, %v215_v15  ;;  %v6657_v34 = vmov 7   ;;  %v4548_v19 = vrot.slane %v4367_v42, %v4185_v26 }
 0x1cc   :  { %v4506_v11 = vpop.permute.xlu1 %1195 }
 0x1cd   :  { %6645 = vst [vmem:[#allocation19_spill] sm:$0xff] %v4506_v11  ;;  %v4508_v58 = vpop.permute.xlu0 %1027  ;;  %1680 = vperm.xlu1 %3345, %v4135_v59   ;;  %v6652_v11 = vld [vmem:[#allocation110_spill] sm:$0xff] }
 0x1ce   :  { %6646 = vst [vmem:[#allocation177_spill] sm:$0xff] %v4508_v58  ;;  %3402 = vset.pattern.permute.xlu0 %v6641_v21  ;;  %v287_v58 = vmul.f32 %v6652_v11, %v6650_v4  ;;  %v254_v21 = vadd.f32 %v246_v61, %v214_v45  ;;  %v6659_v4 = vld [vmem:[#allocation27_spill] sm:$0xff]  ;;  %v6661_v45 = vld [vmem:[#allocation37_spill] sm:$0xff] }
 0x1cf   :  { %2816 = vperm.xlu0 %3402, %v4476_v41   ;;  %v6662_v61 = vld [vmem:[#allocation115_spill] sm:$0xff]  ;;  %6664 = vst [vmem:[#allocation37_spill] sm:$0xff] %v4548_v19 }
 0x1d0   :  { %v294_v22 = vadd.f32 %v286_v40, %v254_v21  ;;  %v295_v3 = vadd.f32 %v287_v58, %v255_v13  ;;  %v366_v15 = vmul.f32 %v6662_v61, %v6661_v45  ;;  %v367_v40 = vmul.f32 %v4167_v23, %v6661_v45 }
 0x1d1   :  { %v4521_v53 = vpop.permute.xlu1 %1227  ;;  %v4523_v7 = vpop.permute.xlu0 %2316  ;;  %1684 = vperm.xlu1 %3345, %v4377_v32   ;;  %v4544_v58 = vrot.slane %v4361_v54, %v4185_v26  ;;  %v1053_v45 = vmul.f32 %v4548_v19, %v4287_v18  ;;  %v6669_v19 = vld [vmem:[#allocation35_spill] sm:$0xff] }
 0x1d2   :  { %6653 = vst [vmem:[#allocation18_spill] sm:$0xff] %v4521_v53  ;;  %6654 = vst [vmem:[#allocation29_spill] sm:$0xff] %v4523_v7  ;;  %v6660_v53 = vld [vmem:[#allocation114_spill] sm:$0xff]  ;;  %v327_v7 = vmul.f32 %v4163_v38, %v6659_v4 }
 0x1d3   :  { %3405 = vset.pattern.permute.xlu0 %v6655_v35  ;;  %v326_v56 = vmul.f32 %v6660_v53, %v6659_v4  ;;  %6663 = vst [vmem:[#allocation27_spill] sm:$0xff] %v4544_v58  ;;  %v1052_v4 = vmul.f32 %v4544_v58, %v4287_v18  ;;  %v1061_v58 = vadd.f32 %v1053_v45, %v1021_v0  ;;  %v6674_v45 = vmov 8  }
 0x1d4   :  { %2864 = vperm.xlu0 %3405, %v4476_v41   ;;  %v335_v13 = vadd.f32 %v327_v7, %v295_v3 }
 0x1d5   :  { %v4527_v43 = vpop.permute.xlu1 %1231  ;;  %3347 = vset.pattern.permute.xlu1 %v6657_v34  ;;  %v334_v21 = vadd.f32 %v326_v56, %v294_v22  ;;  %v6665_v34 = vmov 12   ;;  %v1060_v22 = vadd.f32 %v1052_v4, %v1020_v9 }
 0x1d6   :  { %6656 = vst [vmem:[#allocation178_spill] sm:$0xff] %v4527_v43  ;;  %v4531_v28 = vpop.permute.xlu0 %1063  ;;  %1716 = vperm.xlu1 %3347, %v4358_v14   ;;  %v4557_v43 = vrot.slane %v4361_v54, %v4188_v1  ;;  %v375_v3 = vadd.f32 %v367_v40, %v335_v13 }
 0x1d7   :  { %6658 = vst [vmem:[#allocation179_spill] sm:$0xff] %v4531_v28  ;;  %v4561_v28 = vrot.slane %v4367_v42, %v4188_v1  ;;  %v374_v56 = vadd.f32 %v366_v15, %v334_v21  ;;  %v407_v42 = vmul.f32 %v4204_v6, %v6669_v19  ;;  %v6670_v1 = vld [vmem:[#allocation46_spill] sm:$0xff]  ;;  %v6673_v21 = vmov 15  }
 0x1d8   :  { %3408 = vset.pattern.permute.xlu0 %v6665_v34  ;;  %6666 = vst [vmem:[#allocation180_spill] sm:$0xff] %v4557_v43  ;;  %v406_v34 = vmul.f32 %v4196_v20, %v6669_v19  ;;  %v447_v15 = vmul.f32 %v4208_v37, %v6670_v1 }
 0x1d9   :  { %6667 = vst [vmem:[#allocation181_spill] sm:$0xff] %v4561_v28  ;;  %2912 = vperm.xlu0 %3408, %v4476_v41   ;;  %v415_v4 = vadd.f32 %v407_v42, %v375_v3  ;;  %v6680_v3 = vld [vmem:[#allocation129_spill] sm:$0xff] }
 0x1da   :  { %v4563_v26 = vpop.permute.xlu1 %1263  ;;  %1720 = vperm.xlu1 %3347, %v4135_v59   ;;  %v1076_v7 = vpop.permute.xlu0 %1075  ;;  %v414_v13 = vadd.f32 %v406_v34, %v374_v56  ;;  %v6679_v56 = vld [vmem:[#allocation55_spill] sm:$0xff] }
 0x1db   :  { %6668 = vst [vmem:[#allocation182_spill] sm:$0xff] %v4563_v26  ;;  %v1092_v18 = vmul.f32 %v4557_v43, %v1076_v7  ;;  %v1093_v54 = vmul.f32 %v4561_v28, %v1076_v7  ;;  %v446_v26 = vmul.f32 %v4200_v8, %v6670_v1  ;;  %v455_v1 = vadd.f32 %v447_v15, %v415_v4 }
 0x1dc   :  { %v526_v42 = vmul.f32 %v6680_v3, %v6679_v56 }
 0x1dd   :  { %v4577_v40 = vadd.f32 %v1092_v18, %v1060_v22  ;;  %v4579_v9 = vadd.f32 %v1093_v54, %v1061_v58  ;;  %3411 = vset.pattern.permute.xlu0 %v6673_v21  ;;  %v454_v19 = vadd.f32 %v446_v26, %v414_v13  ;;  %v6676_v22 = vld [vmem:[#allocation13_spill] sm:$0xff]  ;;  %v6678_v54 = vld [vmem:[#allocation43_spill] sm:$0xff]  ;;  %v6682_v26 = vmov 18  }
 0x1de   :  { %v4581_v0 = vpop.permute.xlu1 %1271  ;;  %3349 = vset.pattern.permute.xlu1 %v6674_v45  ;;  %v4585_v7 = vpop.permute.xlu0 %2352  ;;  %2960 = vperm.xlu0 %3411, %v4476_v41   ;;  %v176_v58 = vmul.f32 %v4075_v17, %v6676_v22  ;;  %v487_v34 = vmul.f32 %v4241_v48, %v6678_v54  ;;  %v527_v45 = vmul.f32 %v4245_v63, %v6679_v56  ;;  %v6683_v13 = vld [vmem:[#allocation15_spill] sm:$0xff]  ;;  %v6684_v56 = vld [vmem:[#allocation25_spill] sm:$0xff] }
 0x1df   :  { %6671 = vst [vmem:[#allocation35_spill] sm:$0xff] %v4579_v9  ;;  %6672 = vst [vmem:[#allocation46_spill] sm:$0xff] %v4581_v0  ;;  %1752 = vperm.xlu1 %3349, %v4412_v27   ;;  %v486_v0 = vmul.f32 %v4231_v2, %v6678_v54  ;;  %v177_v15 = vmul.f32 %v4085_v57, %v6676_v22  ;;  %v208_v4 = vmul.f32 %v6643_v49, %v6683_v13 }
 0x1e0   :  { %6675 = vst [vmem:[#allocation183_spill] sm:$0xff] %v4585_v7  ;;  %v209_v17 = vmul.f32 %v6644_v30, %v6683_v13  ;;  %v6685_v30 = vmov 20  }
 0x1e1   :  { %v494_v54 = vadd.f32 %v486_v0, %v454_v19  ;;  %v216_v57 = vadd.f32 %v208_v4, %v176_v58  ;;  %v6686_v0 = vld [vmem:[#allocation51_spill] sm:$0xff] }
 0x1e2   :  { %v4591_v18 = vpop.permute.xlu1 %1275  ;;  %v4601_v7 = vpop.permute.xlu0 %2364  ;;  %3414 = vset.pattern.permute.xlu0 %v6682_v26  ;;  %v249_v26 = vmul.f32 %v6649_v46, %v6684_v56  ;;  %v217_v9 = vadd.f32 %v209_v17, %v177_v15  ;;  %v566_v19 = vmul.f32 %v4267_v62, %v6686_v0  ;;  %v6688_v4 = vld [vmem:[#allocation23_spill] sm:$0xff]  ;;  %v6689_v46 = vld [vmem:[#allocation33_spill] sm:$0xff] }
 0x1e3   :  { %6677 = vst [vmem:[#allocation13_spill] sm:$0xff] %v4591_v18  ;;  %6681 = vst [vmem:[#allocation43_spill] sm:$0xff] %v4601_v7  ;;  %1760 = vperm.xlu1 %3349, %v4135_v59   ;;  %3008 = vperm.xlu0 %3414, %v4476_v41   ;;  %v495_v18 = vadd.f32 %v487_v34, %v455_v1  ;;  %v248_v7 = vmul.f32 %v6648_v36, %v6684_v56  ;;  %v6687_v34 = vld [vmem:[#allocation65_spill] sm:$0xff] }
 0x1e4   :  { %v534_v21 = vadd.f32 %v526_v42, %v494_v54  ;;  %v567_v1 = vmul.f32 %v4277_v10, %v6686_v0  ;;  %v606_v42 = vmul.f32 %v4271_v55, %v6687_v34  ;;  %v607_v17 = vmul.f32 %v4281_v39, %v6687_v34 }
 0x1e5   :  { %v535_v22 = vadd.f32 %v527_v45, %v495_v18  ;;  %v256_v45 = vadd.f32 %v248_v7, %v216_v57  ;;  %v257_v58 = vadd.f32 %v249_v26, %v217_v9  ;;  %v288_v54 = vmul.f32 %v6651_v5, %v6688_v4 }
 0x1e6   :  { %v574_v18 = vadd.f32 %v566_v19, %v534_v21  ;;  %v289_v56 = vmul.f32 %v6652_v11, %v6688_v4  ;;  %v328_v0 = vmul.f32 %v6660_v53, %v6689_v46  ;;  %v329_v36 = vmul.f32 %v4163_v38, %v6689_v46  ;;  %v6693_v19 = vld [vmem:[#allocation59_spill] sm:$0xff]  ;;  %v6730_v53 = vld [vmem:[#allocation168_spill] sm:$0xff] }
 0x1e7   :  { %1764 = vperm.xlu1 %3349, %v4377_v32   ;;  %v4617_v49 = vpop.permute.xlu1 %1307  ;;  %v4619_v13 = vpop.permute.xlu0 %1107  ;;  %3417 = vset.pattern.permute.xlu0 %v6685_v30  ;;  %v575_v15 = vadd.f32 %v567_v1, %v535_v22  ;;  %v296_v7 = vadd.f32 %v288_v54, %v256_v45  ;;  %v6692_v22 = vmov 23   ;;  %v646_v1 = vmul.f32 %v4301_v51, %v6693_v19  ;;  %v6694_v4 = vld [vmem:[#allocation75_spill] sm:$0xff]  ;;  %v6762_v30 = vld [vmem:[#allocation173_spill] sm:$0xff] }
 0x1e8   :  { %3040 = vperm.xlu0 %3417, %v4476_v41   ;;  %v614_v9 = vadd.f32 %v606_v42, %v574_v18  ;;  %v297_v26 = vadd.f32 %v289_v56, %v257_v58  ;;  %v647_v46 = vmul.f32 %v4311_v29, %v6693_v19  ;;  %v6696_v19 = vld [vmem:[#allocation42_spill] sm:$0xff] }
 0x1e9   :  { %v615_v21 = vadd.f32 %v607_v17, %v575_v15  ;;  %v336_v42 = vadd.f32 %v328_v0, %v296_v7  ;;  %v6695_v15 = vld [vmem:[#allocation31_spill] sm:$0xff] }
 0x1ea   :  { %v337_v17 = vadd.f32 %v329_v36, %v297_v26  ;;  %v654_v45 = vadd.f32 %v646_v1, %v614_v9  ;;  %v368_v54 = vmul.f32 %v6662_v61, %v6695_v15  ;;  %v369_v56 = vmul.f32 %v4167_v23, %v6695_v15  ;;  %v6698_v1 = vld [vmem:[#allocation67_spill] sm:$0xff] }
 0x1eb   :  { %3351 = vset.pattern.permute.xlu1 %v6655_v35  ;;  %v4640_v34 = vpop.permute.xlu1 %1311  ;;  %v4642_v57 = vpop.permute.xlu0 %2396  ;;  %v686_v35 = vmul.f32 %v4305_v44, %v6694_v4  ;;  %v655_v58 = vadd.f32 %v647_v46, %v615_v21  ;;  %v6697_v21 = vmov 26   ;;  %v726_v46 = vmul.f32 %v4340_v16, %v6698_v1 }
 0x1ec   :  { %6690 = vst [vmem:[#allocation55_spill] sm:$0xff] %v4640_v34  ;;  %6691 = vst [vmem:[#allocation15_spill] sm:$0xff] %v4642_v57  ;;  %1796 = vperm.xlu1 %3351, %v4358_v14   ;;  %3420 = vset.pattern.permute.xlu0 %v6692_v22  ;;  %v687_v57 = vmul.f32 %v4315_v60, %v6694_v4  ;;  %v408_v34 = vmul.f32 %v4196_v20, %v6696_v19  ;;  %v6699_v20 = vld [vmem:[#allocation89_spill] sm:$0xff]  ;;  %v6760_v22 = vmov 13  }
 0x1ed   :  { %3088 = vperm.xlu0 %3420, %v4476_v41   ;;  %v409_v4 = vmul.f32 %v4204_v6, %v6696_v19  ;;  %v694_v36 = vadd.f32 %v686_v35, %v654_v45  ;;  %v376_v7 = vadd.f32 %v368_v54, %v336_v42  ;;  %v377_v26 = vadd.f32 %v369_v56, %v337_v17  ;;  %v6702_v56 = vld [vmem:[#allocation39_spill] sm:$0xff]  ;;  %v6703_v6 = vld [vmem:[#allocation52_spill] sm:$0xff] }
 0x1ee   :  { %v695_v9 = vadd.f32 %v687_v57, %v655_v58  ;;  %v727_v15 = vmul.f32 %v4351_v12, %v6698_v1  ;;  %v766_v23 = vmul.f32 %v4344_v24, %v6699_v20  ;;  %v767_v19 = vmul.f32 %v4355_v50, %v6699_v20 }
 0x1ef   :  { %v6700_v35 = vmov 10   ;;  %v416_v42 = vadd.f32 %v408_v34, %v376_v7  ;;  %v417_v17 = vadd.f32 %v409_v4, %v377_v26  ;;  %v734_v58 = vadd.f32 %v726_v46, %v694_v36 }
 0x1f0   :  { %1800 = vperm.xlu1 %3351, %v4135_v59   ;;  %v4656_v18 = vpop.permute.xlu1 %1343  ;;  %v4666_v0 = vpop.permute.xlu0 %1143  ;;  %v735_v54 = vadd.f32 %v727_v15, %v695_v9  ;;  %v448_v1 = vmul.f32 %v4200_v8, %v6702_v56  ;;  %v488_v20 = vmul.f32 %v4231_v2, %v6703_v6  ;;  %v6704_v34 = vmov 29   ;;  %v6706_v15 = vld [vmem:[#allocation76_spill] sm:$0xff] }
 0x1f1   :  { %3423 = vset.pattern.permute.xlu0 %v6697_v21  ;;  %v449_v21 = vmul.f32 %v4208_v37, %v6702_v56  ;;  %v774_v4 = vadd.f32 %v766_v23, %v734_v58  ;;  %v806_v56 = vmul.f32 %v4383_v31, %v6706_v15  ;;  %v6718_v2 = vld [vmem:[#allocation92_spill] sm:$0xff] }
 0x1f2   :  { %3136 = vperm.xlu0 %3423, %v4476_v41   ;;  %v775_v7 = vadd.f32 %v767_v19, %v735_v54  ;;  %v456_v36 = vadd.f32 %v448_v1, %v416_v42 }
 0x1f3   :  { %v457_v9 = vadd.f32 %v449_v21, %v417_v17  ;;  %v814_v42 = vadd.f32 %v806_v56, %v774_v4  ;;  %v6708_v17 = vld [vmem:[#allocation47_spill] sm:$0xff]  ;;  %v6712_v56 = vld [vmem:[#allocation160_spill] sm:$0xff] }
 0x1f4   :  { %3353 = vset.pattern.permute.xlu1 %v6700_v35  ;;  %v4679_v57 = vpop.permute.xlu1 %1351  ;;  %v4681_v45 = vpop.permute.xlu0 %1155  ;;  %v489_v35 = vmul.f32 %v4241_v48, %v6703_v6  ;;  %v807_v6 = vmul.f32 %v4391_v25, %v6706_v15  ;;  %v496_v58 = vadd.f32 %v488_v20, %v456_v36  ;;  %v528_v54 = vmul.f32 %v6680_v3, %v6708_v17  ;;  %v6717_v48 = vld [vmem:[#allocation17_spill] sm:$0xff] }
 0x1f5   :  { %6701 = vst [vmem:[#allocation25_spill] sm:$0xff] %v4679_v57  ;;  %1832 = vperm.xlu1 %3353, %v4412_v27   ;;  %v6707_v57 = vld [vmem:[#allocation111_spill] sm:$0xff]  ;;  %v529_v1 = vmul.f32 %v4245_v63, %v6708_v17  ;;  %v6715_v63 = vld [vmem:[#allocation161_spill] sm:$0xff]  ;;  %v124_v37 = vmul.f32 %v6718_v2, %v6717_v48  ;;  %v6725_v2 = vld [vmem:[#allocation56_spill] sm:$0xff] }
 0x1f6   :  { %3426 = vset.pattern.permute.xlu0 %v6704_v34  ;;  %v846_v23 = vmul.f32 %v4387_v52, %v6707_v57  ;;  %v847_v19 = vmul.f32 %v4395_v47, %v6707_v57  ;;  %v815_v21 = vadd.f32 %v807_v6, %v775_v7  ;;  %v536_v7 = vadd.f32 %v528_v54, %v496_v58  ;;  %v6713_v17 = vld [vmem:[#allocation163_spill] sm:$0xff]  ;;  %v6722_v54 = vld [vmem:[#allocation9_spill] sm:$0xff] }
 0x1f7   :  { %3184 = vperm.xlu0 %3426, %v4476_v41   ;;  %v497_v41 = vadd.f32 %v489_v35, %v457_v9  ;;  %v6711_v9 = vld [vmem:[#allocation86_spill] sm:$0xff] }
 0x1f8   :  { %v4693_v26 = vpop.permute.xlu1 %1355  ;;  %v4697_v46 = vpop.permute.xlu0 %2432  ;;  %v854_v20 = vadd.f32 %v846_v23, %v814_v42  ;;  %v855_v4 = vadd.f32 %v847_v19, %v815_v21  ;;  %v886_v6 = vmul.f32 %v6712_v56, %v6711_v9  ;;  %v6719_v23 = vld [vmem:[#allocation94_spill] sm:$0xff]  ;;  %v6720_v42 = vmov 11  }
 0x1f9   :  { %1840 = vperm.xlu1 %3353, %v4135_v59   ;;  %6705 = vst [vmem:[#allocation51_spill] sm:$0xff] %v4697_v46  ;;  %v6709_v46 = vld [vmem:[#allocation62_spill] sm:$0xff]  ;;  %v537_v36 = vadd.f32 %v529_v1, %v497_v41  ;;  %v125_v19 = vmul.f32 %v6719_v23, %v6717_v48  ;;  %v6723_v1 = vld [vmem:[#allocation91_spill] sm:$0xff]  ;;  %v608_v48 = vmul.f32 %v4271_v55, %v6725_v2 }
 0x1fa   :  { %v568_v15 = vmul.f32 %v4267_v62, %v6709_v46  ;;  %v569_v34 = vmul.f32 %v4277_v10, %v6709_v46  ;;  %v6714_v62 = vld [vmem:[#allocation140_spill] sm:$0xff]  ;;  %v894_v61 = vadd.f32 %v886_v6, %v854_v20 }
 0x1fb   :  { %3429 = vset.pattern.permute.xlu0 %v6553_v33  ;;  %v887_v33 = vmul.f32 %v6713_v17, %v6711_v9  ;;  %v926_v3 = vmul.f32 %v6715_v63, %v6714_v62  ;;  %v6716_v46 = vld [vmem:[#allocation164_spill] sm:$0xff]  ;;  %v82_v9 = vmul.f32 %v6723_v1, %v6722_v54  ;;  %v6728_v1 = vld [vmem:[#allocation167_spill] sm:$0xff] }
 0x1fc   :  { %v4719_v35 = vpop.permute.xlu0 %2444  ;;  %v927_v10 = vmul.f32 %v6716_v46, %v6714_v62  ;;  %v576_v58 = vadd.f32 %v568_v15, %v536_v7  ;;  %v577_v41 = vadd.f32 %v569_v34, %v537_v36  ;;  %v609_v34 = vmul.f32 %v4281_v39, %v6725_v2  ;;  %v6726_v15 = vld [vmem:[#allocation71_spill] sm:$0xff]  ;;  %v6731_v2 = vld [vmem:[#allocation170_spill] sm:$0xff] }
 0x1fd   :  { %1844 = vperm.xlu1 %3353, %v4377_v32   ;;  %v4717_v57 = vpop.permute.xlu1 %1387  ;;  %6710 = vst [vmem:[#allocation65_spill] sm:$0xff] %v4719_v35  ;;  %v6724_v35 = vld [vmem:[#allocation93_spill] sm:$0xff]  ;;  %v895_v62 = vadd.f32 %v887_v33, %v855_v4  ;;  %v648_v7 = vmul.f32 %v4301_v51, %v6726_v15  ;;  %v649_v36 = vmul.f32 %v4311_v29, %v6726_v15  ;;  %v6732_v51 = vld [vmem:[#allocation171_spill] sm:$0xff] }
 0x1fe   :  { %v83_v8 = vmul.f32 %v6724_v35, %v6722_v54  ;;  %v934_v23 = vadd.f32 %v926_v3, %v894_v61  ;;  %v132_v20 = vadd.f32 %v124_v37, %v82_v9  ;;  %v616_v4 = vadd.f32 %v608_v48, %v576_v58  ;;  %v6727_v54 = vld [vmem:[#allocation102_spill] sm:$0xff]  ;;  %v6734_v58 = vld [vmem:[#allocation64_spill] sm:$0xff] }
 0x1ff   :  { %v935_v35 = vadd.f32 %v927_v10, %v895_v62  ;;  %v617_v6 = vadd.f32 %v609_v34, %v577_v41  ;;  %v1006_v39 = vmul.f32 %v6731_v2, %v6730_v53  ;;  %v1007_v11 = vmul.f32 %v6732_v51, %v6730_v53  ;;  %v6735_v62 = vld [vmem:[#allocation81_spill] sm:$0xff] }
 0x200   :  { %v133_v33 = vadd.f32 %v125_v19, %v83_v8  ;;  %v656_v8 = vadd.f32 %v648_v7, %v616_v4  ;;  %v688_v41 = vmul.f32 %v4305_v44, %v6734_v58  ;;  %v689_v9 = vmul.f32 %v4315_v60, %v6734_v58 }
 0x201   :  { %3355 = vset.pattern.permute.xlu1 %v6720_v42  ;;  %v4734_v21 = vpop.permute.xlu1 %1391  ;;  %v4740_v38 = vpop.permute.xlu0 %1187  ;;  %v966_v42 = vmul.f32 %v6728_v1, %v6727_v54  ;;  %v657_v10 = vadd.f32 %v649_v36, %v617_v6  ;;  %v728_v48 = vmul.f32 %v4340_v16, %v6735_v62  ;;  %v729_v53 = vmul.f32 %v4351_v12, %v6735_v62  ;;  %v6738_v6 = vld [vmem:[#allocation130_spill] sm:$0xff]  ;;  %v6740_v62 = vld [vmem:[#allocation37_spill] sm:$0xff]  ;;  %v6741_v12 = vld [vmem:[#allocation179_spill] sm:$0xff] }
 0x202   :  { %6721 = vst [vmem:[#allocation23_spill] sm:$0xff] %v4734_v21  ;;  %1876 = vperm.xlu1 %3355, %v4358_v14   ;;  %v6729_v21 = vld [vmem:[#allocation169_spill] sm:$0xff]  ;;  %v4772_v34 = vmax.f32 %v132_v20, 0.0  ;;  %v4774_v15 = vmax.f32 %v133_v33, 0.0  ;;  %v1047_v20 = vmul.f32 %v6740_v62, %v6738_v6  ;;  %v1086_v33 = vmul.f32 %v4557_v43, %v6741_v12 }
 0x203   :  { %v967_v55 = vmul.f32 %v6729_v21, %v6727_v54  ;;  %v974_v3 = vadd.f32 %v966_v42, %v934_v23  ;;  %v6736_v42 = vmov 12   ;;  %v696_v23 = vadd.f32 %v688_v41, %v656_v8  ;;  %v6739_v54 = vld [vmem:[#allocation27_spill] sm:$0xff] }
 0x204   :  { %v1046_v58 = vmul.f32 %v6739_v54, %v6738_v6  ;;  %v6745_v6 = vld [vmem:[#allocation72_spill] sm:$0xff] }
 0x205   :  { %v4762_v37 = vpop.permute.xlu0 %2476  ;;  %v975_v19 = vadd.f32 %v967_v55, %v935_v35  ;;  %v1014_v7 = vadd.f32 %v1006_v39, %v974_v3  ;;  %v697_v35 = vadd.f32 %v689_v9, %v657_v10  ;;  %v1087_v39 = vmul.f32 %v4561_v28, %v6741_v12 }
 0x206   :  { %1880 = vperm.xlu1 %3355, %v4135_v59   ;;  %v4760_v61 = vpop.permute.xlu1 %1437  ;;  %6733 = vst [vmem:[#allocation33_spill] sm:$0xff] %v4762_v37  ;;  %v768_v16 = vmul.f32 %v4344_v24, %v6745_v6  ;;  %v769_v12 = vmul.f32 %v4355_v50, %v6745_v6 }
 0x207   :  { %v1015_v36 = vadd.f32 %v1007_v11, %v975_v19  ;;  %v736_v11 = vadd.f32 %v728_v48, %v696_v23  ;;  %v737_v3 = vadd.f32 %v729_v53, %v697_v35  ;;  %v6742_v19 = vld [vmem:[#allocation84_spill] sm:$0xff]  ;;  %v1054_v41 = vadd.f32 %v1046_v58, %v1014_v7  ;;  %v6746_v48 = vld [vmem:[#allocation99_spill] sm:$0xff]  ;;  %v6747_v7 = vld [vmem:[#allocation85_spill] sm:$0xff] }
 0x208   :  { %v4790_v8 = vrot.slane %v4772_v34, %v6742_v19  ;;  %v4794_v10 = vrot.slane %v4774_v15, %v6742_v19  ;;  %v808_v53 = vmul.f32 %v4383_v31, %v6746_v48  ;;  %v809_v23 = vmul.f32 %v4391_v25, %v6746_v48  ;;  %v6750_v31 = vld [vmem:[#allocation152_spill] sm:$0xff] }
 0x209   :  { %v1055_v9 = vadd.f32 %v1047_v20, %v1015_v36  ;;  %v4811_v36 = vrot.slane %v4772_v34, %v6747_v7  ;;  %v4815_v58 = vrot.slane %v4774_v15, %v6747_v7  ;;  %v1094_v20 = vadd.f32 %v1086_v33, %v1054_v41 }
 0x20a   :  { %3357 = vset.pattern.permute.xlu1 %v6736_v42  ;;  %v4777_v55 = vpop.permute.xlu1 %1447  ;;  %v1224_v4 = vpop.permute.xlu0 %1223  ;;  %6743 = vst [vmem:[#allocation75_spill] sm:$0xff] %v4790_v8  ;;  %6744 = vst [vmem:[#allocation31_spill] sm:$0xff] %v4794_v10  ;;  %v776_v50 = vadd.f32 %v768_v16, %v736_v11  ;;  %v777_v24 = vadd.f32 %v769_v12, %v737_v3  ;;  %v1126_v60 = vmul.f32 %v4790_v8, %v6750_v31 }
 0x20b   :  { %6737 = vst [vmem:[#allocation59_spill] sm:$0xff] %v4777_v55  ;;  %1912 = vperm.xlu1 %3357, %v4412_v27   ;;  %6748 = vst [vmem:[#allocation42_spill] sm:$0xff] %v4811_v36  ;;  %v1095_v6 = vadd.f32 %v1087_v39, %v1055_v9  ;;  %v1127_v48 = vmul.f32 %v4794_v10, %v6750_v31  ;;  %v1166_v25 = vmul.f32 %v4811_v36, %v4666_v0  ;;  %v6752_v39 = vld [vmem:[#allocation87_spill] sm:$0xff]  ;;  %v6755_v9 = vld [vmem:[#allocation80_spill] sm:$0xff] }
 0x20c   :  { %6749 = vst [vmem:[#allocation67_spill] sm:$0xff] %v4815_v58  ;;  %v1167_v44 = vmul.f32 %v4815_v58, %v4666_v0  ;;  %v816_v29 = vadd.f32 %v808_v53, %v776_v50  ;;  %v817_v5 = vadd.f32 %v809_v23, %v777_v24  ;;  %v4832_v11 = vrot.slane %v4772_v34, %v6752_v39  ;;  %v6756_v0 = vld [vmem:[#allocation88_spill] sm:$0xff]  ;;  %v6759_v23 = vld [vmem:[#allocation133_spill] sm:$0xff] }
 0x20d   :  { %v4836_v31 = vrot.slane %v4774_v15, %v6752_v39  ;;  %v1134_v3 = vadd.f32 %v1126_v60, %v1094_v20  ;;  %v1135_v41 = vadd.f32 %v1127_v48, %v1095_v6  ;;  %v848_v50 = vmul.f32 %v4387_v52, %v6755_v9 }
 0x20e   :  { %v4796_v42 = vpop.permute.xlu1 %1452  ;;  %v4806_v35 = vpop.permute.xlu0 %1235  ;;  %6753 = vst [vmem:[#allocation39_spill] sm:$0xff] %v4832_v11  ;;  %v849_v24 = vmul.f32 %v4395_v47, %v6755_v9  ;;  %v4844_v12 = vrot.slane %v4772_v34, %v6756_v0  ;;  %v4848_v53 = vrot.slane %v4774_v15, %v6756_v0  ;;  %v889_v60 = vmul.f32 %v6713_v17, %v6759_v23 }
 0x20f   :  { %1920 = vperm.xlu1 %3357, %v4135_v59   ;;  %6754 = vst [vmem:[#allocation52_spill] sm:$0xff] %v4836_v31  ;;  %v1174_v20 = vadd.f32 %v1166_v25, %v1134_v3  ;;  %v1175_v6 = vadd.f32 %v1167_v44, %v1135_v41  ;;  %v856_v48 = vadd.f32 %v848_v50, %v816_v29  ;;  %v6763_v3 = vld [vmem:[#allocation96_spill] sm:$0xff] }
 0x210   :  { %6757 = vst [vmem:[#allocation76_spill] sm:$0xff] %v4844_v12  ;;  %6758 = vst [vmem:[#allocation111_spill] sm:$0xff] %v4848_v53  ;;  %v857_v52 = vadd.f32 %v849_v24, %v817_v5  ;;  %v1206_v37 = vmul.f32 %v4832_v11, %v6762_v30  ;;  %v1207_v55 = vmul.f32 %v4836_v31, %v6762_v30  ;;  %v6764_v24 = vld [vmem:[#allocation112_spill] sm:$0xff] }
 0x211   :  { %v928_v41 = vmul.f32 %v6715_v63, %v6763_v3  ;;  %v929_v50 = vmul.f32 %v6716_v46, %v6763_v3  ;;  %v4876_v30 = vrot.slane %v4774_v15, %v6764_v24  ;;  %v6771_v63 = vld [vmem:[#allocation182_spill] sm:$0xff] }
 0x212   :  { %v4828_v16 = vpop.permute.xlu0 %2512  ;;  %v897_v29 = vadd.f32 %v889_v60, %v857_v52  ;;  %v1214_v5 = vadd.f32 %v1206_v37, %v1174_v20  ;;  %v1215_v25 = vadd.f32 %v1207_v55, %v1175_v6  ;;  %v6768_v6 = vld [vmem:[#allocation113_spill] sm:$0xff] }
 0x213   :  { %1924 = vperm.xlu1 %3357, %v4377_v32   ;;  %v4826_v33 = vpop.permute.xlu1 %1476  ;;  %6751 = vst [vmem:[#allocation89_spill] sm:$0xff] %v4828_v16  ;;  %v888_v16 = vmul.f32 %v6712_v56, %v6759_v23  ;;  %v1246_v56 = vmul.f32 %v4844_v12, %v1224_v4  ;;  %v1247_v23 = vmul.f32 %v4848_v53, %v1224_v4  ;;  %6766 = vst [vmem:[#allocation86_spill] sm:$0xff] %v4876_v30  ;;  %v6767_v4 = vld [vmem:[#allocation159_spill] sm:$0xff] }
 0x214   :  { %v969_v52 = vmul.f32 %v6729_v21, %v6767_v4  ;;  %v4893_v3 = vrot.slane %v4774_v15, %v6768_v6  ;;  %v937_v46 = vadd.f32 %v929_v50, %v897_v29  ;;  %v6772_v21 = vmov 14  }
 0x215   :  { %v896_v44 = vadd.f32 %v888_v16, %v856_v48  ;;  %v968_v16 = vmul.f32 %v6728_v1, %v6767_v4  ;;  %v1254_v37 = vadd.f32 %v1246_v56, %v1214_v5  ;;  %v1255_v55 = vadd.f32 %v1247_v23, %v1215_v25 }
 0x216   :  { %v4857_v47 = vpop.permute.xlu0 %2524  ;;  %v4889_v48 = vrot.slane %v4772_v34, %v6768_v6  ;;  %6770 = vst [vmem:[#allocation17_spill] sm:$0xff] %v4893_v3  ;;  %v1287_v23 = vmul.f32 %v4876_v30, %v6771_v63  ;;  %v6774_v6 = vld [vmem:[#allocation8_spill] sm:$0xff] }
 0x217   :  { %3359 = vset.pattern.permute.xlu1 %v6760_v22  ;;  %v4855_v9 = vpop.permute.xlu1 %1480  ;;  %6761 = vst [vmem:[#allocation47_spill] sm:$0xff] %v4857_v47  ;;  %v4872_v22 = vrot.slane %v4772_v34, %v6764_v24  ;;  %v936_v1 = vadd.f32 %v928_v41, %v896_v44  ;;  %v1327_v29 = vmul.f32 %v4893_v3, %v6774_v6  ;;  %v6775_v41 = vld [vmem:[#allocation118_spill] sm:$0xff] }
 0x218   :  { %1956 = vperm.xlu1 %3359, %v4358_v14   ;;  %6769 = vst [vmem:[#allocation140_spill] sm:$0xff] %v4889_v48  ;;  %v1295_v4 = vadd.f32 %v1287_v23, %v1255_v55  ;;  %v1326_v44 = vmul.f32 %v4889_v48, %v6774_v6 }
 0x219   :  { %6765 = vst [vmem:[#allocation62_spill] sm:$0xff] %v4872_v22  ;;  %v1286_v56 = vmul.f32 %v4872_v22, %v6771_v63  ;;  %v976_v5 = vadd.f32 %v968_v16, %v936_v1  ;;  %v1008_v63 = vmul.f32 %v6731_v2, %v6775_v41  ;;  %v6776_v1 = vld [vmem:[#allocation177_spill] sm:$0xff]  ;;  %v6788_v2 = vld [vmem:[#allocation10_spill] sm:$0xff] }
 0x21a   :  { %v1048_v50 = vmul.f32 %v6739_v54, %v6776_v1  ;;  %v1049_v16 = vmul.f32 %v6740_v62, %v6776_v1 }
 0x21b   :  { %v4882_v60 = vpop.permute.xlu0 %1267  ;;  %v1294_v25 = vadd.f32 %v1286_v56, %v1254_v37  ;;  %v1016_v6 = vadd.f32 %v1008_v63, %v976_v5  ;;  %v1129_v63 = vmul.f32 %v4794_v10, %v4619_v13 }
 0x21c   :  { %1960 = vperm.xlu1 %3359, %v4135_v59   ;;  %v4885_v20 = vpop.permute.xlu1 %1512  ;;  %v977_v59 = vadd.f32 %v969_v52, %v937_v46  ;;  %v1009_v46 = vmul.f32 %v6732_v51, %v6775_v41  ;;  %v6777_v52 = vld [vmem:[#allocation119_spill] sm:$0xff]  ;;  %v6780_v41 = vld [vmem:[#allocation120_spill] sm:$0xff]  ;;  %v4937_v51 = vld [vmem:[#allocation2 + $0x30] sm:$0xff] }
 0x21d   :  { %v4919_v37 = vrot.slane %v4772_v34, %v6777_v52  ;;  %v4923_v55 = vrot.slane %v4774_v15, %v6777_v52  ;;  %v1334_v23 = vadd.f32 %v1326_v44, %v1294_v25  ;;  %v4929_v54 = vrot.slane %v4772_v34, %v6780_v41  ;;  %v6783_v34 = vld [vmem:[#allocation145_spill] sm:$0xff] }
 0x21e   :  { %v1017_v56 = vadd.f32 %v1009_v46, %v977_v59  ;;  %v4933_v1 = vrot.slane %v4774_v15, %v6780_v41  ;;  %v1056_v5 = vadd.f32 %v1048_v50, %v1016_v6  ;;  %v1088_v44 = vmul.f32 %v4557_v43, %v6783_v34 }
 0x21f   :  { %v4902_v47 = vpop.permute.xlu0 %2556  ;;  %6778 = vst [vmem:[#allocation94_spill] sm:$0xff] %v4919_v37  ;;  %6779 = vst [vmem:[#allocation9_spill] sm:$0xff] %v4923_v55  ;;  %v1366_v25 = vmul.f32 %v4919_v37, %v4656_v18  ;;  %v1089_v15 = vmul.f32 %v4561_v28, %v6783_v34  ;;  %v1173_v34 = vmul.f32 %v4815_v58, %v4681_v45 }
 0x220   :  { %3361 = vset.pattern.permute.xlu1 %v6772_v21  ;;  %v4900_v17 = vpop.permute.xlu1 %1520  ;;  %6773 = vst [vmem:[#allocation92_spill] sm:$0xff] %v4902_v47  ;;  %v1335_v47 = vadd.f32 %v1327_v29, %v1295_v4  ;;  %6781 = vst [vmem:[#allocation91_spill] sm:$0xff] %v4929_v54  ;;  %v1057_v59 = vadd.f32 %v1049_v16, %v1017_v56  ;;  %v1367_v4 = vmul.f32 %v4923_v55, %v4656_v18  ;;  %v6784_v16 = vld [vmem:[#allocation162_spill] sm:$0xff] }
 0x221   :  { %1992 = vperm.xlu1 %3361, %v4412_v27   ;;  %6782 = vst [vmem:[#allocation93_spill] sm:$0xff] %v4933_v1  ;;  %v1128_v29 = vmul.f32 %v4790_v8, %v4619_v13  ;;  %v1374_v46 = vadd.f32 %v1366_v25, %v1334_v23  ;;  %v1132_v6 = vmul.f32 %v4790_v8, %v6784_v16  ;;  %v6786_v23 = vld [vmem:[#allocation11_spill] sm:$0xff] }
 0x222   :  { %v1375_v50 = vadd.f32 %v1367_v4, %v1335_v47  ;;  %v1133_v18 = vmul.f32 %v4794_v10, %v6784_v16  ;;  %v1172_v56 = vmul.f32 %v4811_v36, %v4681_v45  ;;  %v1096_v13 = vadd.f32 %v1088_v44, %v1056_v5  ;;  %v6787_v10 = vld [vmem:[#allocation35_spill] sm:$0xff] }
 0x223   :  { %v1097_v47 = vadd.f32 %v1089_v15, %v1057_v59  ;;  %v1406_v25 = vmul.f32 %v4929_v54, %v6786_v23  ;;  %v1407_v4 = vmul.f32 %v4933_v1, %v6786_v23  ;;  %v1140_v16 = vadd.f32 %v1132_v6, %v4577_v40 }
 0x224   :  { %v4925_v21 = vpop.permute.xlu1 %1524  ;;  %v4935_v62 = vpop.permute.xlu0 %1315  ;;  %v1141_v8 = vadd.f32 %v1133_v18, %v6787_v10  ;;  %v4973_v45 = vmul.f32 %v4919_v37, %v6788_v2  ;;  %v1136_v5 = vadd.f32 %v1128_v29, %v1096_v13  ;;  %v6790_v18 = vmov 15  }
 0x225   :  { %2000 = vperm.xlu1 %3361, %v4937_v51   ;;  %v1137_v59 = vadd.f32 %v1129_v63, %v1097_v47  ;;  %v1414_v44 = vadd.f32 %v1406_v25, %v1374_v46  ;;  %v1415_v15 = vadd.f32 %v1407_v4, %v1375_v50  ;;  %v1180_v6 = vadd.f32 %v1172_v56, %v1140_v16 }
 0x226   :  { %v1181_v10 = vadd.f32 %v1173_v34, %v1141_v8  ;;  %v1208_v46 = vmul.f32 %v4832_v11, %v4740_v38  ;;  %v6792_v8 = vld [vmem:[#allocation18_spill] sm:$0xff]  ;;  %v1252_v34 = vmul.f32 %v4844_v12, %v4806_v35  ;;  %v1253_v13 = vmul.f32 %v4848_v53, %v4806_v35 }
 0x227   :  { %v1248_v50 = vmul.f32 %v4844_v12, %v6792_v8  ;;  %v1249_v56 = vmul.f32 %v4848_v53, %v6792_v8  ;;  %v5005_v4 = vmax.f32 %v1414_v44, 0.0  ;;  %v5007_v16 = vmax.f32 %v1415_v15, 0.0 }
 0x228   :  { %v4963_v43 = vpop.permute.xlu0 %2592  ;;  %v1328_v12 = vmul.f32 %v4889_v48, %v4617_v49  ;;  %v1329_v35 = vmul.f32 %v4893_v3, %v4617_v49  ;;  %v1372_v15 = vmul.f32 %v4919_v37, %v4693_v26  ;;  %v5032_v49 = vmul.f32 %v4933_v1, %v4717_v57  ;;  %v6797_v37 = vld [vmem:[#allocation22_spill] sm:$0xff] }
 0x229   :  { %2004 = vperm.xlu1 %3361, %v4377_v32   ;;  %v4961_v28 = vpop.permute.xlu1 %1556  ;;  %6785 = vst [vmem:[#allocation56_spill] sm:$0xff] %v4963_v43  ;;  %v4977_v32 = vmul.f32 %v4923_v55, %v6788_v2  ;;  %v6789_v43 = vld [vmem:[#allocation166_spill] sm:$0xff]  ;;  %v6791_v2 = vld [vmem:[#allocation19_spill] sm:$0xff] }
 0x22a   :  { %v1168_v41 = vmul.f32 %v4811_v36, %v6789_v43  ;;  %v1169_v40 = vmul.f32 %v4815_v58, %v6789_v43  ;;  %v1212_v29 = vmul.f32 %v4832_v11, %v6791_v2  ;;  %v1213_v63 = vmul.f32 %v4836_v31, %v6791_v2 }
 0x22b   :  { %v1209_v43 = vmul.f32 %v4836_v31, %v4740_v38  ;;  %v6793_v38 = vld [vmem:[#allocation13_spill] sm:$0xff] }
 0x22c   :  { %v4986_v52 = vpop.permute.xlu0 %2604  ;;  %v1176_v47 = vadd.f32 %v1168_v41, %v1136_v5  ;;  %v1177_v25 = vadd.f32 %v1169_v40, %v1137_v59  ;;  %v1220_v2 = vadd.f32 %v1212_v29, %v1180_v6  ;;  %v1221_v8 = vadd.f32 %v1213_v63, %v1181_v10 }
 0x22d   :  { %3363 = vset.pattern.permute.xlu1 %v6790_v18  ;;  %v4984_v23 = vpop.permute.xlu1 %1560  ;;  %v1293_v18 = vmul.f32 %v4876_v30, %v6793_v38  ;;  %v1373_v40 = vmul.f32 %v4923_v55, %v4693_v26  ;;  %v5028_v29 = vmul.f32 %v4929_v54, %v4717_v57  ;;  %v1458_v63 = vrot.slane %v5005_v4, %v6742_v19 }
 0x22e   :  { %2036 = vperm.xlu1 %3363, %v4358_v14   ;;  %v1292_v14 = vmul.f32 %v4872_v22, %v6793_v38  ;;  %v1216_v41 = vadd.f32 %v1208_v46, %v1176_v47  ;;  %v1217_v5 = vadd.f32 %v1209_v43, %v1177_v25  ;;  %v1260_v6 = vadd.f32 %v1252_v34, %v1220_v2 }
 0x22f   :  { %v1261_v10 = vadd.f32 %v1253_v13, %v1221_v8  ;;  %v1462_v46 = vrot.slane %v5007_v16, %v6742_v19  ;;  %v1490_v43 = vrot.slane %v5005_v4, %v6747_v7  ;;  %v1494_v26 = vrot.slane %v5007_v16, %v6747_v7  ;;  %v5091_v7 = vld [vmem:[#allocation2 + $0x38] sm:$0xff] }
 0x230   :  { %v1332_v34 = vmul.f32 %v4889_v48, %v4935_v62  ;;  %v1333_v13 = vmul.f32 %v4893_v3, %v4935_v62  ;;  %v1256_v57 = vadd.f32 %v1248_v50, %v1216_v41  ;;  %v1257_v47 = vadd.f32 %v1249_v56, %v1217_v5 }
 0x231   :  { %v5020_v44 = vpop.permute.xlu0 %2636  ;;  %v1288_v25 = vmul.f32 %v4872_v22, %v4882_v60  ;;  %v1289_v38 = vmul.f32 %v4876_v30, %v4882_v60  ;;  %v6795_v2 = vmov 16   ;;  %v5059_v55 = vrot.slane %v5007_v16, %v6752_v39 }
 0x232   :  { %2040 = vperm.xlu1 %3363, %v4937_v51   ;;  %v5018_v59 = vpop.permute.xlu1 %1592  ;;  %6794 = vst [vmem:[#allocation71_spill] sm:$0xff] %v5020_v44  ;;  %v5055_v44 = vrot.slane %v5005_v4, %v6752_v39  ;;  %v1300_v62 = vadd.f32 %v1292_v14, %v1260_v6  ;;  %v1301_v50 = vadd.f32 %v1293_v18, %v1261_v10 }
 0x233   :  { %v1469_v56 = vmul.f32 %v1458_v63, %v4796_v42  ;;  %v1470_v60 = vmul.f32 %v1462_v46, %v4796_v42  ;;  %v5066_v41 = vrot.slane %v5005_v4, %v6756_v0  ;;  %v5070_v5 = vrot.slane %v5007_v16, %v6756_v0 }
 0x234   :  { %v1501_v3 = vmul.f32 %v1490_v43, %v6797_v37  ;;  %v1502_v14 = vmul.f32 %v1494_v26, %v6797_v37  ;;  %v1340_v18 = vadd.f32 %v1332_v34, %v1300_v62  ;;  %v1341_v6 = vadd.f32 %v1333_v13, %v1301_v50  ;;  %v6800_v13 = vld [vmem:[#allocation21_spill] sm:$0xff] }
 0x235   :  { %v1296_v42 = vadd.f32 %v1288_v25, %v1256_v57  ;;  %v1297_v30 = vadd.f32 %v1289_v38, %v1257_v47  ;;  %v1497_v53 = vmul.f32 %v1490_v43, %v4826_v33  ;;  %v1498_v31 = vmul.f32 %v1494_v26, %v4826_v33  ;;  %v6801_v47 = vld [vmem:[#allocation59_spill] sm:$0xff] }
 0x236   :  { %3365 = vset.pattern.permute.xlu1 %v6795_v2  ;;  %v5051_v8 = vpop.permute.xlu1 %1600  ;;  %v1463_v37 = vmul.f32 %v1458_v63, %v4760_v61  ;;  %v1464_v34 = vmul.f32 %v1462_v46, %v4760_v61  ;;  %v1495_v62 = vmul.f32 %v1490_v43, %v6800_v13  ;;  %v1496_v57 = vmul.f32 %v1494_v26, %v6800_v13 }
 0x237   :  { %6796 = vst [vmem:[#allocation102_spill] sm:$0xff] %v5051_v8  ;;  %2072 = vperm.xlu1 %3365, %v4412_v27   ;;  %v1396_v2 = vpop.permute.xlu0 %1395  ;;  %v6798_v27 = vld [vmem:[#allocation14_spill] sm:$0xff]  ;;  %v1467_v25 = vmul.f32 %v1458_v63, %v6801_v47  ;;  %v1468_v38 = vmul.f32 %v1462_v46, %v6801_v47  ;;  %v1380_v50 = vadd.f32 %v1372_v15, %v1340_v18 }
 0x238   :  { %v1465_v10 = vmul.f32 %v1458_v63, %v6798_v27  ;;  %v1466_v48 = vmul.f32 %v1462_v46, %v6798_v27  ;;  %v1412_v11 = vmul.f32 %v4929_v54, %v1396_v2  ;;  %v1413_v58 = vmul.f32 %v4933_v1, %v1396_v2 }
 0x239   :  { %v1381_v33 = vadd.f32 %v1373_v40, %v1341_v6  ;;  %v1499_v27 = vmul.f32 %v1490_v43, %v4855_v9  ;;  %v1500_v2 = vmul.f32 %v1494_v26, %v4855_v9  ;;  %v1336_v1 = vadd.f32 %v1328_v12, %v1296_v42  ;;  %v6802_v26 = vld [vmem:[#allocation26_spill] sm:$0xff] }
 0x23a   :  { %v5076_v22 = vpop.permute.xlu1 %1604  ;;  %v1337_v54 = vadd.f32 %v1329_v35, %v1297_v30  ;;  %v1509_v36 = vadd.f32 %v1501_v3, %v1469_v56  ;;  %v1420_v8 = vadd.f32 %v1412_v11, %v1380_v50  ;;  %v1503_v63 = vadd.f32 %v1495_v62, %v1463_v37 }
 0x23b   :  { %6799 = vst [vmem:[#allocation168_spill] sm:$0xff] %v5076_v22  ;;  %2080 = vperm.xlu1 %3365, %v4937_v51   ;;  %v1510_v22 = vadd.f32 %v1502_v14, %v1470_v60  ;;  %v1421_v61 = vadd.f32 %v1413_v58, %v1381_v33  ;;  %v1504_v46 = vadd.f32 %v1496_v57, %v1464_v34  ;;  %v6808_v57 = vld [vmem:[#allocation30_spill] sm:$0xff] }
 0x23c   :  { %v1535_v15 = vmul.f32 %v5055_v44, %v4885_v20  ;;  %v1536_v9 = vmul.f32 %v5059_v55, %v4885_v20  ;;  %v1505_v12 = vadd.f32 %v1497_v53, %v1465_v10  ;;  %v1506_v30 = vadd.f32 %v1498_v31, %v1466_v48  ;;  %v5128_v10 = vpop.permute.xlu0 %2672 }
 0x23d   :  { %v1539_v11 = vmul.f32 %v5055_v44, %v4900_v17  ;;  %v1540_v58 = vmul.f32 %v5059_v55, %v4900_v17  ;;  %v1507_v3 = vadd.f32 %v1499_v27, %v1467_v25  ;;  %v1508_v35 = vadd.f32 %v1500_v2, %v1468_v38  ;;  %6805 = vst [vmem:[#allocation81_spill] sm:$0xff] %v5128_v10  ;;  %v6809_v27 = vld [vmem:[#allocation33_spill] sm:$0xff]  ;;  %v6828_v10 = vld [vmem:[#allocation44_spill] sm:$0xff] }
 0x23e   :  { %v1376_v40 = vadd.f32 %v4973_v45, %v1336_v1  ;;  %v1377_v43 = vadd.f32 %v4977_v32, %v1337_v54  ;;  %v1537_v56 = vmul.f32 %v5055_v44, %v6802_v26  ;;  %v1538_v20 = vmul.f32 %v5059_v55, %v6802_v26  ;;  %v5121_v45 = vld [vmem:[#allocation2 + $0x28] sm:$0xff] }
 0x23f   :  { %2084 = vperm.xlu1 %3365, %v5091_v7   ;;  %v5094_v13 = vpop.permute.xlu1 %1636  ;;  %v5110_v53 = vmax.f32 %v1420_v8, 0.0  ;;  %v5112_v31 = vmax.f32 %v1421_v61, 0.0  ;;  %v6804_v48 = vmov 17   ;;  %v1543_v17 = vadd.f32 %v1535_v15, %v1503_v63  ;;  %v6814_v15 = vld [vmem:[#allocation34_spill] sm:$0xff] }
 0x240   :  { %v1544_v14 = vadd.f32 %v1536_v9, %v1504_v46  ;;  %v1541_v1 = vmul.f32 %v5055_v44, %v4925_v21  ;;  %v1542_v54 = vmul.f32 %v5059_v55, %v4925_v21  ;;  %v1547_v32 = vadd.f32 %v1539_v11, %v1507_v3  ;;  %v5191_v3 = vpop.permute.xlu0 %2722 }
 0x241   :  { %6803 = vst [vmem:[#allocation64_spill] sm:$0xff] %v5112_v31  ;;  %v1548_v8 = vadd.f32 %v1540_v58, %v1508_v35  ;;  %v1577_v18 = vmul.f32 %v5066_v41, %v4961_v28  ;;  %v1578_v6 = vmul.f32 %v5070_v5, %v4961_v28  ;;  %v1416_v42 = vadd.f32 %v5028_v29, %v1376_v40 }
 0x242   :  { %v1417_v44 = vadd.f32 %v5032_v49, %v1377_v43  ;;  %v1545_v37 = vadd.f32 %v1537_v56, %v1505_v12  ;;  %v1546_v21 = vadd.f32 %v1538_v20, %v1506_v30  ;;  %v5134_v55 = vrot.slane %v5005_v4, %v6764_v24  ;;  %v6815_v30 = vld [vmem:[#allocation113_spill] sm:$0xff]  ;;  %6816 = vst [vmem:[#allocation80_spill] sm:$0xff] %v5191_v3 }
 0x243   :  { %3367 = vset.pattern.permute.xlu1 %v6804_v48  ;;  %v5115_v60 = vpop.permute.xlu1 %1640  ;;  %v5138_v34 = vrot.slane %v5007_v16, %v6764_v24  ;;  %v5142_v62 = vrot.slane %v5110_v53, %v6752_v39  ;;  %v5146_v28 = vrot.slane %v5112_v31, %v6752_v39  ;;  %v5148_v29 = vadd.f32 %v1541_v1, %v1509_v36 }
 0x244   :  { %2116 = vperm.xlu1 %3367, %v5121_v45   ;;  %v5150_v49 = vadd.f32 %v1542_v54, %v1510_v22  ;;  %v1575_v47 = vmul.f32 %v5066_v41, %v6808_v57  ;;  %v1576_v25 = vmul.f32 %v5070_v5, %v6808_v57  ;;  %v1585_v50 = vadd.f32 %v1577_v18, %v1545_v37  ;;  %v6818_v18 = vld [vmem:[#allocation119_spill] sm:$0xff]  ;;  %v6822_v57 = vld [vmem:[#allocation38_spill] sm:$0xff] }
 0x245   :  { %6806 = vst [vmem:[#allocation130_spill] sm:$0xff] %v5142_v62  ;;  %6807 = vst [vmem:[#allocation179_spill] sm:$0xff] %v5146_v28  ;;  %v1586_v33 = vadd.f32 %v1578_v6, %v1546_v21  ;;  %v5161_v2 = vmul.f32 %v5142_v62, %v6809_v27  ;;  %v5165_v22 = vmul.f32 %v5146_v28, %v6809_v27  ;;  %v5167_v36 = vmax.f32 %v1416_v42, 0.0  ;;  %v1565_v3 = vpop.permute.xlu0 %1564  ;;  %v6832_v62 = vld [vmem:[#allocation102_spill] sm:$0xff] }
 0x246   :  { %v5169_v61 = vmax.f32 %v1417_v44, 0.0  ;;  %v5173_v63 = vrot.slane %v5110_v53, %v6756_v0  ;;  %v5177_v46 = vrot.slane %v5112_v31, %v6756_v0  ;;  %v1617_v9 = vmul.f32 %v5134_v55, %v6814_v15  ;;  %v5208_v44 = vld [vmem:[#allocation2 + $0x20] sm:$0xff] }
 0x247   :  { %6810 = vst [vmem:[#allocation84_spill] sm:$0xff] %v5161_v2  ;;  %6811 = vst [vmem:[#allocation72_spill] sm:$0xff] %v5165_v22  ;;  %v1618_v12 = vmul.f32 %v5138_v34, %v6814_v15  ;;  %v5185_v11 = vrot.slane %v5005_v4, %v6815_v30  ;;  %v5189_v58 = vrot.slane %v5007_v16, %v6815_v30  ;;  %v6817_v56 = vmov 18  }
 0x248   :  { %2120 = vperm.xlu1 %3367, %v4937_v51   ;;  %v5157_v38 = vpop.permute.xlu1 %1672  ;;  %6812 = vst [vmem:[#allocation99_spill] sm:$0xff] %v5173_v63  ;;  %6813 = vst [vmem:[#allocation152_spill] sm:$0xff] %v5177_v46  ;;  %v1579_v35 = vmul.f32 %v5066_v41, %v4984_v23  ;;  %v1580_v40 = vmul.f32 %v5070_v5, %v4984_v23  ;;  %v1583_v43 = vadd.f32 %v1575_v47, %v1543_v17  ;;  %v6833_v2 = vmov 19  }
 0x249   :  { %v1584_v26 = vadd.f32 %v1576_v25, %v1544_v14  ;;  %v1625_v1 = vadd.f32 %v1617_v9, %v1585_v50  ;;  %v1626_v54 = vadd.f32 %v1618_v12, %v1586_v33  ;;  %v5202_v6 = vrot.slane %v5005_v4, %v6818_v18  ;;  %v6819_v14 = vld [vmem:[#allocation47_spill] sm:$0xff]  ;;  %v6825_v9 = vld [vmem:[#allocation40_spill] sm:$0xff] }
 0x24a   :  { %v5206_v42 = vrot.slane %v5007_v16, %v6818_v18  ;;  %v1657_v23 = vmul.f32 %v5185_v11, %v5094_v13  ;;  %v1658_v17 = vmul.f32 %v5189_v58, %v5094_v13  ;;  %v5217_v37 = vmul.f32 %v5173_v63, %v6819_v14 }
 0x24b   :  { %v5221_v21 = vmul.f32 %v5177_v46, %v6819_v14  ;;  %v1655_v47 = vmul.f32 %v5185_v11, %v6822_v57  ;;  %v1656_v25 = vmul.f32 %v5189_v58, %v6822_v57  ;;  %v5229_v50 = vrot.slane %v5110_v53, %v6815_v30  ;;  %v6829_v46 = vld [vmem:[#allocation120_spill] sm:$0xff] }
 0x24c   :  { %3369 = vset.pattern.permute.xlu1 %v6817_v56  ;;  %v5198_v20 = vpop.permute.xlu1 %1680  ;;  %6820 = vst [vmem:[#allocation133_spill] sm:$0xff] %v5217_v37  ;;  %v5233_v13 = vrot.slane %v5112_v31, %v6815_v30  ;;  %v1587_v33 = vadd.f32 %v1579_v35, %v1547_v32  ;;  %v1588_v27 = vadd.f32 %v1580_v40, %v1548_v8  ;;  %v6834_v31 = vld [vmem:[#allocation168_spill] sm:$0xff] }
 0x24d   :  { %2152 = vperm.xlu1 %3369, %v5208_v44   ;;  %6821 = vst [vmem:[#allocation173_spill] sm:$0xff] %v5221_v21  ;;  %6823 = vst [vmem:[#allocation96_spill] sm:$0xff] %v5229_v50  ;;  %v5239_v12 = vmul.f32 %v5185_v11, %v6825_v9  ;;  %v5243_v56 = vmul.f32 %v5189_v58, %v6825_v9  ;;  %v1615_v14 = vmul.f32 %v5134_v55, %v5018_v59 }
 0x24e   :  { %6824 = vst [vmem:[#allocation159_spill] sm:$0xff] %v5233_v13  ;;  %v1616_v57 = vmul.f32 %v5138_v34, %v5018_v59  ;;  %v5252_v32 = vrot.slane %v5167_v36, %v6742_v19  ;;  %v5256_v8 = vrot.slane %v5169_v61, %v6742_v19  ;;  %v1665_v35 = vadd.f32 %v1657_v23, %v1625_v1 }
 0x24f   :  { %v1666_v40 = vadd.f32 %v1658_v17, %v1626_v54  ;;  %v5260_v9 = vmul.f32 %v5229_v50, %v4986_v52  ;;  %v5264_v59 = vmul.f32 %v5233_v13, %v4986_v52  ;;  %v1697_v21 = vmul.f32 %v5202_v6, %v6828_v10  ;;  %v6830_v52 = vld [vmem:[#allocation85_spill] sm:$0xff]  ;;  %v6831_v13 = vld [vmem:[#allocation54_spill] sm:$0xff] }
 0x250   :  { %v5235_v15 = vpop.permute.xlu1 %1684  ;;  %v1698_v37 = vmul.f32 %v5206_v42, %v6828_v10  ;;  %v5272_v63 = vrot.slane %v5005_v4, %v6829_v46  ;;  %v5276_v1 = vrot.slane %v5007_v16, %v6829_v46  ;;  %v1581_v54 = vmul.f32 %v5066_v41, %v1565_v3 }
 0x251   :  { %2160 = vperm.xlu1 %3369, %v4937_v51   ;;  %6826 = vst [vmem:[#allocation182_spill] sm:$0xff] %v5260_v9  ;;  %6827 = vst [vmem:[#allocation8_spill] sm:$0xff] %v5264_v59  ;;  %v1582_v23 = vmul.f32 %v5070_v5, %v1565_v3  ;;  %v5282_v17 = vrot.slane %v5167_v36, %v6830_v52  ;;  %v5286_v59 = vrot.slane %v5169_v61, %v6830_v52 }
 0x252   :  { %v1623_v10 = vadd.f32 %v1615_v14, %v1583_v43  ;;  %v1624_v9 = vadd.f32 %v1616_v57, %v1584_v26  ;;  %v1777_v16 = vmul.f32 %v5252_v32, %v6831_v13  ;;  %v1778_v41 = vmul.f32 %v5256_v8, %v6831_v13 }
 0x253   :  { %v1705_v5 = vadd.f32 %v1697_v21, %v1665_v35  ;;  %v1706_v3 = vadd.f32 %v1698_v37, %v1666_v40  ;;  %v1619_v22 = vmul.f32 %v5134_v55, %v6832_v62  ;;  %v1620_v43 = vmul.f32 %v5138_v34, %v6832_v62 }
 0x254   :  { %v1695_v26 = vmul.f32 %v5202_v6, %v5157_v38  ;;  %v1696_v14 = vmul.f32 %v5206_v42, %v5157_v38  ;;  %v1589_v13 = vadd.f32 %v1581_v54, %v5148_v29  ;;  %v1590_v37 = vadd.f32 %v1582_v23, %v5150_v49 }
 0x255   :  { %2164 = vperm.xlu1 %3369, %v5091_v7   ;;  %v1717_v4 = vpop.permute.xlu1 %1716  ;;  %v1659_v35 = vmul.f32 %v5185_v11, %v5115_v60  ;;  %v1660_v40 = vmul.f32 %v5189_v58, %v5115_v60  ;;  %v1664_v62 = vadd.f32 %v1656_v25, %v1624_v9  ;;  %v1621_v38 = vmul.f32 %v5134_v55, %v6834_v31 }
 0x256   :  { %v1737_v50 = vmul.f32 %v5272_v63, %v1717_v4  ;;  %v1738_v28 = vmul.f32 %v5276_v1, %v1717_v4  ;;  %v1663_v4 = vadd.f32 %v1655_v47, %v1623_v10  ;;  %v1622_v29 = vmul.f32 %v5138_v34, %v6834_v31  ;;  %v6835_v34 = vld [vmem:[#allocation48_spill] sm:$0xff] }
 0x257   :  { %v1627_v11 = vadd.f32 %v1619_v22, %v1587_v33  ;;  %v1704_v58 = vadd.f32 %v1696_v14, %v1664_v62  ;;  %v1629_v47 = vadd.f32 %v1621_v38, %v1589_v13  ;;  %v1699_v9 = vmul.f32 %v5202_v6, %v5198_v20 }
 0x258   :  { %v1745_v21 = vadd.f32 %v1737_v50, %v1705_v5  ;;  %v1746_v57 = vadd.f32 %v1738_v28, %v1706_v3  ;;  %v1628_v50 = vadd.f32 %v1620_v43, %v1588_v27  ;;  %v1703_v60 = vadd.f32 %v1695_v26, %v1663_v4 }
 0x259   :  { %3371 = vset.pattern.permute.xlu1 %v6833_v2  ;;  %v1721_v48 = vpop.permute.xlu1 %1720  ;;  %v1630_v25 = vadd.f32 %v1622_v29, %v1590_v37  ;;  %v1700_v55 = vmul.f32 %v5206_v42, %v5198_v20  ;;  %v1667_v54 = vadd.f32 %v1659_v35, %v1627_v11  ;;  %v1735_v23 = vmul.f32 %v5272_v63, %v6835_v34  ;;  %v6836_v37 = vld [vmem:[#allocation58_spill] sm:$0xff] }
 0x25a   :  { %2196 = vperm.xlu1 %3371, %v5121_v45   ;;  %v5315_v28 = vadd.f32 %v1777_v16, %v1745_v21  ;;  %v5317_v49 = vadd.f32 %v1778_v41, %v1746_v57  ;;  %v1668_v31 = vadd.f32 %v1660_v40, %v1628_v50  ;;  %v1736_v10 = vmul.f32 %v5276_v1, %v6835_v34 }
 0x25b   :  { %v1701_v22 = vmul.f32 %v5202_v6, %v5235_v15  ;;  %v1702_v33 = vmul.f32 %v5206_v42, %v5235_v15  ;;  %v1739_v27 = vmul.f32 %v5272_v63, %v1721_v48  ;;  %v1740_v16 = vmul.f32 %v5276_v1, %v1721_v48 }
 0x25c   :  { %v1743_v41 = vadd.f32 %v1735_v23, %v1703_v60  ;;  %v1744_v5 = vadd.f32 %v1736_v10, %v1704_v58  ;;  %v1707_v26 = vadd.f32 %v1699_v9, %v1667_v54  ;;  %v1708_v14 = vadd.f32 %v1700_v55, %v1668_v31  ;;  %v6838_v58 = vld [vmem:[#allocation50_spill] sm:$0xff] }
 0x25d   :  { %v1669_v6 = vadd.f32 %v5239_v12, %v1629_v47  ;;  %v1670_v13 = vadd.f32 %v5243_v56, %v1630_v25  ;;  %v1815_v48 = vmul.f32 %v5282_v17, %v6836_v37  ;;  %v1816_v21 = vmul.f32 %v5286_v59, %v6836_v37 }
 0x25e   :  { %2200 = vperm.xlu1 %3371, %v4937_v51   ;;  %v1753_v20 = vpop.permute.xlu1 %1752  ;;  %v1747_v40 = vadd.f32 %v1739_v27, %v1707_v26  ;;  %v1748_v4 = vadd.f32 %v1740_v16, %v1708_v14  ;;  %v6837_v62 = vmov 20   ;;  %v1741_v47 = vmul.f32 %v5272_v63, %v6838_v58 }
 0x25f   :  { %v1775_v3 = vmul.f32 %v5252_v32, %v1753_v20  ;;  %v1776_v43 = vmul.f32 %v5256_v8, %v1753_v20  ;;  %v1709_v57 = vadd.f32 %v1701_v22, %v1669_v6  ;;  %v1710_v35 = vadd.f32 %v1702_v33, %v1670_v13  ;;  %v6839_v22 = vld [vmem:[#allocation60_spill] sm:$0xff] }
 0x260   :  { %v1742_v25 = vmul.f32 %v5276_v1, %v6838_v58  ;;  %v1821_v33 = vmul.f32 %v5282_v17, %v6839_v22  ;;  %v1822_v63 = vmul.f32 %v5286_v59, %v6839_v22  ;;  %v1850_v1 = vrot.slane %v5167_v36, %v6752_v39 }
 0x261   :  { %v1783_v42 = vadd.f32 %v1775_v3, %v1743_v41  ;;  %v1784_v15 = vadd.f32 %v1776_v43, %v1744_v5  ;;  %v1749_v55 = vadd.f32 %v1741_v47, %v1709_v57  ;;  %v1854_v27 = vrot.slane %v5169_v61, %v6752_v39  ;;  %v6840_v43 = vld [vmem:[#allocation63_spill] sm:$0xff] }
 0x262   :  { %3373 = vset.pattern.permute.xlu1 %v6837_v62  ;;  %v1761_v38 = vpop.permute.xlu1 %1760  ;;  %v1750_v54 = vadd.f32 %v1742_v25, %v1710_v35  ;;  %v1857_v26 = vmul.f32 %v1850_v1, %v6840_v43  ;;  %v6841_v6 = vmov 21  }
 0x263   :  { %v1779_v29 = vmul.f32 %v5252_v32, %v1761_v38  ;;  %v1780_v12 = vmul.f32 %v5256_v8, %v1761_v38  ;;  %2232 = vperm.xlu1 %3373, %v5208_v44   ;;  %v1823_v56 = vadd.f32 %v1815_v48, %v1783_v42  ;;  %v1824_v11 = vadd.f32 %v1816_v21, %v1784_v15 }
 0x264   :  { %v1858_v14 = vmul.f32 %v1854_v27, %v6840_v43 }
 0x265   :  { %v1787_v50 = vadd.f32 %v1779_v29, %v1747_v40  ;;  %v1788_v60 = vadd.f32 %v1780_v12, %v1748_v4  ;;  %v6843_v12 = vmov 22  }
 0x266   :  { %v1765_v9 = vpop.permute.xlu1 %1764 }
 0x267   :  { %v1781_v31 = vmul.f32 %v5252_v32, %v1765_v9  ;;  %v1782_v34 = vmul.f32 %v5256_v8, %v1765_v9  ;;  %2240 = vperm.xlu1 %3373, %v4937_v51  }
 0x269   :  { %v1789_v23 = vadd.f32 %v1781_v31, %v1749_v55  ;;  %v1790_v10 = vadd.f32 %v1782_v34, %v1750_v54 }
 0x26b   :  { %2244 = vperm.xlu1 %3373, %v5091_v7   ;;  %v1797_v32 = vpop.permute.xlu1 %1796  ;;  %v1829_v8 = vadd.f32 %v1821_v33, %v1789_v23  ;;  %v1830_v16 = vadd.f32 %v1822_v63, %v1790_v10  ;;  %v6844_v23 = vld [vmem:[#allocation70_spill] sm:$0xff]  ;;  %v1930_v33 = vrot.slane %v5167_v36, %v6764_v24  ;;  %v1934_v63 = vrot.slane %v5169_v61, %v6764_v24 }
 0x26c   :  { %v1817_v20 = vmul.f32 %v5282_v17, %v1797_v32  ;;  %v1818_v41 = vmul.f32 %v5286_v59, %v1797_v32 }
 0x26e   :  { %v1825_v5 = vadd.f32 %v1817_v20, %v5315_v28  ;;  %v1826_v3 = vadd.f32 %v1818_v41, %v5317_v49  ;;  %v1890_v28 = vrot.slane %v5167_v36, %v6756_v0  ;;  %v1894_v49 = vrot.slane %v5169_v61, %v6756_v0 }
 0x26f   :  { %3375 = vset.pattern.permute.xlu1 %v6841_v6  ;;  %v1801_v13 = vpop.permute.xlu1 %1800 }
 0x270   :  { %v1819_v42 = vmul.f32 %v5282_v17, %v1801_v13  ;;  %v1820_v15 = vmul.f32 %v5286_v59, %v1801_v13  ;;  %2276 = vperm.xlu1 %3375, %v5121_v45   ;;  %v1865_v37 = vadd.f32 %v1857_v26, %v1825_v5  ;;  %v1866_v48 = vadd.f32 %v1858_v14, %v1826_v3  ;;  %v6842_v59 = vld [vmem:[#allocation68_spill] sm:$0xff] }
 0x271   :  { %v1895_v38 = vmul.f32 %v1890_v28, %v6842_v59  ;;  %v1896_v29 = vmul.f32 %v1894_v49, %v6842_v59  ;;  %v1901_v10 = vmul.f32 %v1890_v28, %v6844_v23  ;;  %v1902_v22 = vmul.f32 %v1894_v49, %v6844_v23 }
 0x272   :  { %v1827_v21 = vadd.f32 %v1819_v42, %v1787_v50  ;;  %v1828_v57 = vadd.f32 %v1820_v15, %v1788_v60  ;;  %v6846_v26 = vmov 23  }
 0x274   :  { %2280 = vperm.xlu1 %3375, %v4937_v51   ;;  %v1833_v35 = vpop.permute.xlu1 %1832 }
 0x275   :  { %v1855_v40 = vmul.f32 %v1850_v1, %v1833_v35  ;;  %v1856_v4 = vmul.f32 %v1854_v27, %v1833_v35 }
 0x277   :  { %v1863_v17 = vadd.f32 %v1855_v40, %v1823_v56  ;;  %v1864_v62 = vadd.f32 %v1856_v4, %v1824_v11  ;;  %v5395_v40 = vrot.slane %v5167_v36, %v6815_v30 }
 0x278   :  { %3377 = vset.pattern.permute.xlu1 %v6843_v12  ;;  %v1841_v50 = vpop.permute.xlu1 %1840  ;;  %v6961_v12 = vmov 1  }
 0x279   :  { %v1859_v60 = vmul.f32 %v1850_v1, %v1841_v50  ;;  %v1860_v58 = vmul.f32 %v1854_v27, %v1841_v50  ;;  %2312 = vperm.xlu1 %3377, %v5208_v44   ;;  %v1903_v47 = vadd.f32 %v1895_v38, %v1863_v17  ;;  %v1904_v25 = vadd.f32 %v1896_v29, %v1864_v62  ;;  %v6847_v62 = vld [vmem:[#allocation78_spill] sm:$0xff] }
 0x27a   :  { %v1975_v59 = vmul.f32 %v5395_v40, %v6847_v62  ;;  %v6848_v29 = vmov 24  }
 0x27b   :  { %v1867_v9 = vadd.f32 %v1859_v60, %v1827_v21  ;;  %v1868_v55 = vadd.f32 %v1860_v58, %v1828_v57 }
 0x27c   :  { %v1845_v54 = vpop.permute.xlu1 %1844 }
 0x27d   :  { %v1861_v31 = vmul.f32 %v1850_v1, %v1845_v54  ;;  %v1862_v34 = vmul.f32 %v1854_v27, %v1845_v54  ;;  %2320 = vperm.xlu1 %3377, %v4937_v51   ;;  %v6849_v54 = vld [vmem:[#allocation12_spill] sm:$0xff] }
 0x27f   :  { %v1869_v56 = vadd.f32 %v1861_v31, %v1829_v8  ;;  %v1870_v11 = vadd.f32 %v1862_v34, %v1830_v16  ;;  %v6845_v16 = vld [vmem:[#allocation73_spill] sm:$0xff]  ;;  %v6851_v31 = vld [vmem:[#allocation103_spill] sm:$0xff] }
 0x280   :  { %v1937_v3 = vmul.f32 %v1930_v33, %v6845_v16  ;;  %v1938_v43 = vmul.f32 %v1934_v63, %v6845_v16  ;;  %v179_v34 = vmul.f32 %v6851_v31, %v6849_v54  ;;  %v6857_v16 = vld [vmem:[#allocation107_spill] sm:$0xff] }
 0x281   :  { %2324 = vperm.xlu1 %3377, %v5091_v7   ;;  %v1877_v32 = vpop.permute.xlu1 %1876  ;;  %v1909_v20 = vadd.f32 %v1901_v10, %v1869_v56  ;;  %v1910_v1 = vadd.f32 %v1902_v22, %v1870_v11  ;;  %v6852_v56 = vld [vmem:[#allocation16_spill] sm:$0xff]  ;;  %v6853_v11 = vld [vmem:[#allocation101_spill] sm:$0xff] }
 0x282   :  { %v1897_v27 = vmul.f32 %v1890_v28, %v1877_v32  ;;  %v1898_v41 = vmul.f32 %v1894_v49, %v1877_v32  ;;  %v210_v23 = vmul.f32 %v6853_v11, %v6852_v56  ;;  %v6854_v10 = vld [vmem:[#allocation104_spill] sm:$0xff] }
 0x283   :  { %v211_v22 = vmul.f32 %v6854_v10, %v6852_v56 }
 0x284   :  { %v1905_v5 = vadd.f32 %v1897_v27, %v1865_v37  ;;  %v1906_v8 = vadd.f32 %v1898_v41, %v1866_v48  ;;  %v5399_v37 = vrot.slane %v5169_v61, %v6815_v30  ;;  %v6855_v41 = vld [vmem:[#allocation20_spill] sm:$0xff] }
 0x285   :  { %3379 = vset.pattern.permute.xlu1 %v6846_v26  ;;  %v1881_v14 = vpop.permute.xlu1 %1880 }
 0x286   :  { %v1899_v13 = vmul.f32 %v1890_v28, %v1881_v14  ;;  %v1900_v42 = vmul.f32 %v1894_v49, %v1881_v14  ;;  %2356 = vperm.xlu1 %3379, %v5121_v45   ;;  %v1945_v15 = vadd.f32 %v1937_v3, %v1905_v5  ;;  %v1946_v21 = vadd.f32 %v1938_v43, %v1906_v8  ;;  %v6856_v5 = vld [vmem:[#allocation106_spill] sm:$0xff] }
 0x287   :  { %v1976_v38 = vmul.f32 %v5399_v37, %v6847_v62  ;;  %v250_v8 = vmul.f32 %v6856_v5, %v6855_v41  ;;  %v251_v3 = vmul.f32 %v6857_v16, %v6855_v41  ;;  %v6861_v62 = vld [vmem:[#allocation79_spill] sm:$0xff] }
 0x288   :  { %v1907_v57 = vadd.f32 %v1899_v13, %v1867_v9  ;;  %v1908_v35 = vadd.f32 %v1900_v42, %v1868_v55  ;;  %v219_v42 = vadd.f32 %v211_v22, %v179_v34  ;;  %v6865_v22 = vld [vmem:[#allocation32_spill] sm:$0xff]  ;;  %v6866_v41 = vld [vmem:[#allocation115_spill] sm:$0xff] }
 0x289   :  { %v370_v5 = vmul.f32 %v6866_v41, %v6865_v22 }
 0x28a   :  { %2360 = vperm.xlu1 %3379, %v4937_v51   ;;  %v1913_v48 = vpop.permute.xlu1 %1912 }
 0x28b   :  { %v1935_v4 = vmul.f32 %v1930_v33, %v1913_v48  ;;  %v1936_v28 = vmul.f32 %v1934_v63, %v1913_v48  ;;  %v6858_v48 = vld [vmem:[#allocation24_spill] sm:$0xff] }
 0x28d   :  { %v1943_v49 = vadd.f32 %v1935_v4, %v1903_v47  ;;  %v1944_v17 = vadd.f32 %v1936_v28, %v1904_v25  ;;  %v6850_v47 = vld [vmem:[#allocation100_spill] sm:$0xff] }
 0x28e   :  { %3381 = vset.pattern.permute.xlu1 %v6848_v29  ;;  %v1921_v50 = vpop.permute.xlu1 %1920  ;;  %v178_v25 = vmul.f32 %v6850_v47, %v6849_v54  ;;  %v6859_v4 = vld [vmem:[#allocation108_spill] sm:$0xff]  ;;  %v6863_v54 = vld [vmem:[#allocation114_spill] sm:$0xff] }
 0x28f   :  { %v1939_v60 = vmul.f32 %v1930_v33, %v1921_v50  ;;  %v1940_v58 = vmul.f32 %v1934_v63, %v1921_v50  ;;  %2392 = vperm.xlu1 %3381, %v5208_v44   ;;  %v5408_v9 = vadd.f32 %v1975_v59, %v1943_v49  ;;  %v5410_v55 = vadd.f32 %v1976_v38, %v1944_v17  ;;  %v6860_v49 = vld [vmem:[#allocation110_spill] sm:$0xff] }
 0x290   :  { %v218_v13 = vadd.f32 %v210_v23, %v178_v25  ;;  %v290_v28 = vmul.f32 %v6859_v4, %v6858_v48  ;;  %v1981_v59 = vmul.f32 %v5395_v40, %v6861_v62  ;;  %v1982_v38 = vmul.f32 %v5399_v37, %v6861_v62  ;;  %v6869_v4 = vld [vmem:[#allocation36_spill] sm:$0xff] }
 0x291   :  { %v1947_v32 = vadd.f32 %v1939_v60, %v1907_v57  ;;  %v1948_v27 = vadd.f32 %v1940_v58, %v1908_v35  ;;  %v291_v57 = vmul.f32 %v6860_v49, %v6858_v48  ;;  %v5435_v50 = vrot.slane %v5167_v36, %v6818_v18  ;;  %v6862_v58 = vld [vmem:[#allocation28_spill] sm:$0xff]  ;;  %v6870_v49 = vld [vmem:[#allocation122_spill] sm:$0xff] }
 0x292   :  { %v1925_v43 = vpop.permute.xlu1 %1924  ;;  %v5439_v60 = vrot.slane %v5169_v61, %v6818_v18 }
 0x293   :  { %v1941_v26 = vmul.f32 %v1930_v33, %v1925_v43  ;;  %v1942_v14 = vmul.f32 %v1934_v63, %v1925_v43  ;;  %2400 = vperm.xlu1 %3381, %v4937_v51   ;;  %v258_v33 = vadd.f32 %v250_v8, %v218_v13  ;;  %v259_v63 = vadd.f32 %v251_v3, %v219_v42  ;;  %v6867_v8 = vld [vmem:[#allocation117_spill] sm:$0xff] }
 0x294   :  { %v371_v16 = vmul.f32 %v6867_v8, %v6865_v22  ;;  %v6877_v22 = vld [vmem:[#allocation128_spill] sm:$0xff] }
 0x295   :  { %v1949_v35 = vadd.f32 %v1941_v26, %v1909_v20  ;;  %v1950_v17 = vadd.f32 %v1942_v14, %v1910_v1  ;;  %v330_v20 = vmul.f32 %v6863_v54, %v6862_v58  ;;  %v6864_v1 = vld [vmem:[#allocation116_spill] sm:$0xff]  ;;  %v298_v23 = vadd.f32 %v290_v28, %v258_v33  ;;  %v6868_v26 = vld [vmem:[#allocation83_spill] sm:$0xff] }
 0x296   :  { %v331_v47 = vmul.f32 %v6864_v1, %v6862_v58  ;;  %v299_v10 = vadd.f32 %v291_v57, %v259_v63  ;;  %v2017_v14 = vmul.f32 %v5435_v50, %v6868_v26  ;;  %v2018_v13 = vmul.f32 %v5439_v60, %v6868_v26  ;;  %v6871_v57 = vld [vmem:[#allocation124_spill] sm:$0xff]  ;;  %v6873_v58 = vld [vmem:[#allocation41_spill] sm:$0xff]  ;;  %v6874_v54 = vld [vmem:[#allocation123_spill] sm:$0xff] }
 0x297   :  { %2404 = vperm.xlu1 %3381, %v5091_v7   ;;  %v1957_v25 = vpop.permute.xlu1 %1956  ;;  %v5446_v31 = vadd.f32 %v1981_v59, %v1949_v35  ;;  %v5448_v34 = vadd.f32 %v1982_v38, %v1950_v17  ;;  %v338_v42 = vadd.f32 %v330_v20, %v298_v23  ;;  %v410_v28 = vmul.f32 %v6870_v49, %v6869_v4  ;;  %v6875_v1 = vld [vmem:[#allocation125_spill] sm:$0xff] }
 0x298   :  { %v1977_v56 = vmul.f32 %v5395_v40, %v1957_v25  ;;  %v1978_v11 = vmul.f32 %v5399_v37, %v1957_v25  ;;  %v339_v48 = vadd.f32 %v331_v47, %v299_v10  ;;  %v411_v35 = vmul.f32 %v6871_v57, %v6869_v4  ;;  %v6876_v10 = vld [vmem:[#allocation45_spill] sm:$0xff]  ;;  %v6882_v4 = vld [vmem:[#allocation95_spill] sm:$0xff] }
 0x299   :  { %v6872_v17 = vmov 25   ;;  %v378_v33 = vadd.f32 %v370_v5, %v338_v42  ;;  %v450_v20 = vmul.f32 %v6874_v54, %v6873_v58  ;;  %v451_v47 = vmul.f32 %v6875_v1, %v6873_v58  ;;  %v6878_v5 = vld [vmem:[#allocation131_spill] sm:$0xff] }
 0x29a   :  { %v1985_v3 = vadd.f32 %v1977_v56, %v1945_v15  ;;  %v1986_v43 = vadd.f32 %v1978_v11, %v1946_v21  ;;  %v379_v63 = vadd.f32 %v371_v16, %v339_v48  ;;  %v490_v41 = vmul.f32 %v6877_v22, %v6876_v10 }
 0x29b   :  { %3383 = vset.pattern.permute.xlu1 %v6872_v17  ;;  %v1961_v62 = vpop.permute.xlu1 %1960  ;;  %v418_v11 = vadd.f32 %v410_v28, %v378_v33  ;;  %v491_v8 = vmul.f32 %v6878_v5, %v6876_v10  ;;  %v6885_v33 = vld [vmem:[#allocation138_spill] sm:$0xff]  ;;  %v6886_v58 = vmov 26   ;;  %v6888_v10 = vld [vmem:[#allocation137_spill] sm:$0xff] }
 0x29c   :  { %v1979_v15 = vmul.f32 %v5395_v40, %v1961_v62  ;;  %v1980_v21 = vmul.f32 %v5399_v37, %v1961_v62  ;;  %2436 = vperm.xlu1 %3383, %v5121_v45   ;;  %v5468_v59 = vadd.f32 %v2017_v14, %v1985_v3  ;;  %v5470_v38 = vadd.f32 %v2018_v13, %v1986_v43  ;;  %v6879_v43 = vld [vmem:[#allocation49_spill] sm:$0xff]  ;;  %v6881_v14 = vld [vmem:[#allocation132_spill] sm:$0xff] }
 0x29d   :  { %v5478_v40 = vrot.slane %v5167_v36, %v6829_v46  ;;  %v5482_v37 = vrot.slane %v5169_v61, %v6829_v46  ;;  %v419_v23 = vadd.f32 %v411_v35, %v379_v63  ;;  %v458_v16 = vadd.f32 %v450_v20, %v418_v11  ;;  %v6880_v61 = vld [vmem:[#allocation129_spill] sm:$0xff] }
 0x29e   :  { %v1987_v25 = vadd.f32 %v1979_v15, %v1947_v32  ;;  %v1988_v56 = vadd.f32 %v1980_v21, %v1948_v27  ;;  %v530_v26 = vmul.f32 %v6880_v61, %v6879_v43  ;;  %v531_v13 = vmul.f32 %v6881_v14, %v6879_v43  ;;  %v6883_v62 = vld [vmem:[#allocation53_spill] sm:$0xff]  ;;  %v6884_v15 = vld [vmem:[#allocation136_spill] sm:$0xff]  ;;  %v6892_v61 = vld [vmem:[#allocation143_spill] sm:$0xff] }
 0x29f   :  { %v459_v3 = vadd.f32 %v451_v47, %v419_v23  ;;  %v2055_v49 = vmul.f32 %v5478_v40, %v6882_v4  ;;  %v2056_v28 = vmul.f32 %v5482_v37, %v6882_v4  ;;  %v498_v57 = vadd.f32 %v490_v41, %v458_v16  ;;  %v6887_v23 = vld [vmem:[#allocation57_spill] sm:$0xff]  ;;  %v6889_v41 = vld [vmem:[#allocation139_spill] sm:$0xff] }
 0x2a0   :  { %2440 = vperm.xlu1 %3383, %v4937_v51   ;;  %v1993_v32 = vpop.permute.xlu1 %1992  ;;  %v570_v21 = vmul.f32 %v6884_v15, %v6883_v62  ;;  %v571_v63 = vmul.f32 %v6885_v33, %v6883_v62  ;;  %v610_v22 = vmul.f32 %v6888_v10, %v6887_v23  ;;  %v611_v5 = vmul.f32 %v6889_v41, %v6887_v23  ;;  %v6890_v16 = vld [vmem:[#allocation61_spill] sm:$0xff]  ;;  %v6901_v41 = vld [vmem:[#allocation148_spill] sm:$0xff] }
 0x2a1   :  { %v2015_v27 = vmul.f32 %v5435_v50, %v1993_v32  ;;  %v2016_v36 = vmul.f32 %v5439_v60, %v1993_v32  ;;  %v499_v35 = vadd.f32 %v491_v8, %v459_v3  ;;  %v538_v47 = vadd.f32 %v530_v26, %v498_v57  ;;  %v6891_v3 = vld [vmem:[#allocation141_spill] sm:$0xff] }
 0x2a2   :  { %v650_v43 = vmul.f32 %v6891_v3, %v6890_v16  ;;  %v651_v14 = vmul.f32 %v6892_v61, %v6890_v16  ;;  %v6896_v15 = vld [vmem:[#allocation97_spill] sm:$0xff] }
 0x2a3   :  { %v2023_v42 = vadd.f32 %v2015_v27, %v5408_v9  ;;  %v2024_v48 = vadd.f32 %v2016_v36, %v5410_v55  ;;  %v539_v11 = vadd.f32 %v531_v13, %v499_v35  ;;  %v578_v27 = vadd.f32 %v570_v21, %v538_v47  ;;  %v6897_v33 = vld [vmem:[#allocation69_spill] sm:$0xff] }
 0x2a4   :  { %3385 = vset.pattern.permute.xlu1 %v6886_v58  ;;  %v2001_v54 = vpop.permute.xlu1 %2000  ;;  %v2061_v21 = vmul.f32 %v5478_v40, %v6896_v15 }
 0x2a5   :  { %v2019_v9 = vmul.f32 %v5435_v50, %v2001_v54  ;;  %v2020_v55 = vmul.f32 %v5439_v60, %v2001_v54  ;;  %2472 = vperm.xlu1 %3385, %v5208_v44   ;;  %v5509_v20 = vadd.f32 %v2055_v49, %v2023_v42  ;;  %v5511_v1 = vadd.f32 %v2056_v28, %v2024_v48  ;;  %v6893_v49 = vld [vmem:[#allocation66_spill] sm:$0xff]  ;;  %v6895_v28 = vld [vmem:[#allocation144_spill] sm:$0xff] }
 0x2a6   :  { %v579_v36 = vadd.f32 %v571_v63, %v539_v11  ;;  %v618_v48 = vadd.f32 %v610_v22, %v578_v27  ;;  %v691_v57 = vmul.f32 %v6895_v28, %v6893_v49  ;;  %v6898_v63 = vld [vmem:[#allocation147_spill] sm:$0xff]  ;;  %v6899_v54 = vld [vmem:[#allocation150_spill] sm:$0xff] }
 0x2a7   :  { %v2027_v8 = vadd.f32 %v2019_v9, %v1987_v25  ;;  %v2028_v32 = vadd.f32 %v2020_v55, %v1988_v56  ;;  %v6894_v25 = vld [vmem:[#allocation142_spill] sm:$0xff]  ;;  %v730_v58 = vmul.f32 %v6898_v63, %v6897_v33  ;;  %v731_v9 = vmul.f32 %v6899_v54, %v6897_v33  ;;  %v6902_v27 = vld [vmem:[#allocation151_spill] sm:$0xff] }
 0x2a8   :  { %v2005_v42 = vpop.permute.xlu1 %2004  ;;  %v619_v4 = vadd.f32 %v611_v5, %v579_v36  ;;  %v690_v56 = vmul.f32 %v6894_v25, %v6893_v49  ;;  %v6900_v22 = vld [vmem:[#allocation74_spill] sm:$0xff] }
 0x2a9   :  { %v2021_v26 = vmul.f32 %v5435_v50, %v2005_v42  ;;  %v2022_v13 = vmul.f32 %v5439_v60, %v2005_v42  ;;  %2480 = vperm.xlu1 %3385, %v4937_v51   ;;  %v2062_v50 = vmul.f32 %v5482_v37, %v6896_v15  ;;  %v658_v60 = vadd.f32 %v650_v43, %v618_v48  ;;  %v6907_v28 = vld [vmem:[#allocation82_spill] sm:$0xff] }
 0x2aa   :  { %v659_v51 = vadd.f32 %v651_v14, %v619_v4  ;;  %v770_v5 = vmul.f32 %v6901_v41, %v6900_v22  ;;  %v771_v36 = vmul.f32 %v6902_v27, %v6900_v22  ;;  %v6903_v14 = vmov 27   ;;  %v6906_v4 = vld [vmem:[#allocation156_spill] sm:$0xff]  ;;  %v6910_v33 = vld [vmem:[#allocation90_spill] sm:$0xff]  ;;  %v6917_v27 = vld [vmem:[#allocation167_spill] sm:$0xff] }
 0x2ab   :  { %v2029_v35 = vadd.f32 %v2021_v26, %v5446_v31  ;;  %v2030_v62 = vadd.f32 %v2022_v13, %v5448_v34  ;;  %v698_v23 = vadd.f32 %v690_v56, %v658_v60  ;;  %v6904_v26 = vld [vmem:[#allocation77_spill] sm:$0xff]  ;;  %v6905_v13 = vld [vmem:[#allocation154_spill] sm:$0xff] }
 0x2ac   :  { %v699_v10 = vadd.f32 %v691_v57, %v659_v51  ;;  %v810_v48 = vmul.f32 %v6905_v13, %v6904_v26  ;;  %v811_v49 = vmul.f32 %v6906_v4, %v6904_v26  ;;  %v6908_v57 = vld [vmem:[#allocation155_spill] sm:$0xff]  ;;  %v5575_v54 = vld [vmem:[#allocation2 + $0x30] sm:$0xff] }
 0x2ad   :  { %2484 = vperm.xlu1 %3385, %v5091_v7   ;;  %v2037_v55 = vpop.permute.xlu1 %2036  ;;  %v5539_v31 = vadd.f32 %v2061_v21, %v2029_v35  ;;  %v5541_v34 = vadd.f32 %v2062_v50, %v2030_v62  ;;  %v738_v43 = vadd.f32 %v730_v58, %v698_v23  ;;  %v850_v35 = vmul.f32 %v6908_v57, %v6907_v28  ;;  %v6909_v62 = vld [vmem:[#allocation157_spill] sm:$0xff]  ;;  %v6915_v23 = vld [vmem:[#allocation164_spill] sm:$0xff]  ;;  %v6920_v4 = vld [vmem:[#allocation126_spill] sm:$0xff] }
 0x2ae   :  { %v2057_v47 = vmul.f32 %v5478_v40, %v2037_v55  ;;  %v2058_v11 = vmul.f32 %v5482_v37, %v2037_v55  ;;  %v739_v61 = vadd.f32 %v731_v9, %v699_v10  ;;  %v851_v15 = vmul.f32 %v6909_v62, %v6907_v28  ;;  %v6923_v57 = vld [vmem:[#allocation134_spill] sm:$0xff] }
 0x2b0   :  { %v5550_v16 = vadd.f32 %v2057_v47, %v5468_v59  ;;  %v5553_v3 = vadd.f32 %v2058_v11, %v5470_v38  ;;  %v778_v59 = vadd.f32 %v770_v5, %v738_v43  ;;  %v779_v38 = vadd.f32 %v771_v36, %v739_v61  ;;  %v6914_v11 = vld [vmem:[#allocation161_spill] sm:$0xff] }
 0x2b1   :  { %3387 = vset.pattern.permute.xlu1 %v6903_v14  ;;  %v2041_v42 = vpop.permute.xlu1 %2040  ;;  %v6916_v5 = vld [vmem:[#allocation109_spill] sm:$0xff] }
 0x2b2   :  { %v2059_v25 = vmul.f32 %v5478_v40, %v2041_v42  ;;  %v2060_v56 = vmul.f32 %v5482_v37, %v2041_v42  ;;  %2516 = vperm.xlu1 %3387, %v5121_v45   ;;  %v818_v60 = vadd.f32 %v810_v48, %v778_v59  ;;  %v819_v51 = vadd.f32 %v811_v49, %v779_v38  ;;  %v6911_v40 = vld [vmem:[#allocation160_spill] sm:$0xff]  ;;  %v6912_v37 = vld [vmem:[#allocation163_spill] sm:$0xff]  ;;  %v6918_v43 = vld [vmem:[#allocation169_spill] sm:$0xff] }
 0x2b3   :  { %v890_v63 = vmul.f32 %v6911_v40, %v6910_v33  ;;  %v891_v58 = vmul.f32 %v6912_v37, %v6910_v33  ;;  %v970_v36 = vmul.f32 %v6917_v27, %v6916_v5  ;;  %v971_v61 = vmul.f32 %v6918_v43, %v6916_v5  ;;  %v6921_v49 = vld [vmem:[#allocation170_spill] sm:$0xff]  ;;  %v6927_v37 = vld [vmem:[#allocation180_spill] sm:$0xff] }
 0x2b4   :  { %v5567_v21 = vadd.f32 %v2059_v25, %v2027_v8  ;;  %v5569_v50 = vadd.f32 %v2060_v56, %v2028_v32  ;;  %v858_v55 = vadd.f32 %v850_v35, %v818_v60  ;;  %v859_v47 = vadd.f32 %v851_v15, %v819_v51  ;;  %v6913_v8 = vld [vmem:[#allocation98_spill] sm:$0xff]  ;;  %v6922_v56 = vld [vmem:[#allocation171_spill] sm:$0xff]  ;;  %v6925_v15 = vld [vmem:[#allocation37_spill] sm:$0xff] }
 0x2b5   :  { %v930_v32 = vmul.f32 %v6914_v11, %v6913_v8  ;;  %v931_v10 = vmul.f32 %v6915_v23, %v6913_v8  ;;  %v6919_v42 = vmov 28   ;;  %v1010_v25 = vmul.f32 %v6921_v49, %v6920_v4  ;;  %v6924_v35 = vld [vmem:[#allocation27_spill] sm:$0xff]  ;;  %v6932_v43 = vld [vmem:[#allocation172_spill] sm:$0xff] }
 0x2b6   :  { %2520 = vperm.xlu1 %3387, %v5575_v54   ;;  %v5578_v9 = vpop.permute.xlu1 %2072  ;;  %v898_v22 = vadd.f32 %v890_v63, %v858_v55  ;;  %v899_v41 = vadd.f32 %v891_v58, %v859_v47  ;;  %v1011_v59 = vmul.f32 %v6922_v56, %v6920_v4  ;;  %v1050_v62 = vmul.f32 %v6924_v35, %v6923_v57  ;;  %v6926_v63 = vld [vmem:[#allocation146_spill] sm:$0xff]  ;;  %v6928_v55 = vld [vmem:[#allocation181_spill] sm:$0xff]  ;;  %v6930_v23 = vld [vmem:[#allocation75_spill] sm:$0xff] }
 0x2b7   :  { %v1051_v60 = vmul.f32 %v6925_v15, %v6923_v57  ;;  %v1090_v58 = vmul.f32 %v6927_v37, %v6926_v63  ;;  %v1091_v47 = vmul.f32 %v6928_v55, %v6926_v63  ;;  %v6935_v56 = vld [vmem:[#allocation175_spill] sm:$0xff]  ;;  %v6938_v35 = vmov 29  }
 0x2b8   :  { %v938_v13 = vadd.f32 %v930_v32, %v898_v22  ;;  %v939_v48 = vadd.f32 %v931_v10, %v899_v41  ;;  %v6929_v32 = vld [vmem:[#allocation158_spill] sm:$0xff]  ;;  %v6931_v22 = vld [vmem:[#allocation31_spill] sm:$0xff] }
 0x2b9   :  { %v1130_v10 = vmul.f32 %v6930_v23, %v6929_v32  ;;  %v1131_v41 = vmul.f32 %v6931_v22, %v6929_v32  ;;  %v6941_v37 = vld [vmem:[#allocation111_spill] sm:$0xff]  ;;  %v6944_v23 = vld [vmem:[#allocation86_spill] sm:$0xff] }
 0x2ba   :  { %3389 = vset.pattern.permute.xlu1 %v6919_v42  ;;  %v5589_v26 = vpop.permute.xlu1 %2080  ;;  %v978_v38 = vadd.f32 %v970_v36, %v938_v13  ;;  %v979_v28 = vadd.f32 %v971_v61, %v939_v48  ;;  %v6933_v61 = vld [vmem:[#allocation42_spill] sm:$0xff]  ;;  %v6934_v48 = vld [vmem:[#allocation67_spill] sm:$0xff] }
 0x2bb   :  { %2552 = vperm.xlu1 %3389, %v5208_v44   ;;  %v1170_v13 = vmul.f32 %v6933_v61, %v6932_v43  ;;  %v1171_v4 = vmul.f32 %v6934_v48, %v6932_v43  ;;  %v6947_v61 = vld [vmem:[#allocation17_spill] sm:$0xff] }
 0x2bc   :  { %v1018_v33 = vadd.f32 %v1010_v25, %v978_v38  ;;  %v1019_v40 = vadd.f32 %v1011_v59, %v979_v28  ;;  %v6936_v59 = vld [vmem:[#allocation39_spill] sm:$0xff]  ;;  %v6937_v28 = vld [vmem:[#allocation52_spill] sm:$0xff] }
 0x2bd   :  { %v1210_v38 = vmul.f32 %v6936_v59, %v6935_v56  ;;  %v1211_v57 = vmul.f32 %v6937_v28, %v6935_v56  ;;  %v6949_v56 = vld [vmem:[#allocation94_spill] sm:$0xff] }
 0x2be   :  { %v5600_v51 = vpop.permute.xlu1 %2084  ;;  %v1058_v8 = vadd.f32 %v1050_v62, %v1018_v33  ;;  %v1059_v11 = vadd.f32 %v1051_v60, %v1019_v40  ;;  %v6939_v33 = vld [vmem:[#allocation178_spill] sm:$0xff]  ;;  %v6940_v40 = vld [vmem:[#allocation76_spill] sm:$0xff] }
 0x2bf   :  { %2560 = vperm.xlu1 %3389, %v5575_v54   ;;  %v1250_v63 = vmul.f32 %v6940_v40, %v6939_v33  ;;  %v6953_v40 = vld [vmem:[#allocation93_spill] sm:$0xff] }
 0x2c0   :  { %v1098_v27 = vadd.f32 %v1090_v58, %v1058_v8  ;;  %v1099_v36 = vadd.f32 %v1091_v47, %v1059_v11  ;;  %v1251_v58 = vmul.f32 %v6941_v37, %v6939_v33  ;;  %v6942_v8 = vld [vmem:[#allocation46_spill] sm:$0xff]  ;;  %v6954_v37 = vmov 30  }
 0x2c1   :  { %v6943_v11 = vld [vmem:[#allocation62_spill] sm:$0xff] }
 0x2c2   :  { %v1138_v49 = vadd.f32 %v1130_v10, %v1098_v27  ;;  %v1139_v25 = vadd.f32 %v1131_v41, %v1099_v36  ;;  %v1290_v32 = vmul.f32 %v6943_v11, %v6942_v8  ;;  %v1291_v10 = vmul.f32 %v6944_v23, %v6942_v8  ;;  %v6945_v27 = vld [vmem:[#allocation55_spill] sm:$0xff]  ;;  %v6946_v36 = vld [vmem:[#allocation140_spill] sm:$0xff] }
 0x2c3   :  { %2564 = vperm.xlu1 %3389, %v5091_v7   ;;  %v5612_v5 = vpop.permute.xlu1 %2116  ;;  %v1330_v43 = vmul.f32 %v6946_v36, %v6945_v27 }
 0x2c4   :  { %v1178_v15 = vadd.f32 %v1170_v13, %v1138_v49  ;;  %v1179_v60 = vadd.f32 %v1171_v4, %v1139_v25  ;;  %v1331_v13 = vmul.f32 %v6947_v61, %v6945_v27  ;;  %v6948_v25 = vld [vmem:[#allocation25_spill] sm:$0xff]  ;;  %v6955_v61 = vmov 31  }
 0x2c5   :  { %v1370_v59 = vmul.f32 %v6949_v56, %v6948_v25 }
 0x2c6   :  { %v1218_v55 = vadd.f32 %v1210_v38, %v1178_v15  ;;  %v1219_v47 = vadd.f32 %v1211_v57, %v1179_v60  ;;  %v6950_v38 = vld [vmem:[#allocation9_spill] sm:$0xff]  ;;  %v6951_v15 = vld [vmem:[#allocation23_spill] sm:$0xff] }
 0x2c7   :  { %3391 = vset.pattern.permute.xlu1 %v6938_v35  ;;  %v5623_v62 = vpop.permute.xlu1 %2120  ;;  %v1371_v28 = vmul.f32 %v6950_v38, %v6948_v25  ;;  %v6952_v60 = vld [vmem:[#allocation91_spill] sm:$0xff]  ;;  %v6956_v25 = vld [vmem:[#allocation105_spill] sm:$0xff] }
 0x2c8   :  { %2596 = vperm.xlu1 %3391, %v5121_v45   ;;  %v1258_v22 = vadd.f32 %v1250_v63, %v1218_v55  ;;  %v1259_v41 = vadd.f32 %v1251_v58, %v1219_v47  ;;  %v1410_v33 = vmul.f32 %v6952_v60, %v6951_v15  ;;  %v1411_v63 = vmul.f32 %v6953_v40, %v6951_v15  ;;  %v6957_v38 = vld [vmem:[#allocation121_spill] sm:$0xff]  ;;  %v6959_v60 = vld [vmem:[#allocation135_spill] sm:$0xff] }
 0x2ca   :  { %v1298_v4 = vadd.f32 %v1290_v32, %v1258_v22  ;;  %v1299_v49 = vadd.f32 %v1291_v10, %v1259_v41 }
 0x2cc   :  { %2600 = vperm.xlu1 %3391, %v5575_v54   ;;  %v5639_v48 = vpop.permute.xlu1 %2152  ;;  %v1338_v57 = vadd.f32 %v1330_v43, %v1298_v4  ;;  %v1339_v35 = vadd.f32 %v1331_v13, %v1299_v49 }
 0x2ce   :  { %v1378_v55 = vadd.f32 %v1370_v59, %v1338_v57  ;;  %v1379_v47 = vadd.f32 %v1371_v28, %v1339_v35  ;;  %v6958_v35 = vld [vmem:[#allocation127_spill] sm:$0xff] }
 0x2d0   :  { %3392 = vset.pattern.permute.xlu1 %v6954_v37  ;;  %v5650_v58 = vpop.permute.xlu1 %2160  ;;  %v1418_v8 = vadd.f32 %v1410_v33, %v1378_v55  ;;  %v1419_v11 = vadd.f32 %v1411_v63, %v1379_v47 }
 0x2d1   :  { %2632 = vperm.xlu1 %3392, %v5208_v44  }
 0x2d2   :  { %v5656_v23 = vmax.f32 %v1418_v8, 0.0  ;;  %v5658_v10 = vmax.f32 %v1419_v11, 0.0 }
 0x2d4   :  { %v5653_v32 = vpop.permute.xlu1 %2164  ;;  %v2090_v41 = vrot.slane %v5656_v23, %v6742_v19  ;;  %v2094_v44 = vrot.slane %v5658_v10, %v6742_v19  ;;  %v2130_v27 = vrot.slane %v5656_v23, %v6830_v52  ;;  %v2134_v36 = vrot.slane %v5658_v10, %v6830_v52 }
 0x2d5   :  { %2640 = vperm.xlu1 %3392, %v5575_v54   ;;  %v5671_v43 = vrot.slane %v5656_v23, %v6752_v39  ;;  %v5683_v4 = vrot.slane %v5656_v23, %v6756_v0  ;;  %v5687_v49 = vrot.slane %v5658_v10, %v6756_v0  ;;  %v5710_v8 = vrot.slane %v5656_v23, %v6764_v24 }
 0x2d6   :  { %v2097_v56 = vmul.f32 %v2090_v41, %v6956_v25  ;;  %v2098_v59 = vmul.f32 %v2094_v44, %v6956_v25  ;;  %v2135_v28 = vmul.f32 %v2130_v27, %v6957_v38  ;;  %v2136_v57 = vmul.f32 %v2134_v36, %v6957_v38  ;;  %v6960_v25 = vld [vmem:[#allocation149_spill] sm:$0xff] }
 0x2d7   :  { %v5694_v15 = vmul.f32 %v2130_v27, %v6958_v35  ;;  %v2177_v33 = vmul.f32 %v5671_v43, %v6959_v60  ;;  %v2137_v63 = vmul.f32 %v2130_v27, %v5612_v5  ;;  %v2138_v55 = vmul.f32 %v2134_v36, %v5612_v5 }
 0x2d8   :  { %v5714_v11 = vrot.slane %v5658_v10, %v6764_v24  ;;  %v5718_v38 = vmul.f32 %v5683_v4, %v6960_v25  ;;  %v5730_v5 = vrot.slane %v5658_v10, %v6818_v18  ;;  %v2096_v0 = vmul.f32 %v2094_v44, %v5578_v9 }
 0x2d9   :  { %2644 = vperm.xlu1 %3392, %v5091_v7   ;;  %v2197_v22 = vpop.permute.xlu1 %2196  ;;  %v5675_v7 = vrot.slane %v5658_v10, %v6752_v39  ;;  %v2105_v39 = vadd.f32 %v2097_v56, %v5550_v16  ;;  %v2106_v37 = vadd.f32 %v2098_v59, %v5553_v3  ;;  %v2101_v42 = vmul.f32 %v2090_v41, %v5600_v51  ;;  %v6962_v16 = vld [vmem:[#allocation165_spill] sm:$0xff] }
 0x2da   :  { %v5740_v14 = vrot.slane %v5656_v23, %v6815_v30  ;;  %v2257_v3 = vmul.f32 %v5710_v8, %v6962_v16  ;;  %v2258_v56 = vmul.f32 %v5714_v11, %v6962_v16  ;;  %v2100_v59 = vmul.f32 %v2094_v44, %v5589_v26 }
 0x2db   :  { %v2178_v40 = vmul.f32 %v5675_v7, %v6959_v60  ;;  %v2095_v60 = vmul.f32 %v2090_v41, %v5578_v9  ;;  %v2145_v17 = vadd.f32 %v2137_v63, %v2105_v39  ;;  %v2146_v29 = vadd.f32 %v2138_v55, %v2106_v37  ;;  %v6963_v39 = vld [vmem:[#allocation29_spill] sm:$0xff] }
 0x2dc   :  { %v2338_v37 = vmul.f32 %v5730_v5, %v6963_v39  ;;  %v2104_v55 = vadd.f32 %v2096_v0, %v5511_v1  ;;  %v2139_v24 = vmul.f32 %v2130_v27, %v5623_v62  ;;  %v2140_v6 = vmul.f32 %v2134_v36, %v5623_v62 }
 0x2dd   :  { %3395 = vset.pattern.permute.xlu1 %v6955_v61  ;;  %v5678_v13 = vpop.permute.xlu1 %2200  ;;  %v2103_v63 = vadd.f32 %v2095_v60, %v5509_v20  ;;  %v2175_v61 = vmul.f32 %v5671_v43, %v5639_v48  ;;  %v2176_v20 = vmul.f32 %v5675_v7, %v5639_v48  ;;  %v2185_v60 = vadd.f32 %v2177_v33, %v2145_v17 }
 0x2de   :  { %2676 = vperm.xlu1 %3395, %v5121_v45   ;;  %v5697_v45 = vmul.f32 %v2134_v36, %v6958_v35  ;;  %v5722_v35 = vmul.f32 %v5687_v49, %v6960_v25  ;;  %v2102_v25 = vmul.f32 %v2094_v44, %v5600_v51  ;;  %v2099_v51 = vmul.f32 %v2090_v41, %v5589_v26 }
 0x2df   :  { %v2217_v41 = vmul.f32 %v5683_v4, %v2197_v22  ;;  %v2218_v26 = vmul.f32 %v5687_v49, %v2197_v22  ;;  %v2109_v44 = vadd.f32 %v2101_v42, %v5539_v31  ;;  %v2186_v0 = vadd.f32 %v2178_v40, %v2146_v29 }
 0x2e0   :  { %v2110_v16 = vadd.f32 %v2102_v25, %v5541_v34  ;;  %v2108_v22 = vadd.f32 %v2100_v59, %v5569_v50  ;;  %v2179_v31 = vmul.f32 %v5671_v43, %v5650_v58  ;;  %v2180_v34 = vmul.f32 %v5675_v7, %v5650_v58 }
 0x2e1   :  { %v6964_v42 = vmov 2   ;;  %v2143_v62 = vadd.f32 %v2135_v28, %v2103_v63  ;;  %v2144_v27 = vadd.f32 %v2136_v57, %v2104_v55  ;;  %v2225_v36 = vadd.f32 %v2217_v41, %v2185_v60 }
 0x2e2   :  { %2680 = vperm.xlu1 %3395, %v5575_v54   ;;  %v5706_v47 = vpop.permute.xlu1 %2232  ;;  %v5726_v54 = vrot.slane %v5656_v23, %v6818_v18  ;;  %v5744_v18 = vrot.slane %v5658_v10, %v6815_v30  ;;  %v5756_v30 = vld [vmem:[%s6097_s3] sm:$0x3]  ;;  %v2226_v25 = vadd.f32 %v2218_v26, %v2186_v0  ;;  %v2148_v17 = vadd.f32 %v2140_v6, %v2108_v22  ;;  %s3524_s3 = smov [#allocation5]  }
 0x2e3   :  { %v2220_v50 = vmul.f32 %v5687_v49, %v5678_v13  ;;  %v2183_v48 = vadd.f32 %v2175_v61, %v2143_v62  ;;  %v2184_v33 = vadd.f32 %v2176_v20, %v2144_v27  ;;  %v2149_v58 = vadd.f32 %v5694_v15, %v2109_v44  ;;  %s3249_s14 = sshll.u32 %s3524_s3, 4  ;;  %s3250_s14 = int_to_ptr.vmem [resolvable:$true] %s3249_s14 }
 0x2e4   :  { %v2150_v40 = vadd.f32 %v5697_v45, %v2110_v16  ;;  %v2188_v57 = vadd.f32 %v2180_v34, %v2148_v17  ;;  %v2265_v6 = vadd.f32 %v2257_v3, %v2225_v36  ;;  %v2266_v63 = vadd.f32 %v2258_v56, %v2226_v25  ;;  %s3463_s15 = scalar_lea.vmem %s3250_s14, 64  ;;  %p3468_p9 = scmp.lt.s32.totalorder %s3250_s14, %s3250_s14 }
 0x2e5   :  { %v2255_v15 = vmul.f32 %v5710_v8, %v5706_v47  ;;  %v2256_v45 = vmul.f32 %v5714_v11, %v5706_v47  ;;  %v2182_v3 = vmul.f32 %v5675_v7, %v5653_v32  ;;  %v2223_v16 = vadd.f32 %v5718_v38, %v2183_v48  ;;  %v6967_v38 = vld [vmem:[#allocation174_spill] sm:$0xff]  ;;  %p3464_p8 = scmp.ne.s32.totalorder %s3250_s14, %s3463_s15  ;;  %p3469_p10 = scmp.lt.s32.totalorder %s3463_s15, %s3463_s15 }
 0x2e6   :  { %3398 = vset.pattern.permute.xlu1 %v6961_v12  ;;  %v2241_v9 = vpop.permute.xlu1 %2240  ;;  %v2337_v12 = vmul.f32 %v5726_v54, %v6963_v39  ;;  %v2107_v39 = vadd.f32 %v2099_v51, %v5567_v21  ;;  %v2219_v21 = vmul.f32 %v5683_v4, %v5678_v13  ;;  %v6965_v13 = vmov 4  }
 0x2e7   :  { %2736 = vperm.xlu1 %3398, %v5756_v30   ;;  %v2259_v51 = vmul.f32 %v5710_v8, %v2241_v9  ;;  %v2260_v59 = vmul.f32 %v5714_v11, %v2241_v9  ;;  %v2228_v26 = vadd.f32 %v2220_v50, %v2188_v57  ;;  %v2181_v9 = vmul.f32 %v5671_v43, %v5653_v32  ;;  %p3470_p11 = por %p3469_p10, %p3468_p9 }
 0x2e8   :  { %v2147_v29 = vadd.f32 %v2139_v24, %v2107_v39  ;;  %v2224_v20 = vadd.f32 %v5722_v35, %v2184_v33  ;;  %v6966_v62 = vmov 5   ;;  %v2190_v7 = vadd.f32 %v2182_v3, %v2150_v40 }
 0x2e9   :  { %v2268_v0 = vadd.f32 %v2260_v59, %v2228_v26  ;;  %v2189_v32 = vadd.f32 %v2181_v9, %v2149_v58  ;;  %v2295_v35 = vmul.f32 %v5740_v14, %v6967_v38  ;;  %v2296_v25 = vmul.f32 %v5744_v18, %v6967_v38  ;;  %p3471_p12 = pnand %p3470_p11, %p3464_p8 }
 0x2ea   :  { %v2245_v1 = vpop.permute.xlu1 %2244  ;;  %v2187_v28 = vadd.f32 %v2179_v31, %v2147_v29  ;;  %v2264_v43 = vadd.f32 %v2256_v45, %v2224_v20  ;;  %v6968_v29 = vld [vmem:[#allocation153_spill] sm:$0xff]  ;;  %v6972_v45 = vld [vmem:[#allocation176_spill] sm:$0xff] }
 0x2eb   :  { %3399 = vset.pattern.permute.xlu1 %v6964_v42  ;;  %v2263_v42 = vadd.f32 %v2255_v15, %v2223_v16  ;;  %v2221_v17 = vmul.f32 %v5683_v4, %v6968_v29  ;;  %v2261_v50 = vmul.f32 %v5710_v8, %v2245_v1  ;;  %v2262_v48 = vmul.f32 %v5714_v11, %v2245_v1 }
 0x2ec   :  { %2752 = vperm.xlu1 %3399, %v5756_v30   ;;  %v2227_v61 = vadd.f32 %v2219_v21, %v2187_v28  ;;  %v2222_v21 = vmul.f32 %v5687_v49, %v6968_v29  ;;  %v2304_v40 = vadd.f32 %v2296_v25, %v2264_v43  ;;  %v6970_v49 = vld [vmem:[#allocation183_spill] sm:$0xff]  ;;  %v6971_v15 = vmov 8  }
 0x2ed   :  { %v2303_v58 = vadd.f32 %v2295_v35, %v2263_v42  ;;  %v2229_v57 = vadd.f32 %v2221_v17, %v2189_v32  ;;  %v2301_v9 = vmul.f32 %v5740_v14, %v6972_v45  ;;  %v2302_v3 = vmul.f32 %v5744_v18, %v6972_v45  ;;  %v6976_v35 = vld [vmem:[#allocation15_spill] sm:$0xff] }
 0x2ee   :  { %v2267_v60 = vadd.f32 %v2259_v51, %v2227_v61  ;;  %v2230_v51 = vadd.f32 %v2222_v21, %v2190_v7  ;;  %v6974_v43 = vmov 10   ;;  %v6977_v17 = vmov 11  }
 0x2ef   :  { %v2277_v24 = vpop.permute.xlu1 %2276  ;;  %v2269_v11 = vadd.f32 %v2261_v50, %v2229_v57 }
 0x2f0   :  { %v2297_v55 = vmul.f32 %v5740_v14, %v2277_v24  ;;  %v2298_v41 = vmul.f32 %v5744_v18, %v2277_v24  ;;  %3400 = vset.pattern.permute.xlu1 %v6965_v13  ;;  %v2270_v1 = vadd.f32 %v2262_v48, %v2230_v51 }
 0x2f1   :  { %2784 = vperm.xlu1 %3400, %v5756_v30  }
 0x2f2   :  { %v2305_v56 = vadd.f32 %v2297_v55, %v2265_v6  ;;  %v2306_v44 = vadd.f32 %v2298_v41, %v2266_v63  ;;  %v2310_v16 = vadd.f32 %v2302_v3, %v2270_v1  ;;  %v6980_v1 = vmov 14   ;;  %v6982_v3 = vld [vmem:[#allocation65_spill] sm:$0xff] }
 0x2f3   :  { %v2281_v39 = vpop.permute.xlu1 %2280 }
 0x2f4   :  { %v2299_v22 = vmul.f32 %v5740_v14, %v2281_v39  ;;  %v2300_v47 = vmul.f32 %v5744_v18, %v2281_v39  ;;  %v2345_v31 = vadd.f32 %v2337_v12, %v2305_v56  ;;  %v2346_v34 = vadd.f32 %v2338_v37, %v2306_v44  ;;  %v6975_v14 = vld [vmem:[#allocation64_spill] sm:$0xff] }
 0x2f5   :  { %3401 = vset.pattern.permute.xlu1 %v6966_v62  ;;  %v2370_v12 = vrot.slane %v5656_v23, %v6829_v46  ;;  %v2374_v37 = vrot.slane %v5658_v10, %v6829_v46  ;;  %v6969_v10 = vmov 7   ;;  %v2309_v44 = vadd.f32 %v2301_v9, %v2269_v11 }
 0x2f6   :  { %v2307_v27 = vadd.f32 %v2299_v22, %v2267_v60  ;;  %v2308_v36 = vadd.f32 %v2300_v47, %v2268_v0  ;;  %2800 = vperm.xlu1 %3401, %v5756_v30   ;;  %v6973_v22 = vld [vmem:[#allocation43_spill] sm:$0xff]  ;;  %v2410_v18 = vrot.slane %v5110_v53, %v6742_v19  ;;  %v2414_v62 = vrot.slane %v6975_v14, %v6742_v19 }
 0x2f7   :  { %v2375_v24 = vmul.f32 %v2370_v12, %v6970_v49  ;;  %v2376_v8 = vmul.f32 %v2374_v37, %v6970_v49  ;;  %v2381_v47 = vmul.f32 %v2370_v12, %v6973_v22  ;;  %v2382_v42 = vmul.f32 %v2374_v37, %v6973_v22 }
 0x2f8   :  { %v2313_v33 = vpop.permute.xlu1 %2312  ;;  %v2417_v25 = vmul.f32 %v2410_v18, %v6976_v35  ;;  %v2418_v29 = vmul.f32 %v2414_v62, %v6976_v35  ;;  %v6983_v22 = vmov 17   ;;  %v6986_v35 = vld [vmem:[#allocation130_spill] sm:$0xff] }
 0x2f9   :  { %v2335_v28 = vmul.f32 %v5726_v54, %v2313_v33  ;;  %v2336_v23 = vmul.f32 %v5730_v5, %v2313_v33 }
 0x2fa   :  { %3403 = vset.pattern.permute.xlu1 %v6969_v10 }
 0x2fb   :  { %v2343_v59 = vadd.f32 %v2335_v28, %v2303_v58  ;;  %v2344_v4 = vadd.f32 %v2336_v23, %v2304_v40  ;;  %2832 = vperm.xlu1 %3403, %v5756_v30   ;;  %v2450_v23 = vrot.slane %v5110_v53, %v6830_v52 }
 0x2fc   :  { %v2321_v6 = vpop.permute.xlu1 %2320 }
 0x2fd   :  { %v2339_v63 = vmul.f32 %v5726_v54, %v2321_v6  ;;  %v2340_v55 = vmul.f32 %v5730_v5, %v2321_v6  ;;  %v2383_v41 = vadd.f32 %v2375_v24, %v2343_v59  ;;  %v2384_v13 = vadd.f32 %v2376_v8, %v2344_v4  ;;  %v6979_v59 = vld [vmem:[#allocation51_spill] sm:$0xff] }
 0x2fe   :  { %v2455_v4 = vmul.f32 %v2450_v23, %v6979_v59 }
 0x2ff   :  { %v2347_v61 = vadd.f32 %v2339_v63, %v2307_v27  ;;  %v2348_v26 = vadd.f32 %v2340_v55, %v2308_v36  ;;  %3404 = vset.pattern.permute.xlu1 %v6971_v15 }
 0x300   :  { %2848 = vperm.xlu1 %3404, %v5756_v30   ;;  %v2325_v56 = vpop.permute.xlu1 %2324 }
 0x301   :  { %v2341_v20 = vmul.f32 %v5726_v54, %v2325_v56  ;;  %v2342_v60 = vmul.f32 %v5730_v5, %v2325_v56  ;;  %v2461_v56 = vmul.f32 %v2450_v23, %v6982_v3 }
 0x303   :  { %v2349_v0 = vadd.f32 %v2341_v20, %v2309_v44  ;;  %v2350_v39 = vadd.f32 %v2342_v60, %v2310_v16 }
 0x304   :  { %3406 = vset.pattern.permute.xlu1 %v6974_v43 }
 0x305   :  { %2880 = vperm.xlu1 %3406, %v5756_v30   ;;  %v2357_v32 = vpop.permute.xlu1 %2356  ;;  %v2389_v54 = vadd.f32 %v2381_v47, %v2349_v0  ;;  %v2390_v7 = vadd.f32 %v2382_v42, %v2350_v39 }
 0x306   :  { %v2377_v5 = vmul.f32 %v2370_v12, %v2357_v32  ;;  %v2378_v27 = vmul.f32 %v2374_v37, %v2357_v32  ;;  %v6984_v32 = vld [vmem:[#allocation84_spill] sm:$0xff] }
 0x308   :  { %v2385_v36 = vadd.f32 %v2377_v5, %v2345_v31  ;;  %v2386_v38 = vadd.f32 %v2378_v27, %v2346_v34  ;;  %v2454_v31 = vrot.slane %v6975_v14, %v6830_v52  ;;  %v6978_v34 = vmov 13  }
 0x309   :  { %3407 = vset.pattern.permute.xlu1 %v6977_v17  ;;  %v2361_v21 = vpop.permute.xlu1 %2360 }
 0x30a   :  { %v2379_v50 = vmul.f32 %v2370_v12, %v2361_v21  ;;  %v2380_v48 = vmul.f32 %v2374_v37, %v2361_v21  ;;  %2896 = vperm.xlu1 %3407, %v5756_v30   ;;  %v2425_v33 = vadd.f32 %v2417_v25, %v2385_v36  ;;  %v2426_v58 = vadd.f32 %v2418_v29, %v2386_v38  ;;  %v6987_v29 = vld [vmem:[#allocation179_spill] sm:$0xff] }
 0x30b   :  { %v2456_v49 = vmul.f32 %v2454_v31, %v6979_v59  ;;  %v2462_v44 = vmul.f32 %v2454_v31, %v6982_v3  ;;  %v6992_v59 = vmov 21  }
 0x30c   :  { %v2387_v40 = vadd.f32 %v2379_v50, %v2347_v61  ;;  %v2388_v28 = vadd.f32 %v2380_v48, %v2348_v26  ;;  %v6988_v48 = vmov 31  }
 0x30e   :  { %3409 = vset.pattern.permute.xlu1 %v6978_v34  ;;  %v2393_v57 = vpop.permute.xlu1 %2392 }
 0x30f   :  { %v2415_v51 = vmul.f32 %v2410_v18, %v2393_v57  ;;  %v2416_v10 = vmul.f32 %v2414_v62, %v2393_v57  ;;  %2928 = vperm.xlu1 %3409, %v5756_v30  }
 0x311   :  { %v2423_v12 = vadd.f32 %v2415_v51, %v2383_v41  ;;  %v2424_v37 = vadd.f32 %v2416_v10, %v2384_v13  ;;  %v6981_v41 = vmov 16  }
 0x312   :  { %v2401_v24 = vpop.permute.xlu1 %2400 }
 0x313   :  { %v2419_v8 = vmul.f32 %v2410_v18, %v2401_v24  ;;  %v2420_v11 = vmul.f32 %v2414_v62, %v2401_v24  ;;  %3410 = vset.pattern.permute.xlu1 %v6980_v1  ;;  %v2463_v6 = vadd.f32 %v2455_v4, %v2423_v12  ;;  %v2464_v63 = vadd.f32 %v2456_v49, %v2424_v37  ;;  %v6993_v1 = vld [vmem:[#allocation112_spill] sm:$0xff] }
 0x314   :  { %2944 = vperm.xlu1 %3410, %v5756_v30  }
 0x315   :  { %v2427_v55 = vadd.f32 %v2419_v8, %v2387_v40  ;;  %v2428_v61 = vadd.f32 %v2420_v11, %v2388_v28  ;;  %v6991_v28 = vld [vmem:[#allocation152_spill] sm:$0xff] }
 0x316   :  { %v2405_v26 = vpop.permute.xlu1 %2404 }
 0x317   :  { %v2421_v15 = vmul.f32 %v2410_v18, %v2405_v26  ;;  %v2422_v45 = vmul.f32 %v2414_v62, %v2405_v26  ;;  %v6995_v26 = vld [vmem:[#allocation133_spill] sm:$0xff] }
 0x318   :  { %3412 = vset.pattern.permute.xlu1 %v6981_v41 }
 0x319   :  { %v2429_v13 = vadd.f32 %v2421_v15, %v2389_v54  ;;  %v2430_v9 = vadd.f32 %v2422_v45, %v2390_v7  ;;  %2976 = vperm.xlu1 %3412, %v5756_v30   ;;  %v6985_v7 = vld [vmem:[#allocation72_spill] sm:$0xff]  ;;  %v6996_v45 = vld [vmem:[#allocation173_spill] sm:$0xff] }
 0x31b   :  { %v2437_v16 = vpop.permute.xlu1 %2436  ;;  %v2469_v20 = vadd.f32 %v2461_v56, %v2429_v13  ;;  %v2470_v60 = vadd.f32 %v2462_v44, %v2430_v9  ;;  %v6997_v44 = vld [vmem:[#allocation92_spill] sm:$0xff] }
 0x31c   :  { %v2457_v0 = vmul.f32 %v2450_v23, %v2437_v16  ;;  %v2458_v39 = vmul.f32 %v2454_v31, %v2437_v16 }
 0x31d   :  { %3413 = vset.pattern.permute.xlu1 %v6983_v22  ;;  %v6998_v22 = vmov 24  }
 0x31e   :  { %v2465_v47 = vadd.f32 %v2457_v0, %v2425_v33  ;;  %v2466_v42 = vadd.f32 %v2458_v39, %v2426_v58  ;;  %2992 = vperm.xlu1 %3413, %v5756_v30   ;;  %v6989_v33 = vld [vmem:[#allocation89_spill] sm:$0xff]  ;;  %v6990_v58 = vld [vmem:[#allocation99_spill] sm:$0xff] }
 0x31f   :  { %v2441_v43 = vpop.permute.xlu1 %2440  ;;  %v2535_v40 = vmul.f32 %v6990_v58, %v6989_v33 }
 0x320   :  { %v2459_v18 = vmul.f32 %v2450_v23, %v2441_v43  ;;  %v2460_v62 = vmul.f32 %v2454_v31, %v2441_v43  ;;  %v2505_v54 = vadd.f32 %v6984_v32, %v2465_v47  ;;  %v2506_v5 = vadd.f32 %v6985_v7, %v2466_v42  ;;  %v3440_v31 = vld [vmem:[#allocation2 + $0x38] sm:$0xff] }
 0x321   :  { %v2536_v23 = vmul.f32 %v6991_v28, %v6989_v33  ;;  %v6999_v7 = vmov 25  }
 0x322   :  { %v2467_v27 = vadd.f32 %v2459_v18, %v2427_v55  ;;  %v2468_v36 = vadd.f32 %v2460_v62, %v2428_v61  ;;  %3415 = vset.pattern.permute.xlu1 %v6833_v2  ;;  %v6994_v55 = vmov 22  }
 0x323   :  { %3024 = vperm.xlu1 %3415, %v5756_v30  }
 0x324   :  { %v2473_v38 = vpop.permute.xlu1 %2472 }
 0x325   :  { %v2495_v25 = vmul.f32 %v6986_v35, %v2473_v38  ;;  %v2496_v17 = vmul.f32 %v6987_v29, %v2473_v38  ;;  %v7001_v38 = vld [vmem:[#allocation96_spill] sm:$0xff] }
 0x327   :  { %v2503_v21 = vadd.f32 %v2495_v25, %v2463_v6  ;;  %v2504_v50 = vadd.f32 %v2496_v17, %v2464_v63  ;;  %3416 = vset.pattern.permute.xlu1 %v6988_v48  ;;  %v2570_v6 = vrot.slane %v5110_v53, %v6993_v1  ;;  %v2574_v63 = vrot.slane %v6975_v14, %v6993_v1  ;;  %v7002_v25 = vld [vmem:[#allocation159_spill] sm:$0xff] }
 0x328   :  { %2684 = vperm.xlu1 %3416, %v3440_v31   ;;  %v2481_v2 = vpop.permute.xlu1 %2480 }
 0x329   :  { %v2499_v34 = vmul.f32 %v6986_v35, %v2481_v2  ;;  %v2500_v57 = vmul.f32 %v6987_v29, %v2481_v2  ;;  %v2543_v51 = vadd.f32 %v2535_v40, %v2503_v21  ;;  %v2544_v10 = vadd.f32 %v2536_v23, %v2504_v50 }
 0x32a   :  { %v2577_v16 = vmul.f32 %v2570_v6, %v6997_v44  ;;  %v7003_v40 = vmov 27  }
 0x32b   :  { %v2507_v12 = vadd.f32 %v2499_v34, %v2467_v27  ;;  %v2508_v37 = vadd.f32 %v2500_v57, %v2468_v36  ;;  %v7000_v36 = vld [vmem:[#allocation56_spill] sm:$0xff] }
 0x32c   :  { %3418 = vset.pattern.permute.xlu1 %v6992_v59  ;;  %v2485_v4 = vpop.permute.xlu1 %2484 }
 0x32d   :  { %v2501_v49 = vmul.f32 %v6986_v35, %v2485_v4  ;;  %v2502_v24 = vmul.f32 %v6987_v29, %v2485_v4  ;;  %3056 = vperm.xlu1 %3418, %v5756_v30   ;;  %v2615_v35 = vmul.f32 %v7001_v38, %v7000_v36  ;;  %v2616_v29 = vmul.f32 %v7002_v25, %v7000_v36 }
 0x32f   :  { %v2509_v8 = vadd.f32 %v2501_v49, %v2469_v20  ;;  %v2510_v11 = vadd.f32 %v2502_v24, %v2470_v60  ;;  %v2578_v20 = vmul.f32 %v2574_v63, %v6997_v44  ;;  %v7006_v49 = vld [vmem:[#allocation182_spill] sm:$0xff] }
 0x331   :  { %3419 = vset.pattern.permute.xlu1 %v6994_v55  ;;  %v2517_v61 = vpop.permute.xlu1 %2516  ;;  %v2549_v15 = vadd.f32 %v6995_v26, %v2509_v8  ;;  %v2550_v41 = vadd.f32 %v6996_v45, %v2510_v11  ;;  %v7007_v8 = vld [vmem:[#allocation8_spill] sm:$0xff]  ;;  %v7008_v26 = vmov 30  }
 0x332   :  { %v2537_v13 = vmul.f32 %v6990_v58, %v2517_v61  ;;  %v2538_v9 = vmul.f32 %v6991_v28, %v2517_v61  ;;  %3072 = vperm.xlu1 %3419, %v5756_v30  }
 0x334   :  { %v2545_v3 = vadd.f32 %v2537_v13, %v2505_v54  ;;  %v2546_v56 = vadd.f32 %v2538_v9, %v2506_v5 }
 0x335   :  { %v2521_v60 = vpop.permute.xlu1 %2520 }
 0x336   :  { %v2539_v0 = vmul.f32 %v6990_v58, %v2521_v60  ;;  %v2540_v39 = vmul.f32 %v6991_v28, %v2521_v60  ;;  %3421 = vset.pattern.permute.xlu1 %v6998_v22  ;;  %v2585_v47 = vadd.f32 %v2577_v16, %v2545_v3  ;;  %v2586_v42 = vadd.f32 %v2578_v20, %v2546_v56 }
 0x337   :  { %3104 = vperm.xlu1 %3421, %v5756_v30   ;;  %v5926_v60 = vrot.slane %v5110_v53, %v6829_v46 }
 0x338   :  { %v2547_v43 = vadd.f32 %v2539_v0, %v2507_v12  ;;  %v2548_v18 = vadd.f32 %v2540_v39, %v2508_v37  ;;  %v7005_v12 = vld [vmem:[#allocation119_spill] sm:$0xff]  ;;  %v5930_v0 = vrot.slane %v6975_v14, %v6829_v46 }
 0x339   :  { %v2650_v37 = vrot.slane %v5110_v53, %v7005_v12  ;;  %v2654_v59 = vrot.slane %v6975_v14, %v7005_v12 }
 0x33a   :  { %v2553_v62 = vpop.permute.xlu1 %2552 }
 0x33b   :  { %v2575_v32 = vmul.f32 %v2570_v6, %v2553_v62  ;;  %v2576_v54 = vmul.f32 %v2574_v63, %v2553_v62  ;;  %3422 = vset.pattern.permute.xlu1 %v6999_v7 }
 0x33c   :  { %3120 = vperm.xlu1 %3422, %v5756_v30  }
 0x33d   :  { %v2583_v5 = vadd.f32 %v2575_v32, %v2543_v51  ;;  %v2584_v27 = vadd.f32 %v2576_v54, %v2544_v10  ;;  %v7004_v10 = vmov 28  }
 0x33e   :  { %v2561_v17 = vpop.permute.xlu1 %2560 }
 0x33f   :  { %v2579_v21 = vmul.f32 %v2570_v6, %v2561_v17  ;;  %v2580_v50 = vmul.f32 %v2574_v63, %v2561_v17  ;;  %v2623_v33 = vadd.f32 %v2615_v35, %v2583_v5  ;;  %v2624_v58 = vadd.f32 %v2616_v29, %v2584_v27 }
 0x340   :  { %3424 = vset.pattern.permute.xlu1 %v7003_v40 }
 0x341   :  { %v2587_v28 = vadd.f32 %v2579_v21, %v2547_v43  ;;  %v2588_v23 = vadd.f32 %v2580_v50, %v2548_v18  ;;  %3152 = vperm.xlu1 %3424, %v5756_v30  }
 0x342   :  { %v2565_v31 = vpop.permute.xlu1 %2564 }
 0x343   :  { %v2581_v2 = vmul.f32 %v2570_v6, %v2565_v31  ;;  %v2582_v34 = vmul.f32 %v2574_v63, %v2565_v31 }
 0x345   :  { %v2589_v57 = vadd.f32 %v2581_v2, %v2549_v15  ;;  %v2590_v51 = vadd.f32 %v2582_v34, %v2550_v41  ;;  %3425 = vset.pattern.permute.xlu1 %v7004_v10  ;;  %v7009_v15 = vld [vmem:[#allocation71_spill] sm:$0xff] }
 0x346   :  { %3168 = vperm.xlu1 %3425, %v5756_v30   ;;  %v2657_v45 = vmul.f32 %v2650_v37, %v7009_v15  ;;  %v2658_v41 = vmul.f32 %v2654_v59, %v7009_v15 }
 0x347   :  { %v2597_v4 = vpop.permute.xlu1 %2596  ;;  %v2629_v24 = vadd.f32 %v7006_v49, %v2589_v57  ;;  %v2630_v11 = vadd.f32 %v7007_v8, %v2590_v51 }
 0x348   :  { %v2617_v6 = vmul.f32 %v7001_v38, %v2597_v4  ;;  %v2618_v63 = vmul.f32 %v7002_v25, %v2597_v4 }
 0x34a   :  { %v2625_v55 = vadd.f32 %v2617_v6, %v2585_v47  ;;  %v2626_v61 = vadd.f32 %v2618_v63, %v2586_v42  ;;  %3427 = vset.pattern.permute.xlu1 %v7008_v26  ;;  %v7010_v42 = vld [vmem:[#allocation81_spill] sm:$0xff]  ;;  %v7012_v6 = vld [vmem:[#allocation87_spill] sm:$0xff]  ;;  %v7013_v26 = vld [vmem:[#allocation88_spill] sm:$0xff] }
 0x34b   :  { %3200 = vperm.xlu1 %3427, %v5756_v30   ;;  %v2601_v13 = vpop.permute.xlu1 %2600  ;;  %v2695_v43 = vmul.f32 %v5926_v60, %v7010_v42  ;;  %v2696_v18 = vmul.f32 %v5930_v0, %v7010_v42 }
 0x34c   :  { %v2619_v9 = vmul.f32 %v7001_v38, %v2601_v13  ;;  %v2620_v3 = vmul.f32 %v7002_v25, %v2601_v13  ;;  %v2665_v56 = vadd.f32 %v2657_v45, %v2625_v55  ;;  %v2666_v44 = vadd.f32 %v2658_v41, %v2626_v61 }
 0x34e   :  { %v2627_v16 = vadd.f32 %v2619_v9, %v2587_v28  ;;  %v2628_v20 = vadd.f32 %v2620_v3, %v2588_v23 }
 0x34f   :  { %3428 = vset.pattern.permute.xlu1 %v6988_v48 }
 0x350   :  { %3216 = vperm.xlu1 %3428, %v5756_v30   ;;  %v2633_v39 = vpop.permute.xlu1 %2632 }
 0x351   :  { %v2655_v22 = vmul.f32 %v2650_v37, %v2633_v39  ;;  %v2656_v47 = vmul.f32 %v2654_v59, %v2633_v39 }
 0x353   :  { %v2663_v62 = vadd.f32 %v2655_v22, %v2623_v33  ;;  %v2664_v53 = vadd.f32 %v2656_v47, %v2624_v58 }
 0x354   :  { %v2641_v32 = vpop.permute.xlu1 %2640 }
 0x355   :  { %v2703_v54 = vadd.f32 %v2695_v43, %v2663_v62  ;;  %v2704_v7 = vadd.f32 %v2696_v18, %v2664_v53  ;;  %v2659_v14 = vmul.f32 %v2650_v37, %v2641_v32  ;;  %v2660_v5 = vmul.f32 %v2654_v59, %v2641_v32  ;;  %v7014_v32 = vld [vmem:[#allocation113_spill] sm:$0xff] }
 0x357   :  { %v2667_v27 = vadd.f32 %v2659_v14, %v2627_v16  ;;  %v2668_v48 = vadd.f32 %v2660_v5, %v2628_v20  ;;  %v2711_v40 = vmax.f32 %v2703_v54, 0.0  ;;  %v2712_v28 = vmax.f32 %v2704_v7, 0.0  ;;  %v2769_v16 = vpop.permute.xlu0 %2768 }
 0x358   :  { %v2645_v36 = vpop.permute.xlu1 %2644 }
 0x359   :  { %v2661_v30 = vmul.f32 %v2650_v37, %v2645_v36  ;;  %v2662_v38 = vmul.f32 %v2654_v59, %v2645_v36  ;;  %v2728_v51 = vrot.slane %v2711_v40, %v6742_v19  ;;  %v2732_v10 = vrot.slane %v2712_v28, %v6742_v19 }
 0x35a   :  { %v2742_v37 = vrot.slane %v2711_v40, %v6830_v52  ;;  %v2746_v59 = vrot.slane %v2712_v28, %v6830_v52  ;;  %v2758_v63 = vrot.slane %v2711_v40, %v7012_v6  ;;  %v2762_v55 = vrot.slane %v2712_v28, %v7012_v6 }
 0x35b   :  { %v5938_v35 = vadd.f32 %v2661_v30, %v2629_v24  ;;  %v5940_v25 = vadd.f32 %v2662_v38, %v2630_v11  ;;  %v7011_v24 = vld [vmem:[#allocation80_spill] sm:$0xff]  ;;  %v2774_v15 = vrot.slane %v2711_v40, %v7013_v26  ;;  %v2778_v45 = vrot.slane %v2712_v28, %v7013_v26 }
 0x35c   :  { %v2733_v8 = vmul.f32 %v2728_v51, %v7011_v24  ;;  %v2734_v11 = vmul.f32 %v2732_v10, %v7011_v24  ;;  %v2790_v47 = vrot.slane %v2711_v40, %v6993_v1  ;;  %v2794_v42 = vrot.slane %v2712_v28, %v6993_v1 }
 0x35d   :  { %v2677_v29 = vpop.permute.xlu1 %2676  ;;  %v2779_v39 = vmul.f32 %v2774_v15, %v2769_v16  ;;  %v2780_v22 = vmul.f32 %v2778_v45, %v2769_v16  ;;  %v2806_v54 = vrot.slane %v2711_v40, %v7014_v32  ;;  %v2810_v7 = vrot.slane %v2712_v28, %v7014_v32 }
 0x35e   :  { %v2697_v17 = vmul.f32 %v5926_v60, %v2677_v29  ;;  %v2698_v21 = vmul.f32 %v5930_v0, %v2677_v29  ;;  %v2822_v14 = vrot.slane %v2711_v40, %v7005_v12  ;;  %v2826_v5 = vrot.slane %v2712_v28, %v7005_v12  ;;  %v2817_v29 = vpop.permute.xlu0 %2816 }
 0x35f   :  { %v2838_v10 = vrot.slane %v2711_v40, %v6829_v46 }
 0x360   :  { %v2705_v50 = vadd.f32 %v2697_v17, %v2665_v56  ;;  %v2706_v33 = vadd.f32 %v2698_v21, %v2666_v44 }
 0x361   :  { %v2681_v58 = vpop.permute.xlu1 %2680 }
 0x362   :  { %v2699_v23 = vmul.f32 %v5926_v60, %v2681_v58  ;;  %v2700_v31 = vmul.f32 %v5930_v0, %v2681_v58  ;;  %v2827_v58 = vmul.f32 %v2822_v14, %v2817_v29  ;;  %v2865_v15 = vpop.permute.xlu0 %2864 }
 0x364   :  { %v5946_v2 = vadd.f32 %v2699_v23, %v2667_v27  ;;  %v5948_v34 = vadd.f32 %v2700_v31, %v2668_v48  ;;  %v2828_v23 = vmul.f32 %v2826_v5, %v2817_v29  ;;  %v5966_v31 = vmax.f32 %v2705_v50, 0.0 }
 0x366   :  { %v2737_v57 = vpop.permute.xlu1 %2736  ;;  %v2870_v50 = vrot.slane %v5966_v31, %v6830_v52  ;;  %v2913_v5 = vpop.permute.xlu0 %2912 }
 0x367   :  { %v2747_v4 = vmul.f32 %v2742_v37, %v2737_v57  ;;  %v2748_v49 = vmul.f32 %v2746_v59, %v2737_v57  ;;  %v5968_v57 = vmax.f32 %v2706_v33, 0.0  ;;  %v2842_v37 = vrot.slane %v2712_v28, %v6829_v46 }
 0x369   :  { %v2749_v41 = vadd.f32 %v2747_v4, %v2733_v8  ;;  %v2750_v13 = vadd.f32 %v2748_v49, %v2734_v11  ;;  %v2854_v8 = vrot.slane %v5966_v31, %v6742_v19  ;;  %v2858_v11 = vrot.slane %v5968_v57, %v6742_v19 }
 0x36a   :  { %v2874_v33 = vrot.slane %v5968_v57, %v6830_v52  ;;  %v2938_v29 = vrot.slane %v5968_v57, %v7014_v32 }
 0x36b   :  { %v2753_v61 = vpop.permute.xlu1 %2752 }
 0x36c   :  { %v2763_v9 = vmul.f32 %v2758_v63, %v2753_v61  ;;  %v2764_v3 = vmul.f32 %v2762_v55, %v2753_v61 }
 0x36e   :  { %v2765_v56 = vadd.f32 %v2763_v9, %v2749_v41  ;;  %v2766_v44 = vadd.f32 %v2764_v3, %v2750_v13  ;;  %v2875_v13 = vmul.f32 %v2870_v50, %v2865_v15  ;;  %v2876_v9 = vmul.f32 %v2874_v33, %v2865_v15 }
 0x36f   :  { %v2886_v3 = vrot.slane %v5966_v31, %v7012_v6 }
 0x370   :  { %v2785_v20 = vpop.permute.xlu1 %2784  ;;  %v2781_v43 = vadd.f32 %v2779_v39, %v2765_v56  ;;  %v2782_v18 = vadd.f32 %v2780_v22, %v2766_v44  ;;  %v2890_v56 = vrot.slane %v5968_v57, %v7012_v6 }
 0x371   :  { %v2795_v62 = vmul.f32 %v2790_v47, %v2785_v20  ;;  %v2796_v53 = vmul.f32 %v2794_v42, %v2785_v20 }
 0x373   :  { %v2797_v48 = vadd.f32 %v2795_v62, %v2781_v43  ;;  %v2798_v36 = vadd.f32 %v2796_v53, %v2782_v18  ;;  %v2902_v43 = vrot.slane %v5966_v31, %v7013_v26  ;;  %v2906_v18 = vrot.slane %v5968_v57, %v7013_v26 }
 0x374   :  { %v2918_v62 = vrot.slane %v5966_v31, %v6993_v1  ;;  %v2922_v53 = vrot.slane %v5968_v57, %v6993_v1 }
 0x375   :  { %v2801_v27 = vpop.permute.xlu1 %2800 }
 0x376   :  { %v2811_v30 = vmul.f32 %v2806_v54, %v2801_v27  ;;  %v2812_v38 = vmul.f32 %v2810_v7, %v2801_v27 }
 0x378   :  { %v2813_v17 = vadd.f32 %v2811_v30, %v2797_v48  ;;  %v2814_v21 = vadd.f32 %v2812_v38, %v2798_v36  ;;  %v2923_v36 = vmul.f32 %v2918_v62, %v2913_v5  ;;  %v2924_v30 = vmul.f32 %v2922_v53, %v2913_v5 }
 0x379   :  { %v2934_v38 = vrot.slane %v5966_v31, %v7014_v32 }
 0x37a   :  { %v2833_v51 = vpop.permute.xlu1 %2832  ;;  %v2829_v59 = vadd.f32 %v2827_v58, %v2813_v17  ;;  %v2830_v4 = vadd.f32 %v2828_v23, %v2814_v21 }
 0x37b   :  { %v2843_v49 = vmul.f32 %v2838_v10, %v2833_v51  ;;  %v2844_v24 = vmul.f32 %v2842_v37, %v2833_v51 }
 0x37d   :  { %v2845_v40 = vadd.f32 %v2843_v49, %v2829_v59  ;;  %v2846_v55 = vadd.f32 %v2844_v24, %v2830_v4  ;;  %v2966_v59 = vrot.slane %v5966_v31, %v6829_v46  ;;  %v2970_v4 = vrot.slane %v5968_v57, %v6829_v46 }
 0x37e   :  { %v2950_v49 = vrot.slane %v5966_v31, %v7005_v12  ;;  %v2954_v24 = vrot.slane %v5968_v57, %v7005_v12 }
 0x37f   :  { %v2849_v63 = vpop.permute.xlu1 %2848 }
 0x380   :  { %v2859_v28 = vmul.f32 %v2854_v8, %v2849_v63  ;;  %v2860_v61 = vmul.f32 %v2858_v11, %v2849_v63  ;;  %v6005_v8 = vmax.f32 %v5946_v2, 0.0  ;;  %v6008_v11 = vmax.f32 %v5948_v34, 0.0 }
 0x382   :  { %v2861_v45 = vadd.f32 %v2859_v28, %v2845_v40  ;;  %v2862_v41 = vadd.f32 %v2860_v61, %v2846_v55  ;;  %v2961_v40 = vpop.permute.xlu0 %2960  ;;  %v2982_v31 = vrot.slane %v6005_v8, %v6742_v19  ;;  %v2986_v57 = vrot.slane %v6008_v11, %v6742_v19 }
 0x383   :  { %v2971_v55 = vmul.f32 %v2966_v59, %v2961_v40  ;;  %v2972_v28 = vmul.f32 %v2970_v4, %v2961_v40  ;;  %v3034_v5 = vrot.slane %v6008_v11, %v7013_v26 }
 0x384   :  { %v2881_v44 = vpop.permute.xlu1 %2880  ;;  %v2877_v16 = vadd.f32 %v2875_v13, %v2861_v45  ;;  %v2878_v20 = vadd.f32 %v2876_v9, %v2862_v41 }
 0x385   :  { %v2891_v39 = vmul.f32 %v2886_v3, %v2881_v44  ;;  %v2892_v22 = vmul.f32 %v2890_v56, %v2881_v44  ;;  %v3014_v56 = vrot.slane %v6005_v8, %v7012_v6  ;;  %v3018_v44 = vrot.slane %v6008_v11, %v7012_v6 }
 0x387   :  { %v2893_v47 = vadd.f32 %v2891_v39, %v2877_v16  ;;  %v2894_v42 = vadd.f32 %v2892_v22, %v2878_v20  ;;  %v2998_v16 = vrot.slane %v6005_v8, %v6830_v52  ;;  %v3002_v20 = vrot.slane %v6008_v11, %v6830_v52  ;;  %v3009_v22 = vpop.permute.xlu0 %3008 }
 0x389   :  { %v2897_v54 = vpop.permute.xlu1 %2896 }
 0x38a   :  { %v2907_v7 = vmul.f32 %v2902_v43, %v2897_v54  ;;  %v2908_v14 = vmul.f32 %v2906_v18, %v2897_v54  ;;  %v3019_v43 = vmul.f32 %v3014_v56, %v3009_v22  ;;  %v3020_v18 = vmul.f32 %v3018_v44, %v3009_v22 }
 0x38b   :  { %v3046_v54 = vrot.slane %v6005_v8, %v6993_v1 }
 0x38c   :  { %v2909_v27 = vadd.f32 %v2907_v7, %v2893_v47  ;;  %v2910_v48 = vadd.f32 %v2908_v14, %v2894_v42  ;;  %v3050_v7 = vrot.slane %v6008_v11, %v6993_v1  ;;  %v3030_v14 = vrot.slane %v6005_v8, %v7013_v26 }
 0x38e   :  { %v2929_v17 = vpop.permute.xlu1 %2928  ;;  %v2925_v21 = vadd.f32 %v2923_v36, %v2909_v27  ;;  %v2926_v58 = vadd.f32 %v2924_v30, %v2910_v48 }
 0x38f   :  { %v2939_v23 = vmul.f32 %v2934_v38, %v2929_v17  ;;  %v2940_v51 = vmul.f32 %v2938_v29, %v2929_v17  ;;  %v3041_v29 = vpop.permute.xlu0 %3040 }
 0x390   :  { %v3051_v17 = vmul.f32 %v3046_v54, %v3041_v29 }
 0x391   :  { %v2941_v10 = vadd.f32 %v2939_v23, %v2925_v21  ;;  %v2942_v37 = vadd.f32 %v2940_v51, %v2926_v58  ;;  %v3052_v21 = vmul.f32 %v3050_v7, %v3041_v29 }
 0x393   :  { %v2945_v50 = vpop.permute.xlu1 %2944 }
 0x394   :  { %v2955_v33 = vmul.f32 %v2950_v49, %v2945_v50  ;;  %v2956_v63 = vmul.f32 %v2954_v24, %v2945_v50  ;;  %v3062_v50 = vrot.slane %v6005_v8, %v7014_v32 }
 0x396   :  { %v2957_v61 = vadd.f32 %v2955_v33, %v2941_v10  ;;  %v2958_v15 = vadd.f32 %v2956_v63, %v2942_v37  ;;  %v3066_v33 = vrot.slane %v6008_v11, %v7014_v32 }
 0x398   :  { %v2977_v45 = vpop.permute.xlu1 %2976  ;;  %v2973_v2 = vadd.f32 %v2971_v55, %v2957_v61  ;;  %v2974_v41 = vadd.f32 %v2972_v28, %v2958_v15  ;;  %v3089_v15 = vpop.permute.xlu0 %3088 }
 0x399   :  { %v2987_v13 = vmul.f32 %v2982_v31, %v2977_v45  ;;  %v2988_v34 = vmul.f32 %v2986_v57, %v2977_v45 }
 0x39b   :  { %v2989_v9 = vadd.f32 %v2987_v13, %v2973_v2  ;;  %v2990_v3 = vadd.f32 %v2988_v34, %v2974_v41 }
 0x39c   :  { %v3137_v7 = vpop.permute.xlu0 %3136 }
 0x39d   :  { %v2993_v39 = vpop.permute.xlu1 %2992 }
 0x39e   :  { %v3003_v47 = vmul.f32 %v2998_v16, %v2993_v39  ;;  %v3004_v42 = vmul.f32 %v3002_v20, %v2993_v39 }
 0x3a0   :  { %v3005_v62 = vadd.f32 %v3003_v47, %v2989_v9  ;;  %v3006_v53 = vadd.f32 %v3004_v42, %v2990_v3 }
 0x3a2   :  { %v3025_v27 = vpop.permute.xlu1 %3024  ;;  %v3021_v48 = vadd.f32 %v3019_v43, %v3005_v62  ;;  %v3022_v36 = vadd.f32 %v3020_v18, %v3006_v53 }
 0x3a3   :  { %v3035_v30 = vmul.f32 %v3030_v14, %v3025_v27  ;;  %v3036_v38 = vmul.f32 %v3034_v5, %v3025_v27 }
 0x3a5   :  { %v3037_v58 = vadd.f32 %v3035_v30, %v3021_v48  ;;  %v3038_v23 = vadd.f32 %v3036_v38, %v3022_v36 }
 0x3a7   :  { %v2685_v51 = vpop.permute.xlu1 %2684  ;;  %v3053_v10 = vadd.f32 %v3051_v17, %v3037_v58  ;;  %v3054_v37 = vadd.f32 %v3052_v21, %v3038_v23 }
 0x3a8   :  { %v2701_v59 = vmul.f32 %v5926_v60, %v2685_v51  ;;  %v2702_v4 = vmul.f32 %v5930_v0, %v2685_v51  ;;  %v3094_v60 = vrot.slane %v6005_v8, %v6829_v46  ;;  %v3098_v0 = vrot.slane %v6008_v11, %v6829_v46 }
 0x3aa   :  { %v2709_v49 = vadd.f32 %v2701_v59, %v5938_v35  ;;  %v2710_v24 = vadd.f32 %v2702_v4, %v5940_v25  ;;  %v3078_v35 = vrot.slane %v6005_v8, %v7005_v12  ;;  %v3082_v25 = vrot.slane %v6008_v11, %v7005_v12 }
 0x3ab   :  { %v3099_v13 = vmul.f32 %v3094_v60, %v3089_v15  ;;  %v3100_v34 = vmul.f32 %v3098_v0, %v3089_v15 }
 0x3ac   :  { %v3057_v63 = vpop.permute.xlu1 %3056  ;;  %v6046_v31 = vmax.f32 %v2709_v49, 0.0  ;;  %v6048_v57 = vmax.f32 %v2710_v24, 0.0 }
 0x3ad   :  { %v3067_v40 = vmul.f32 %v3062_v50, %v3057_v63  ;;  %v3068_v55 = vmul.f32 %v3066_v33, %v3057_v63 }
 0x3ae   :  { %v3110_v56 = vrot.slane %v6046_v31, %v6742_v19  ;;  %v3114_v8 = vrot.slane %v6048_v57, %v6742_v19  ;;  %v3142_v42 = vrot.slane %v6046_v31, %v7012_v6  ;;  %v3146_v43 = vrot.slane %v6048_v57, %v7012_v6 }
 0x3af   :  { %v3069_v28 = vadd.f32 %v3067_v40, %v3053_v10  ;;  %v3070_v61 = vadd.f32 %v3068_v55, %v3054_v37  ;;  %v3126_v18 = vrot.slane %v6046_v31, %v6830_v52  ;;  %v3130_v62 = vrot.slane %v6048_v57, %v6830_v52 }
 0x3b0   :  { %v3147_v14 = vmul.f32 %v3142_v42, %v3137_v7  ;;  %v3148_v5 = vmul.f32 %v3146_v43, %v3137_v7  ;;  %v3158_v36 = vrot.slane %v6046_v31, %v7013_v26  ;;  %v3162_v6 = vrot.slane %v6048_v57, %v7013_v26  ;;  %v3185_v26 = vpop.permute.xlu0 %3184 }
 0x3b1   :  { %v3073_v45 = vpop.permute.xlu1 %3072  ;;  %v3190_v23 = vrot.slane %v6046_v31, %v7014_v32  ;;  %v3194_v51 = vrot.slane %v6048_v57, %v7014_v32  ;;  %v3174_v10 = vrot.slane %v6046_v31, %v6993_v1  ;;  %v3178_v37 = vrot.slane %v6048_v57, %v6993_v1 }
 0x3b2   :  { %v3083_v2 = vmul.f32 %v3078_v35, %v3073_v45  ;;  %v3084_v41 = vmul.f32 %v3082_v25, %v3073_v45  ;;  %v3206_v40 = vrot.slane %v6046_v31, %v7005_v12  ;;  %v3210_v32 = vrot.slane %v6048_v57, %v7005_v12 }
 0x3b3   :  { %v3195_v24 = vmul.f32 %v3190_v23, %v3185_v26  ;;  %v3196_v50 = vmul.f32 %v3194_v51, %v3185_v26  ;;  %v3222_v25 = vrot.slane %v6046_v31, %v6829_v46  ;;  %v3226_v15 = vrot.slane %v6048_v57, %v6829_v46 }
 0x3b4   :  { %v3085_v9 = vadd.f32 %v3083_v2, %v3069_v28  ;;  %v3086_v3 = vadd.f32 %v3084_v41, %v3070_v61 }
 0x3b6   :  { %v3105_v44 = vpop.permute.xlu1 %3104  ;;  %v3101_v11 = vadd.f32 %v3099_v13, %v3085_v9  ;;  %v3102_v16 = vadd.f32 %v3100_v34, %v3086_v3 }
 0x3b7   :  { %v3115_v20 = vmul.f32 %v3110_v56, %v3105_v44  ;;  %v3116_v39 = vmul.f32 %v3114_v8, %v3105_v44 }
 0x3b9   :  { %v3117_v22 = vadd.f32 %v3115_v20, %v3101_v11  ;;  %v3118_v47 = vadd.f32 %v3116_v39, %v3102_v16 }
 0x3bb   :  { %v3121_v19 = vpop.permute.xlu1 %3120 }
 0x3bc   :  { %v3131_v53 = vmul.f32 %v3126_v18, %v3121_v19  ;;  %v3132_v54 = vmul.f32 %v3130_v62, %v3121_v19 }
 0x3be   :  { %v3133_v27 = vadd.f32 %v3131_v53, %v3117_v22  ;;  %v3134_v48 = vadd.f32 %v3132_v54, %v3118_v47 }
 0x3c0   :  { %v3153_v30 = vpop.permute.xlu1 %3152  ;;  %v3149_v38 = vadd.f32 %v3147_v14, %v3133_v27  ;;  %v3150_v29 = vadd.f32 %v3148_v5, %v3134_v48 }
 0x3c1   :  { %v3163_v17 = vmul.f32 %v3158_v36, %v3153_v30  ;;  %v3164_v21 = vmul.f32 %v3162_v6, %v3153_v30 }
 0x3c3   :  { %v3165_v52 = vadd.f32 %v3163_v17, %v3149_v38  ;;  %v3166_v58 = vadd.f32 %v3164_v21, %v3150_v29 }
 0x3c5   :  { %v3169_v59 = vpop.permute.xlu1 %3168 }
 0x3c6   :  { %v3179_v4 = vmul.f32 %v3174_v10, %v3169_v59  ;;  %v3180_v49 = vmul.f32 %v3178_v37, %v3169_v59 }
 0x3c8   :  { %v3181_v33 = vadd.f32 %v3179_v4, %v3165_v52  ;;  %v3182_v63 = vadd.f32 %v3180_v49, %v3166_v58 }
 0x3ca   :  { %v3201_v55 = vpop.permute.xlu1 %3200  ;;  %v3197_v28 = vadd.f32 %v3195_v24, %v3181_v33  ;;  %v3198_v61 = vadd.f32 %v3196_v50, %v3182_v63 }
 0x3cb   :  { %v3211_v60 = vmul.f32 %v3206_v40, %v3201_v55  ;;  %v3212_v0 = vmul.f32 %v3210_v32, %v3201_v55 }
 0x3cd   :  { %v3213_v1 = vadd.f32 %v3211_v60, %v3197_v28  ;;  %v3214_v35 = vadd.f32 %v3212_v0, %v3198_v61 }
 0x3cf   :  { %v3217_v45 = vpop.permute.xlu1 %3216 }
 0x3d0   :  { %v3227_v2 = vmul.f32 %v3222_v25, %v3217_v45  ;;  %v3228_v41 = vmul.f32 %v3226_v15, %v3217_v45 }
 0x3d2   :  { %v3229_v13 = vadd.f32 %v3227_v2, %v3213_v1  ;;  %v3230_v12 = vadd.f32 %v3228_v41, %v3214_v35 }
 0x3d4   :  { %v3233_v34 = vcombine.low %v3229_v13, %v3230_v12 }
 0x3d6   :  { %3258 = vst.sshfl [vmem:[#allocation5] sm:$0x33 pattern:$0x76325410] %v3233_v34 }
 0x3d7   :  { %3474 = shalt.err (!%p3471_p12)
}
 0x3d8   :  { %s3475_s18 = scalar_lea.hbm %s6098_s4, 64 }
 0x3d9   :  { %p3476_p13 = scmp.ne.s32.totalorder %s6098_s4, %s3475_s18  ;;  %p3479_p0 = scmp.lt.u32.totalorder %s3475_s18, %s6098_s4 }
 0x3db   :  { %p3481_p1 = pnand %p3479_p0, %p3476_p13 }
 0x3dd   :  { %3484 = shalt.err (!%p3481_p1)
}
 0x3de   :  { %3252 = dma.vmem_to_hbm [thread:$0]  %s3250_s14, 64, %s6098_s4, [#allocation4]  }
 0x3df   :  { %3487 = dma.done.wait [#allocation4], 64  }
 0x3e0   :  { %3488 = vsyncadd [#allocation4], 4294967232 }
 0x3e1   :  { %3256 = vsyncpa [#allocation3], 1 }
 0x3e2   :  { %3257 = vsyncpa [#allocation4], 1 }

</bundles_post_ra>
